<compile_context>
chip_gen: v5e
topology: v5e:2x2
jax: 0.10.0
libtpu: 0.0.40
codegen_flags: <defaults>
</compile_context>

<pallas_src>
import functools
import math

import jax
import jax.numpy as jnp
from jax.experimental import pallas as pl
from jax.experimental.pallas import tpu as pltpu


# ----------------------------------------------------------------------------
# small in-kernel helpers
# ----------------------------------------------------------------------------
def _gelu(x):
    # TODO(synk): torch.nn.GELU defaults to the exact erf GELU; the tanh approximation
    # is used to stay on guaranteed-lowerable Mosaic elementwise ops (EUP tanh).
    c = math.sqrt(2.0 / math.pi)
    return 0.5 * x * (1.0 + jnp.tanh(c * (x + 0.044715 * x * x * x)))


def _dot_bf16(a, b, dims=(((1,), (0,)), ((), ()))):
    """MXU matmul with bf16 operands and f32 accumulation."""
    return jax.lax.dot_general(a.astype(jnp.bfloat16), b.astype(jnp.bfloat16),
                               dims, preferred_element_type=jnp.float32)


def _dot_f32(a, b, dims=(((1,), (0,)), ((), ()))):
    """Tiny exact-f32 matmuls (LayerNorm stats / constant gather matrices)."""
    return jax.lax.dot_general(a, b, dims, preferred_element_type=jnp.float32)


def _softmax_lastdim(s):
    m = jnp.max(s, axis=-1, keepdims=True)
    p = jnp.exp(s - m)
    return p * pl.reciprocal(jnp.sum(p, axis=-1, keepdims=True), approx=True)


def _bcast_map(ndim):
    return lambda b: (0,) * ndim


# ----------------------------------------------------------------------------
# single fused kernel: transformer block + heads + upscaling + mask product
# ----------------------------------------------------------------------------
def _mask_decoder_kernel(
        tok_ref, img_ref, pe_ref, dense_ref,
        wq1, bq1, wk1, bk1, wv1, bv1, wo1, bo1,
        wm1, bm1, wm2, bm2,
        wq2, bq2, wk2, bk2, wv2, bv2, wo2, bo2,
        hw1, hb1, hw2, hb2, hw3, hb3,
        uw1, ub1, ln_ones, ln_g4, ln_b4, uw2, ub2,
        dmask, a_sel, b_fold, mt,
        masks_ref, iou_ref):
    nm = iou_ref.shape[-1]                 # number of mask tokens

    tok = tok_ref[0]                       # (T, C)
    src = img_ref[0] + dense_ref[0]        # (HW, C); image/PE broadcast via index_map
    srcpos = src + pe_ref[0]

    # ---- tokens -> image cross attention (1/sqrt(C) pre-folded into wq1/bq1) ----
    q = _dot_bf16(tok, wq1[...]) + bq1[...]
    k = _dot_bf16(srcpos, wk1[...]) + bk1[...]
    v = _dot_bf16(src, wv1[...]) + bv1[...]
    s = _dot_bf16(q, k, dims=(((1,), (1,)), ((), ())))            # (T, HW)
    a = _dot_bf16(_softmax_lastdim(s), v)                         # (T, C)
    tok = tok + _dot_bf16(a, wo1[...]) + bo1[...]

    # ---- token MLP (ReLU) ----
    t2 = jnp.maximum(_dot_bf16(tok, wm1[...]) + bm1[...], 0.0)
    tok = tok + _dot_bf16(t2, wm2[...]) + bm2[...]

    # ---- image -> tokens cross attention (q2 pre-scaled) ----
    q2 = _dot_bf16(srcpos, wq2[...]) + bq2[...]                   # (HW, C)
    k2 = _dot_bf16(tok, wk2[...]) + bk2[...]
    v2 = _dot_bf16(tok, wv2[...]) + bv2[...]
    s2 = _dot_bf16(q2, k2, dims=(((1,), (1,)), ((), ())))         # (HW, T)
    a2 = _dot_bf16(_softmax_lastdim(s2), v2)
    src = src + _dot_bf16(a2, wo2[...]) + bo2[...]                # (HW, C)

    # ---- fused (IoU + nm hypernetwork) 3-layer MLP heads ----
    # rows = [iou_token, mask_token_0..nm-1]; layer 1 = column-concat of all heads,
    # layers 2/3 block-diagonal, so the diagonal blocks of h3 carry head_r(token_r).
    xh = tok[0:nm + 1, :]                                         # (nm+1, C)
    h = jnp.maximum(_dot_bf16(xh, hw1[...]) + hb1[...], 0.0)
    h = jnp.maximum(_dot_bf16(h, hw2[...]) + hb2[...], 0.0)
    h3 = _dot_bf16(h, hw3[...]) + hb3[...]                        # (nm+1, nm + nm*C8)
    iou_ref[0] = h3[0:1, 0:nm]                                    # IoU head output

    # ---- upscale stage 1: ConvTranspose2d(k=2,s=2) as matmul + LayerNorm2d + GELU ----
    # lane layout of y1: (di, dj, c4); LN stats via one block-ones f32 matmul per stat.
    y1 = _dot_bf16(src, uw1[...]) + ub1[...]                      # (HW, 4*C4)
    mu = _dot_f32(y1, ln_ones[...])                               # per-(di,dj) group mean
    d = y1 - mu
    var = _dot_f32(d * d, ln_ones[...])                           # per-group variance
    a_up = _gelu(d * jax.lax.rsqrt(var + 1e-6) * ln_g4[...] + ln_b4[...])

    # ---- upscale stage 2: block-diagonal ConvTranspose over all 4 didj chunks + GELU
    z = _gelu(_dot_bf16(a_up, uw2[...]) + ub2[...])               # (HW, 16*C8) lanes (di,dj,ei,ej,c8)

    # ---- mask product: kron(I_16, hyper) built from h3 with two tiny constant f32
    #      matmuls + a block mask, then ONE MXU contraction and a lane-dense store.
    bdt = _dot_f32(_dot_f32(a_sel[...], h3 * dmask[...]), b_fold[...]) * mt[...]
    masks_ref[0] = _dot_bf16(z, bdt, dims=(((1,), (1,)), ((), ())))   # (HW, 16*nm)


# ----------------------------------------------------------------------------
# MaskDecoder forward
# ----------------------------------------------------------------------------
def predict_masks(params, image_embeddings, image_pe, sparse_prompt_embeddings,
                  dense_prompt_embeddings):
    mask_tokens = params["mask_tokens"]
    nm, C = mask_tokens.shape
    C4, C8 = C // 4, C // 8

    B = sparse_prompt_embeddings.shape[0]
    _, _, H, W = image_embeddings.shape
    HW = H * W

    # TODO(synk): torch's repeat_interleave path also supports image batch == B; the
    # index_map broadcast below assumes the usual SAM case of image batch == 1.
    assert image_embeddings.shape[0] == 1 and image_pe.shape[0] == 1

    # tokens = [iou_token, mask_tokens, sparse prompts]  -> (B, T, C)
    output_tokens = jnp.concatenate([params["iou_token"], mask_tokens], axis=0)
    output_tokens = jnp.broadcast_to(output_tokens[None], (B, 1 + nm, C))
    tokens = jnp.concatenate([output_tokens, sparse_prompt_embeddings],
                             axis=1).astype(jnp.float32)

    def nchw_to_seq(x):
        b, c, h, w = x.shape
        return jnp.transpose(x.reshape(b, c, h * w), (0, 2, 1)).astype(jnp.float32)

    img_seq = nchw_to_seq(image_embeddings)            # (1, HW, C), broadcast over B
    pe_seq = nchw_to_seq(image_pe)                     # (1, HW, C)
    dense_seq = nchw_to_seq(dense_prompt_embeddings)   # (B, HW, C)

    tr = params["transformer"]
    scale = 1.0 / math.sqrt(C)

    def bf(x):
        return x.astype(jnp.bfloat16)

    def row(b_):
        return b_.reshape(1, -1).astype(jnp.float32)

    # attention scale folded into the q projections (weights AND biases)
    wq1 = bf(tr["wq1"] * scale); bq1 = row(tr["bq1"] * scale)
    wq2 = bf(tr["wq2"] * scale); bq2 = row(tr["bq2"] * scale)

    # fused (IoU + nm hypernetwork) heads, block-diagonal layout; head order matches
    # token-row order [iou, mask_0 .. mask_{nm-1}].
    hmlp = params["hyper_mlps"]
    (iw1, ib1), (iw2, ib2), (iw3, ib3) = params["iou_mlp"]
    hW1 = jnp.concatenate([iw1] + [hmlp[i][0][0] for i in range(nm)], axis=1)
    hB1 = jnp.concatenate([ib1] + [hmlp[i][0][1] for i in range(nm)]).reshape(1, -1)
    hW2 = jax.scipy.linalg.block_diag(iw2, *[hmlp[i][1][0] for i in range(nm)])
    hB2 = jnp.concatenate([ib2] + [hmlp[i][1][1] for i in range(nm)]).reshape(1, -1)
    hW3 = jax.scipy.linalg.block_diag(iw3, *[hmlp[i][2][0] for i in range(nm)])
    hB3 = jnp.concatenate([ib3] + [hmlp[i][2][1] for i in range(nm)]).reshape(1, -1)

    # ConvTranspose2d weights as matmuls.  Stage-1 lane layout (di, dj, c4); stage-2
    # block-diagonal over the 4 didj chunks -> lane layout (di, dj, ei, ej, c8).
    uw1 = jnp.transpose(params["up_w1"], (0, 2, 3, 1)).reshape(C, 4 * C4)
    ub1 = jnp.tile(params["up_b1"], 4).reshape(1, 4 * C4)
    w2_mat = jnp.transpose(params["up_w2"], (0, 2, 3, 1)).reshape(C4, 4 * C8)
    uw2bd = jax.scipy.linalg.block_diag(*([w2_mat] * 4))           # (4*C4, 16*C8)
    ub2 = jnp.tile(params["up_b2"], 16).reshape(1, 16 * C8)
    ln_g4 = jnp.tile(params["ln_g"], 4).reshape(1, 4 * C4)
    ln_b4 = jnp.tile(params["ln_b"], 4).reshape(1, 4 * C4)

    # constant matrices (f32): block-ones for LN stats; selectors/folders/mask that turn
    # the head output h3 into kron(I_16, hyper) inside the kernel.
    gi = jnp.arange(4 * C4)
    ln_ones = ((gi[:, None] // C4) == (gi[None, :] // C4)).astype(jnp.float32) / C4

    r5 = jnp.arange(nm + 1)                      # head / token-row index
    kk = jnp.arange(nm + nm * C8)                # h3 column index
    rr = jnp.arange(16 * nm)                     # output-lane index g*nm + t
    qq = jnp.arange(16 * C8)                     # z-lane index g'*C8 + c
    dmask = ((r5[:, None] >= 1) & (kk[None, :] >= nm)
             & ((kk[None, :] - nm) // C8 == (r5[:, None] - 1))).astype(jnp.float32)
    a_sel = ((rr[:, None] % nm) + 1 == r5[None, :]).astype(jnp.float32)      # (16nm, nm+1)
    b_fold = ((kk[:, None] >= nm)
              & ((kk[:, None] - nm) % C8 == qq[None, :] % C8)).astype(jnp.float32)
    mt = ((rr[:, None] // nm) == (qq[None, :] // C8)).astype(jnp.float32)    # (16nm, 16C8)

    in_arrays = [
        tokens, img_seq, pe_seq, dense_seq,
        wq1, bq1, bf(tr["wk1"]), row(tr["bk1"]), bf(tr["wv1"]), row(tr["bv1"]),
        bf(tr["wo1"]), row(tr["bo1"]),
        bf(tr["w_mlp1"]), row(tr["b_mlp1"]), bf(tr["w_mlp2"]), row(tr["b_mlp2"]),
        wq2, bq2, bf(tr["wk2"]), row(tr["bk2"]), bf(tr["wv2"]), row(tr["bv2"]),
        bf(tr["wo2"]), row(tr["bo2"]),
        bf(hW1), hB1, bf(hW2), hB2, bf(hW3), hB3,
        bf(uw1), ub1, ln_ones, ln_g4, ln_b4, bf(uw2bd), ub2,
        dmask, a_sel, b_fold, mt,
    ]
    batched_idx = {0, 3}   # tokens, dense prompts: batched over the grid
    in_specs = []
    for idx, arr in enumerate(in_arrays):
        if idx in batched_idx:
            in_specs.append(pl.BlockSpec((1,) + arr.shape[1:], lambda b: (b, 0, 0)))
        else:               # weights / constants / image / PE: same block every step
            in_specs.append(pl.BlockSpec(arr.shape, _bcast_map(arr.ndim)))

    # TODO(synk): at real SAM dims (C=256, HW=4096) set vmem_limit_bytes explicitly and
    # tile HW for the image-side tensors; at demo scale VMEM use is <1 MiB.
    masks_un, iou_raw = pl.pallas_call(
        _mask_decoder_kernel,
        grid=(B,),
        in_specs=in_specs,
        out_specs=(
            pl.BlockSpec((1, HW, 16 * nm), lambda b: (b, 0, 0)),
            pl.BlockSpec((1, 1, nm), lambda b: (b, 0, 0)),
        ),
        out_shape=(
            jax.ShapeDtypeStruct((B, HW, 16 * nm), jnp.float32),
            jax.ShapeDtypeStruct((B, 1, nm), jnp.float32),
        ),
        compiler_params=pltpu.CompilerParams(dimension_semantics=("parallel",)),
    )(*in_arrays)

    # un-shuffle: row = i*W + j, lane = ((di*2+dj)*4 + (ei*2+ej))*nm + t
    # final pixel (4i+2di+ei, 4j+2dj+ej)  -> one small XLA transpose.
    mu_ = masks_un.reshape(B, H, W, 2, 2, 2, 2, nm)
    masks = jnp.transpose(mu_, (0, 7, 1, 3, 5, 2, 4, 6)).reshape(B, nm, 4 * H, 4 * W)
    iou_pred = iou_raw.reshape(B, nm)
    return masks, iou_pred


@functools.partial(jax.jit, static_argnames=("multimask_output",))
def mask_decoder_forward(params, image_embeddings, image_pe, sparse_prompt_embeddings,
                         dense_prompt_embeddings, multimask_output):
    masks, iou_pred = predict_masks(params, image_embeddings, image_pe,
                                    sparse_prompt_embeddings, dense_prompt_embeddings)
    sl = slice(1, None) if multimask_output else slice(0, 1)
    return masks[:, sl, :, :], iou_pred[:, sl]


# ----------------------------------------------------------------------------
# Deterministic parameter initialization
# ----------------------------------------------------------------------------
def init_mask_decoder_params(key, transformer_dim=32, num_multimask_outputs=3,
                             iou_head_hidden_dim=32, mlp_dim=64):
    C = transformer_dim
    nm = num_multimask_outputs + 1
    keys = iter(jax.random.split(key, 64))

    def nrm(shape, scale=0.05):
        return (scale * jax.random.normal(next(keys), shape)).astype(jnp.float32)

    def zeros(shape):
        return jnp.zeros(shape, jnp.float32)

    # TODO(synk): the injected `transformer` is a minimal two-way cross-attention block
    # (no LayerNorms / multi-head split / depth-2 layers), not SAM's TwoWayTransformer.
    tr = {}
    for name in ["q1", "k1", "v1", "o1", "q2", "k2", "v2", "o2"]:
        tr["w" + name] = nrm((C, C))
        tr["b" + name] = zeros((C,))
    tr["w_mlp1"] = nrm((C, mlp_dim)); tr["b_mlp1"] = zeros((mlp_dim,))
    tr["w_mlp2"] = nrm((mlp_dim, C)); tr["b_mlp2"] = zeros((C,))

    return {
        "iou_token": nrm((1, C)),
        "mask_tokens": nrm((nm, C)),
        "transformer": tr,
        # ConvTranspose2d weights in torch layout (Cin, Cout, kH, kW)
        "up_w1": nrm((C, C // 4, 2, 2)),
        "up_b1": zeros((C // 4,)),
        "ln_g": jnp.ones((C // 4,), jnp.float32),
        "ln_b": zeros((C // 4,)),
        "up_w2": nrm((C // 4, C // 8, 2, 2)),
        "up_b2": zeros((C // 8,)),
        "hyper_mlps": [
            [(nrm((C, C)), zeros((C,))),
             (nrm((C, C)), zeros((C,))),
             (nrm((C, C // 8)), zeros((C // 8,)))]
            for _ in range(nm)
        ],
        "iou_mlp": [
            (nrm((C, iou_head_hidden_dim)), zeros((iou_head_hidden_dim,))),
            (nrm((iou_head_hidden_dim, iou_head_hidden_dim)), zeros((iou_head_hidden_dim,))),
            (nrm((iou_head_hidden_dim, nm)), zeros((nm,))),
        ],
    }


# ----------------------------------------------------------------------------
# Main
# ----------------------------------------------------------------------------
if __name__ == "__main__":
    root = jax.random.PRNGKey(0)
    kp, k1, k2, k3, k4 = jax.random.split(root, 5)

    C, H, W = 32, 8, 8     # transformer_dim=32 -> C//4=8, C//8=4
    B = 2                  # number of prompt sets
    N_SPARSE = 2           # point/box prompt tokens

    params = init_mask_decoder_params(kp, transformer_dim=C)

    image_embeddings = jax.random.normal(k1, (1, C, H, W), jnp.float32)   # NCHW
    image_pe = jax.random.normal(k2, (1, C, H, W), jnp.float32)           # NCHW
    sparse_prompt_embeddings = jax.random.normal(k3, (B, N_SPARSE, C), jnp.float32)
    dense_prompt_embeddings = jax.random.normal(k4, (B, C, H, W), jnp.float32)

    masks, iou_pred = mask_decoder_forward(
        params, image_embeddings, image_pe,
        sparse_prompt_embeddings, dense_prompt_embeddings,
        multimask_output=True,
    )
    jax.block_until_ready((masks, iou_pred))

    assert masks.shape == (B, 3, 4 * H, 4 * W), masks.shape
    assert iou_pred.shape == (B, 3), iou_pred.shape
    assert jnp.all(jnp.isfinite(masks)) and jnp.all(jnp.isfinite(iou_pred))
    print("KERNEL_OK")
</pallas_src>

<mosaic_0001>
module attributes {stable_mosaic.version = 11 : i64} {
  func.func @_mask_decoder_kernel(%arg0: i32, %arg1: memref<1x7x32xf32, #tpu.memory_space<vmem>>, %arg2: memref<1x64x32xf32, #tpu.memory_space<vmem>>, %arg3: memref<1x64x32xf32, #tpu.memory_space<vmem>>, %arg4: memref<1x64x32xf32, #tpu.memory_space<vmem>>, %arg5: memref<32x32xbf16, #tpu.memory_space<vmem>>, %arg6: memref<1x32xf32, #tpu.memory_space<vmem>>, %arg7: memref<32x32xbf16, #tpu.memory_space<vmem>>, %arg8: memref<1x32xf32, #tpu.memory_space<vmem>>, %arg9: memref<32x32xbf16, #tpu.memory_space<vmem>>, %arg10: memref<1x32xf32, #tpu.memory_space<vmem>>, %arg11: memref<32x32xbf16, #tpu.memory_space<vmem>>, %arg12: memref<1x32xf32, #tpu.memory_space<vmem>>, %arg13: memref<32x64xbf16, #tpu.memory_space<vmem>>, %arg14: memref<1x64xf32, #tpu.memory_space<vmem>>, %arg15: memref<64x32xbf16, #tpu.memory_space<vmem>>, %arg16: memref<1x32xf32, #tpu.memory_space<vmem>>, %arg17: memref<32x32xbf16, #tpu.memory_space<vmem>>, %arg18: memref<1x32xf32, #tpu.memory_space<vmem>>, %arg19: memref<32x32xbf16, #tpu.memory_space<vmem>>, %arg20: memref<1x32xf32, #tpu.memory_space<vmem>>, %arg21: memref<32x32xbf16, #tpu.memory_space<vmem>>, %arg22: memref<1x32xf32, #tpu.memory_space<vmem>>, %arg23: memref<32x32xbf16, #tpu.memory_space<vmem>>, %arg24: memref<1x32xf32, #tpu.memory_space<vmem>>, %arg25: memref<32x160xbf16, #tpu.memory_space<vmem>>, %arg26: memref<1x160xf32, #tpu.memory_space<vmem>>, %arg27: memref<160x160xbf16, #tpu.memory_space<vmem>>, %arg28: memref<1x160xf32, #tpu.memory_space<vmem>>, %arg29: memref<160x20xbf16, #tpu.memory_space<vmem>>, %arg30: memref<1x20xf32, #tpu.memory_space<vmem>>, %arg31: memref<32x32xbf16, #tpu.memory_space<vmem>>, %arg32: memref<1x32xf32, #tpu.memory_space<vmem>>, %arg33: memref<32x32xf32, #tpu.memory_space<vmem>>, %arg34: memref<1x32xf32, #tpu.memory_space<vmem>>, %arg35: memref<1x32xf32, #tpu.memory_space<vmem>>, %arg36: memref<32x64xbf16, #tpu.memory_space<vmem>>, %arg37: memref<1x64xf32, #tpu.memory_space<vmem>>, %arg38: memref<5x20xf32, #tpu.memory_space<vmem>>, %arg39: memref<64x5xf32, #tpu.memory_space<vmem>>, %arg40: memref<20x64xf32, #tpu.memory_space<vmem>>, %arg41: memref<64x64xf32, #tpu.memory_space<vmem>>, %arg42: memref<1x64x64xf32, #tpu.memory_space<vmem>>, %arg43: memref<1x1x4xf32, #tpu.memory_space<vmem>>) attributes {dimension_semantics = [#tpu.dimension_semantics<parallel>], iteration_bounds = array<i64: 2>, scalar_prefetch = 0 : i64, scratch_operands = 0 : i64, tpu.core_type = #tpu.core_type<tc>, window_params = [{transform_indices = @transform_0, window_bounds = array<i64: 1, 7, 32>}, {pipeline_mode = #tpu.pipeline_mode<synchronous>, transform_indices = @transform_1, window_bounds = array<i64: 1, 64, 32>}, {pipeline_mode = #tpu.pipeline_mode<synchronous>, transform_indices = @transform_2, window_bounds = array<i64: 1, 64, 32>}, {transform_indices = @transform_3, window_bounds = array<i64: 1, 64, 32>}, {pipeline_mode = #tpu.pipeline_mode<synchronous>, transform_indices = @transform_4, window_bounds = array<i64: 32, 32>}, {pipeline_mode = #tpu.pipeline_mode<synchronous>, transform_indices = @transform_5, window_bounds = array<i64: 1, 32>}, {pipeline_mode = #tpu.pipeline_mode<synchronous>, transform_indices = @transform_6, window_bounds = array<i64: 32, 32>}, {pipeline_mode = #tpu.pipeline_mode<synchronous>, transform_indices = @transform_7, window_bounds = array<i64: 1, 32>}, {pipeline_mode = #tpu.pipeline_mode<synchronous>, transform_indices = @transform_8, window_bounds = array<i64: 32, 32>}, {pipeline_mode = #tpu.pipeline_mode<synchronous>, transform_indices = @transform_9, window_bounds = array<i64: 1, 32>}, {pipeline_mode = #tpu.pipeline_mode<synchronous>, transform_indices = @transform_10, window_bounds = array<i64: 32, 32>}, {pipeline_mode = #tpu.pipeline_mode<synchronous>, transform_indices = @transform_11, window_bounds = array<i64: 1, 32>}, {pipeline_mode = #tpu.pipeline_mode<synchronous>, transform_indices = @transform_12, window_bounds = array<i64: 32, 64>}, {pipeline_mode = #tpu.pipeline_mode<synchronous>, transform_indices = @transform_13, window_bounds = array<i64: 1, 64>}, {pipeline_mode = #tpu.pipeline_mode<synchronous>, transform_indices = @transform_14, window_bounds = array<i64: 64, 32>}, {pipeline_mode = #tpu.pipeline_mode<synchronous>, transform_indices = @transform_15, window_bounds = array<i64: 1, 32>}, {pipeline_mode = #tpu.pipeline_mode<synchronous>, transform_indices = @transform_16, window_bounds = array<i64: 32, 32>}, {pipeline_mode = #tpu.pipeline_mode<synchronous>, transform_indices = @transform_17, window_bounds = array<i64: 1, 32>}, {pipeline_mode = #tpu.pipeline_mode<synchronous>, transform_indices = @transform_18, window_bounds = array<i64: 32, 32>}, {pipeline_mode = #tpu.pipeline_mode<synchronous>, transform_indices = @transform_19, window_bounds = array<i64: 1, 32>}, {pipeline_mode = #tpu.pipeline_mode<synchronous>, transform_indices = @transform_20, window_bounds = array<i64: 32, 32>}, {pipeline_mode = #tpu.pipeline_mode<synchronous>, transform_indices = @transform_21, window_bounds = array<i64: 1, 32>}, {pipeline_mode = #tpu.pipeline_mode<synchronous>, transform_indices = @transform_22, window_bounds = array<i64: 32, 32>}, {pipeline_mode = #tpu.pipeline_mode<synchronous>, transform_indices = @transform_23, window_bounds = array<i64: 1, 32>}, {pipeline_mode = #tpu.pipeline_mode<synchronous>, transform_indices = @transform_24, window_bounds = array<i64: 32, 160>}, {pipeline_mode = #tpu.pipeline_mode<synchronous>, transform_indices = @transform_25, window_bounds = array<i64: 1, 160>}, {pipeline_mode = #tpu.pipeline_mode<synchronous>, transform_indices = @transform_26, window_bounds = array<i64: 160, 160>}, {pipeline_mode = #tpu.pipeline_mode<synchronous>, transform_indices = @transform_27, window_bounds = array<i64: 1, 160>}, {pipeline_mode = #tpu.pipeline_mode<synchronous>, transform_indices = @transform_28, window_bounds = array<i64: 160, 20>}, {pipeline_mode = #tpu.pipeline_mode<synchronous>, transform_indices = @transform_29, window_bounds = array<i64: 1, 20>}, {pipeline_mode = #tpu.pipeline_mode<synchronous>, transform_indices = @transform_30, window_bounds = array<i64: 32, 32>}, {pipeline_mode = #tpu.pipeline_mode<synchronous>, transform_indices = @transform_31, window_bounds = array<i64: 1, 32>}, {pipeline_mode = #tpu.pipeline_mode<synchronous>, transform_indices = @transform_32, window_bounds = array<i64: 32, 32>}, {pipeline_mode = #tpu.pipeline_mode<synchronous>, transform_indices = @transform_33, window_bounds = array<i64: 1, 32>}, {pipeline_mode = #tpu.pipeline_mode<synchronous>, transform_indices = @transform_34, window_bounds = array<i64: 1, 32>}, {pipeline_mode = #tpu.pipeline_mode<synchronous>, transform_indices = @transform_35, window_bounds = array<i64: 32, 64>}, {pipeline_mode = #tpu.pipeline_mode<synchronous>, transform_indices = @transform_36, window_bounds = array<i64: 1, 64>}, {pipeline_mode = #tpu.pipeline_mode<synchronous>, transform_indices = @transform_37, window_bounds = array<i64: 5, 20>}, {pipeline_mode = #tpu.pipeline_mode<synchronous>, transform_indices = @transform_38, window_bounds = array<i64: 64, 5>}, {pipeline_mode = #tpu.pipeline_mode<synchronous>, transform_indices = @transform_39, window_bounds = array<i64: 20, 64>}, {pipeline_mode = #tpu.pipeline_mode<synchronous>, transform_indices = @transform_40, window_bounds = array<i64: 64, 64>}, {transform_indices = @transform_41, window_bounds = array<i64: 1, 64, 64>}, {transform_indices = @transform_42, window_bounds = array<i64: 1, 1, 4>}]} {
    %c0 = arith.constant 0 : index
    %c0_0 = arith.constant 0 : index
    %c0_1 = arith.constant 0 : index
    %0 = vector.load %arg1[%c0, %c0_0, %c0_1] : memref<1x7x32xf32, #tpu.memory_space<vmem>>, vector<1x7x32xf32>
    %1 = vector.shape_cast %0 : vector<1x7x32xf32> to vector<7x32xf32>
    %c0_2 = arith.constant 0 : index
    %c0_3 = arith.constant 0 : index
    %c0_4 = arith.constant 0 : index
    %2 = vector.load %arg2[%c0_2, %c0_3, %c0_4] : memref<1x64x32xf32, #tpu.memory_space<vmem>>, vector<1x64x32xf32>
    %3 = vector.shape_cast %2 : vector<1x64x32xf32> to vector<64x32xf32>
    %c0_5 = arith.constant 0 : index
    %c0_6 = arith.constant 0 : index
    %c0_7 = arith.constant 0 : index
    %4 = vector.load %arg4[%c0_5, %c0_6, %c0_7] : memref<1x64x32xf32, #tpu.memory_space<vmem>>, vector<1x64x32xf32>
    %5 = vector.shape_cast %4 : vector<1x64x32xf32> to vector<64x32xf32>
    %6 = arith.addf %3, %5 : vector<64x32xf32>
    %c0_8 = arith.constant 0 : index
    %c0_9 = arith.constant 0 : index
    %c0_10 = arith.constant 0 : index
    %7 = vector.load %arg3[%c0_8, %c0_9, %c0_10] : memref<1x64x32xf32, #tpu.memory_space<vmem>>, vector<1x64x32xf32>
    %8 = vector.shape_cast %7 : vector<1x64x32xf32> to vector<64x32xf32>
    %9 = arith.addf %6, %8 : vector<64x32xf32>
    %c0_11 = arith.constant 0 : index
    %c0_12 = arith.constant 0 : index
    %10 = vector.load %arg5[%c0_11, %c0_12] : memref<32x32xbf16, #tpu.memory_space<vmem>>, vector<32x32xbf16>
    %11 = arith.truncf %1 : vector<7x32xf32> to vector<7x32xbf16>
    %cst = arith.constant dense<0.000000e+00> : vector<7x32xf32>
    %12 = tpu.matmul %11, %10, %cst {dimension_numbers = #tpu.dot_dimension_numbers<[1], [0], [0], [1], [0, 0, 1, 1], [], []>} : vector<7x32xbf16>, vector<32x32xbf16>, vector<7x32xf32> -> vector<7x32xf32>
    %c0_13 = arith.constant 0 : index
    %c0_14 = arith.constant 0 : index
    %13 = vector.load %arg6[%c0_13, %c0_14] : memref<1x32xf32, #tpu.memory_space<vmem>>, vector<1x32xf32>
    %14 = vector.broadcast %13 : vector<1x32xf32> to vector<7x32xf32>
    %15 = arith.addf %12, %14 : vector<7x32xf32>
    %c0_15 = arith.constant 0 : index
    %c0_16 = arith.constant 0 : index
    %16 = vector.load %arg7[%c0_15, %c0_16] : memref<32x32xbf16, #tpu.memory_space<vmem>>, vector<32x32xbf16>
    %17 = arith.truncf %9 : vector<64x32xf32> to vector<64x32xbf16>
    %cst_17 = arith.constant dense<0.000000e+00> : vector<64x32xf32>
    %18 = tpu.matmul %17, %16, %cst_17 {dimension_numbers = #tpu.dot_dimension_numbers<[1], [0], [0], [1], [0, 0, 1, 1], [], []>} : vector<64x32xbf16>, vector<32x32xbf16>, vector<64x32xf32> -> vector<64x32xf32>
    %c0_18 = arith.constant 0 : index
    %c0_19 = arith.constant 0 : index
    %19 = vector.load %arg8[%c0_18, %c0_19] : memref<1x32xf32, #tpu.memory_space<vmem>>, vector<1x32xf32>
    %20 = vector.broadcast %19 : vector<1x32xf32> to vector<64x32xf32>
    %21 = arith.addf %18, %20 : vector<64x32xf32>
    %c0_20 = arith.constant 0 : index
    %c0_21 = arith.constant 0 : index
    %22 = vector.load %arg9[%c0_20, %c0_21] : memref<32x32xbf16, #tpu.memory_space<vmem>>, vector<32x32xbf16>
    %23 = arith.truncf %6 : vector<64x32xf32> to vector<64x32xbf16>
    %cst_22 = arith.constant dense<0.000000e+00> : vector<64x32xf32>
    %24 = tpu.matmul %23, %22, %cst_22 {dimension_numbers = #tpu.dot_dimension_numbers<[1], [0], [0], [1], [0, 0, 1, 1], [], []>} : vector<64x32xbf16>, vector<32x32xbf16>, vector<64x32xf32> -> vector<64x32xf32>
    %c0_23 = arith.constant 0 : index
    %c0_24 = arith.constant 0 : index
    %25 = vector.load %arg10[%c0_23, %c0_24] : memref<1x32xf32, #tpu.memory_space<vmem>>, vector<1x32xf32>
    %26 = vector.broadcast %25 : vector<1x32xf32> to vector<64x32xf32>
    %27 = arith.addf %24, %26 : vector<64x32xf32>
    %28 = arith.truncf %15 : vector<7x32xf32> to vector<7x32xbf16>
    %29 = arith.truncf %21 : vector<64x32xf32> to vector<64x32xbf16>
    %cst_25 = arith.constant dense<0.000000e+00> : vector<7x64xf32>
    %30 = tpu.matmul %28, %29, %cst_25 {dimension_numbers = #tpu.dot_dimension_numbers<[1], [1], [0], [0], [0, 0, 1, 0], [], []>} : vector<7x32xbf16>, vector<64x32xbf16>, vector<7x64xf32> -> vector<7x64xf32>
    %cst_26 = arith.constant dense<0xFF800000> : vector<7xf32>
    %31 = vector.multi_reduction <maximumf>, %30, %cst_26 [1] : vector<7x64xf32> to vector<7xf32>
    %32 = vector.shape_cast %31 : vector<7xf32> to vector<7x1xf32>
    %33 = vector.broadcast %32 : vector<7x1xf32> to vector<7x64xf32>
    %34 = arith.subf %30, %33 : vector<7x64xf32>
    %35 = math.exp %34 : vector<7x64xf32>
    %cst_27 = arith.constant dense<0.000000e+00> : vector<7xf32>
    %36 = vector.multi_reduction <add>, %35, %cst_27 [1] : vector<7x64xf32> to vector<7xf32>
    %37 = vector.shape_cast %36 : vector<7xf32> to vector<7x1xf32>
    %38 = tpu.reciprocal %37 {approx = true} : vector<7x1xf32> -> vector<7x1xf32>
    %39 = vector.broadcast %38 : vector<7x1xf32> to vector<7x64xf32>
    %40 = arith.mulf %35, %39 : vector<7x64xf32>
    %41 = arith.truncf %40 : vector<7x64xf32> to vector<7x64xbf16>
    %42 = arith.truncf %27 : vector<64x32xf32> to vector<64x32xbf16>
    %cst_28 = arith.constant dense<0.000000e+00> : vector<7x32xf32>
    %43 = tpu.matmul %41, %42, %cst_28 {dimension_numbers = #tpu.dot_dimension_numbers<[1], [0], [0], [1], [0, 0, 1, 1], [], []>} : vector<7x64xbf16>, vector<64x32xbf16>, vector<7x32xf32> -> vector<7x32xf32>
    %c0_29 = arith.constant 0 : index
    %c0_30 = arith.constant 0 : index
    %44 = vector.load %arg11[%c0_29, %c0_30] : memref<32x32xbf16, #tpu.memory_space<vmem>>, vector<32x32xbf16>
    %45 = arith.truncf %43 : vector<7x32xf32> to vector<7x32xbf16>
    %cst_31 = arith.constant dense<0.000000e+00> : vector<7x32xf32>
    %46 = tpu.matmul %45, %44, %cst_31 {dimension_numbers = #tpu.dot_dimension_numbers<[1], [0], [0], [1], [0, 0, 1, 1], [], []>} : vector<7x32xbf16>, vector<32x32xbf16>, vector<7x32xf32> -> vector<7x32xf32>
    %47 = arith.addf %1, %46 : vector<7x32xf32>
    %c0_32 = arith.constant 0 : index
    %c0_33 = arith.constant 0 : index
    %48 = vector.load %arg12[%c0_32, %c0_33] : memref<1x32xf32, #tpu.memory_space<vmem>>, vector<1x32xf32>
    %49 = vector.broadcast %48 : vector<1x32xf32> to vector<7x32xf32>
    %50 = arith.addf %47, %49 : vector<7x32xf32>
    %c0_34 = arith.constant 0 : index
    %c0_35 = arith.constant 0 : index
    %51 = vector.load %arg13[%c0_34, %c0_35] : memref<32x64xbf16, #tpu.memory_space<vmem>>, vector<32x64xbf16>
    %52 = arith.truncf %50 : vector<7x32xf32> to vector<7x32xbf16>
    %cst_36 = arith.constant dense<0.000000e+00> : vector<7x64xf32>
    %53 = tpu.matmul %52, %51, %cst_36 {dimension_numbers = #tpu.dot_dimension_numbers<[1], [0], [0], [1], [0, 0, 1, 1], [], []>} : vector<7x32xbf16>, vector<32x64xbf16>, vector<7x64xf32> -> vector<7x64xf32>
    %c0_37 = arith.constant 0 : index
    %c0_38 = arith.constant 0 : index
    %54 = vector.load %arg14[%c0_37, %c0_38] : memref<1x64xf32, #tpu.memory_space<vmem>>, vector<1x64xf32>
    %55 = vector.broadcast %54 : vector<1x64xf32> to vector<7x64xf32>
    %56 = arith.addf %53, %55 : vector<7x64xf32>
    %cst_39 = arith.constant 0.000000e+00 : f32
    %57 = vector.broadcast %cst_39 : f32 to vector<7x64xf32>
    %58 = arith.maximumf %56, %57 : vector<7x64xf32>
    %c0_40 = arith.constant 0 : index
    %c0_41 = arith.constant 0 : index
    %59 = vector.load %arg15[%c0_40, %c0_41] : memref<64x32xbf16, #tpu.memory_space<vmem>>, vector<64x32xbf16>
    %60 = arith.truncf %58 : vector<7x64xf32> to vector<7x64xbf16>
    %cst_42 = arith.constant dense<0.000000e+00> : vector<7x32xf32>
    %61 = tpu.matmul %60, %59, %cst_42 {dimension_numbers = #tpu.dot_dimension_numbers<[1], [0], [0], [1], [0, 0, 1, 1], [], []>} : vector<7x64xbf16>, vector<64x32xbf16>, vector<7x32xf32> -> vector<7x32xf32>
    %62 = arith.addf %50, %61 : vector<7x32xf32>
    %c0_43 = arith.constant 0 : index
    %c0_44 = arith.constant 0 : index
    %63 = vector.load %arg16[%c0_43, %c0_44] : memref<1x32xf32, #tpu.memory_space<vmem>>, vector<1x32xf32>
    %64 = vector.broadcast %63 : vector<1x32xf32> to vector<7x32xf32>
    %65 = arith.addf %62, %64 : vector<7x32xf32>
    %c0_45 = arith.constant 0 : index
    %c0_46 = arith.constant 0 : index
    %66 = vector.load %arg17[%c0_45, %c0_46] : memref<32x32xbf16, #tpu.memory_space<vmem>>, vector<32x32xbf16>
    %67 = arith.truncf %9 : vector<64x32xf32> to vector<64x32xbf16>
    %cst_47 = arith.constant dense<0.000000e+00> : vector<64x32xf32>
    %68 = tpu.matmul %67, %66, %cst_47 {dimension_numbers = #tpu.dot_dimension_numbers<[1], [0], [0], [1], [0, 0, 1, 1], [], []>} : vector<64x32xbf16>, vector<32x32xbf16>, vector<64x32xf32> -> vector<64x32xf32>
    %c0_48 = arith.constant 0 : index
    %c0_49 = arith.constant 0 : index
    %69 = vector.load %arg18[%c0_48, %c0_49] : memref<1x32xf32, #tpu.memory_space<vmem>>, vector<1x32xf32>
    %70 = vector.broadcast %69 : vector<1x32xf32> to vector<64x32xf32>
    %71 = arith.addf %68, %70 : vector<64x32xf32>
    %c0_50 = arith.constant 0 : index
    %c0_51 = arith.constant 0 : index
    %72 = vector.load %arg19[%c0_50, %c0_51] : memref<32x32xbf16, #tpu.memory_space<vmem>>, vector<32x32xbf16>
    %73 = arith.truncf %65 : vector<7x32xf32> to vector<7x32xbf16>
    %cst_52 = arith.constant dense<0.000000e+00> : vector<7x32xf32>
    %74 = tpu.matmul %73, %72, %cst_52 {dimension_numbers = #tpu.dot_dimension_numbers<[1], [0], [0], [1], [0, 0, 1, 1], [], []>} : vector<7x32xbf16>, vector<32x32xbf16>, vector<7x32xf32> -> vector<7x32xf32>
    %c0_53 = arith.constant 0 : index
    %c0_54 = arith.constant 0 : index
    %75 = vector.load %arg20[%c0_53, %c0_54] : memref<1x32xf32, #tpu.memory_space<vmem>>, vector<1x32xf32>
    %76 = vector.broadcast %75 : vector<1x32xf32> to vector<7x32xf32>
    %77 = arith.addf %74, %76 : vector<7x32xf32>
    %c0_55 = arith.constant 0 : index
    %c0_56 = arith.constant 0 : index
    %78 = vector.load %arg21[%c0_55, %c0_56] : memref<32x32xbf16, #tpu.memory_space<vmem>>, vector<32x32xbf16>
    %79 = arith.truncf %65 : vector<7x32xf32> to vector<7x32xbf16>
    %cst_57 = arith.constant dense<0.000000e+00> : vector<7x32xf32>
    %80 = tpu.matmul %79, %78, %cst_57 {dimension_numbers = #tpu.dot_dimension_numbers<[1], [0], [0], [1], [0, 0, 1, 1], [], []>} : vector<7x32xbf16>, vector<32x32xbf16>, vector<7x32xf32> -> vector<7x32xf32>
    %c0_58 = arith.constant 0 : index
    %c0_59 = arith.constant 0 : index
    %81 = vector.load %arg22[%c0_58, %c0_59] : memref<1x32xf32, #tpu.memory_space<vmem>>, vector<1x32xf32>
    %82 = vector.broadcast %81 : vector<1x32xf32> to vector<7x32xf32>
    %83 = arith.addf %80, %82 : vector<7x32xf32>
    %84 = arith.truncf %71 : vector<64x32xf32> to vector<64x32xbf16>
    %85 = arith.truncf %77 : vector<7x32xf32> to vector<7x32xbf16>
    %cst_60 = arith.constant dense<0.000000e+00> : vector<64x7xf32>
    %86 = tpu.matmul %84, %85, %cst_60 {dimension_numbers = #tpu.dot_dimension_numbers<[1], [1], [0], [0], [0, 0, 1, 0], [], []>} : vector<64x32xbf16>, vector<7x32xbf16>, vector<64x7xf32> -> vector<64x7xf32>
    %cst_61 = arith.constant dense<0xFF800000> : vector<64xf32>
    %87 = vector.multi_reduction <maximumf>, %86, %cst_61 [1] : vector<64x7xf32> to vector<64xf32>
    %88 = vector.shape_cast %87 : vector<64xf32> to vector<64x1xf32>
    %89 = vector.broadcast %88 : vector<64x1xf32> to vector<64x7xf32>
    %90 = arith.subf %86, %89 : vector<64x7xf32>
    %91 = math.exp %90 : vector<64x7xf32>
    %cst_62 = arith.constant dense<0.000000e+00> : vector<64xf32>
    %92 = vector.multi_reduction <add>, %91, %cst_62 [1] : vector<64x7xf32> to vector<64xf32>
    %93 = vector.shape_cast %92 : vector<64xf32> to vector<64x1xf32>
    %94 = tpu.reciprocal %93 {approx = true} : vector<64x1xf32> -> vector<64x1xf32>
    %95 = vector.broadcast %94 : vector<64x1xf32> to vector<64x7xf32>
    %96 = arith.mulf %91, %95 : vector<64x7xf32>
    %97 = arith.truncf %96 : vector<64x7xf32> to vector<64x7xbf16>
    %98 = arith.truncf %83 : vector<7x32xf32> to vector<7x32xbf16>
    %cst_63 = arith.constant dense<0.000000e+00> : vector<64x32xf32>
    %99 = tpu.matmul %97, %98, %cst_63 {dimension_numbers = #tpu.dot_dimension_numbers<[1], [0], [0], [1], [0, 0, 1, 1], [], []>} : vector<64x7xbf16>, vector<7x32xbf16>, vector<64x32xf32> -> vector<64x32xf32>
    %c0_64 = arith.constant 0 : index
    %c0_65 = arith.constant 0 : index
    %100 = vector.load %arg23[%c0_64, %c0_65] : memref<32x32xbf16, #tpu.memory_space<vmem>>, vector<32x32xbf16>
    %101 = arith.truncf %99 : vector<64x32xf32> to vector<64x32xbf16>
    %cst_66 = arith.constant dense<0.000000e+00> : vector<64x32xf32>
    %102 = tpu.matmul %101, %100, %cst_66 {dimension_numbers = #tpu.dot_dimension_numbers<[1], [0], [0], [1], [0, 0, 1, 1], [], []>} : vector<64x32xbf16>, vector<32x32xbf16>, vector<64x32xf32> -> vector<64x32xf32>
    %103 = arith.addf %6, %102 : vector<64x32xf32>
    %c0_67 = arith.constant 0 : index
    %c0_68 = arith.constant 0 : index
    %104 = vector.load %arg24[%c0_67, %c0_68] : memref<1x32xf32, #tpu.memory_space<vmem>>, vector<1x32xf32>
    %105 = vector.broadcast %104 : vector<1x32xf32> to vector<64x32xf32>
    %106 = arith.addf %103, %105 : vector<64x32xf32>
    %107 = vector.extract_strided_slice %65 {offsets = [0, 0], sizes = [5, 32], strides = [1, 1]} : vector<7x32xf32> to vector<5x32xf32>
    %c0_69 = arith.constant 0 : index
    %c0_70 = arith.constant 0 : index
    %108 = vector.load %arg25[%c0_69, %c0_70] : memref<32x160xbf16, #tpu.memory_space<vmem>>, vector<32x160xbf16>
    %109 = arith.truncf %107 : vector<5x32xf32> to vector<5x32xbf16>
    %cst_71 = arith.constant dense<0.000000e+00> : vector<5x160xf32>
    %110 = tpu.matmul %109, %108, %cst_71 {dimension_numbers = #tpu.dot_dimension_numbers<[1], [0], [0], [1], [0, 0, 1, 1], [], []>} : vector<5x32xbf16>, vector<32x160xbf16>, vector<5x160xf32> -> vector<5x160xf32>
    %c0_72 = arith.constant 0 : index
    %c0_73 = arith.constant 0 : index
    %111 = vector.load %arg26[%c0_72, %c0_73] : memref<1x160xf32, #tpu.memory_space<vmem>>, vector<1x160xf32>
    %112 = vector.broadcast %111 : vector<1x160xf32> to vector<5x160xf32>
    %113 = arith.addf %110, %112 : vector<5x160xf32>
    %cst_74 = arith.constant 0.000000e+00 : f32
    %114 = vector.broadcast %cst_74 : f32 to vector<5x160xf32>
    %115 = arith.maximumf %113, %114 : vector<5x160xf32>
    %c0_75 = arith.constant 0 : index
    %c0_76 = arith.constant 0 : index
    %116 = vector.load %arg27[%c0_75, %c0_76] : memref<160x160xbf16, #tpu.memory_space<vmem>>, vector<160x160xbf16>
    %117 = arith.truncf %115 : vector<5x160xf32> to vector<5x160xbf16>
    %cst_77 = arith.constant dense<0.000000e+00> : vector<5x160xf32>
    %118 = tpu.matmul %117, %116, %cst_77 {dimension_numbers = #tpu.dot_dimension_numbers<[1], [0], [0], [1], [0, 0, 1, 1], [], []>} : vector<5x160xbf16>, vector<160x160xbf16>, vector<5x160xf32> -> vector<5x160xf32>
    %c0_78 = arith.constant 0 : index
    %c0_79 = arith.constant 0 : index
    %119 = vector.load %arg28[%c0_78, %c0_79] : memref<1x160xf32, #tpu.memory_space<vmem>>, vector<1x160xf32>
    %120 = vector.broadcast %119 : vector<1x160xf32> to vector<5x160xf32>
    %121 = arith.addf %118, %120 : vector<5x160xf32>
    %cst_80 = arith.constant 0.000000e+00 : f32
    %122 = vector.broadcast %cst_80 : f32 to vector<5x160xf32>
    %123 = arith.maximumf %121, %122 : vector<5x160xf32>
    %c0_81 = arith.constant 0 : index
    %c0_82 = arith.constant 0 : index
    %124 = vector.load %arg29[%c0_81, %c0_82] : memref<160x20xbf16, #tpu.memory_space<vmem>>, vector<160x20xbf16>
    %125 = arith.truncf %123 : vector<5x160xf32> to vector<5x160xbf16>
    %cst_83 = arith.constant dense<0.000000e+00> : vector<5x20xf32>
    %126 = tpu.matmul %125, %124, %cst_83 {dimension_numbers = #tpu.dot_dimension_numbers<[1], [0], [0], [1], [0, 0, 1, 1], [], []>} : vector<5x160xbf16>, vector<160x20xbf16>, vector<5x20xf32> -> vector<5x20xf32>
    %c0_84 = arith.constant 0 : index
    %c0_85 = arith.constant 0 : index
    %127 = vector.load %arg30[%c0_84, %c0_85] : memref<1x20xf32, #tpu.memory_space<vmem>>, vector<1x20xf32>
    %128 = vector.broadcast %127 : vector<1x20xf32> to vector<5x20xf32>
    %129 = arith.addf %126, %128 : vector<5x20xf32>
    %130 = vector.extract_strided_slice %129 {offsets = [0, 0], sizes = [1, 4], strides = [1, 1]} : vector<5x20xf32> to vector<1x4xf32>
    %c0_86 = arith.constant 0 : index
    %c0_87 = arith.constant 0 : index
    %c0_88 = arith.constant 0 : index
    %131 = vector.load %arg43[%c0_86, %c0_87, %c0_88] : memref<1x1x4xf32, #tpu.memory_space<vmem>>, vector<1x1x4xf32>
    %132 = vector.shape_cast %131 : vector<1x1x4xf32> to vector<1x4xf32>
    %133 = vector.shape_cast %130 : vector<1x4xf32> to vector<1x1x4xf32>
    tpu.vector_store %arg43[%c0_86, %c0_87, %c0_88], %133 {strides = array<i32>} : memref<1x1x4xf32, #tpu.memory_space<vmem>>, vector<1x1x4xf32>,
    %c0_89 = arith.constant 0 : index
    %c0_90 = arith.constant 0 : index
    %134 = vector.load %arg31[%c0_89, %c0_90] : memref<32x32xbf16, #tpu.memory_space<vmem>>, vector<32x32xbf16>
    %135 = arith.truncf %106 : vector<64x32xf32> to vector<64x32xbf16>
    %cst_91 = arith.constant dense<0.000000e+00> : vector<64x32xf32>
    %136 = tpu.matmul %135, %134, %cst_91 {dimension_numbers = #tpu.dot_dimension_numbers<[1], [0], [0], [1], [0, 0, 1, 1], [], []>} : vector<64x32xbf16>, vector<32x32xbf16>, vector<64x32xf32> -> vector<64x32xf32>
    %c0_92 = arith.constant 0 : index
    %c0_93 = arith.constant 0 : index
    %137 = vector.load %arg32[%c0_92, %c0_93] : memref<1x32xf32, #tpu.memory_space<vmem>>, vector<1x32xf32>
    %138 = vector.broadcast %137 : vector<1x32xf32> to vector<64x32xf32>
    %139 = arith.addf %136, %138 : vector<64x32xf32>
    %c0_94 = arith.constant 0 : index
    %c0_95 = arith.constant 0 : index
    %140 = vector.load %arg33[%c0_94, %c0_95] : memref<32x32xf32, #tpu.memory_space<vmem>>, vector<32x32xf32>
    %cst_96 = arith.constant dense<0.000000e+00> : vector<64x32xf32>
    %141 = tpu.matmul %139, %140, %cst_96 {dimension_numbers = #tpu.dot_dimension_numbers<[1], [0], [0], [1], [0, 0, 1, 1], [], []>} : vector<64x32xf32>, vector<32x32xf32>, vector<64x32xf32> -> vector<64x32xf32>
    %142 = arith.subf %139, %141 : vector<64x32xf32>
    %143 = arith.mulf %142, %142 : vector<64x32xf32>
    %c0_97 = arith.constant 0 : index
    %c0_98 = arith.constant 0 : index
    %144 = vector.load %arg33[%c0_97, %c0_98] : memref<32x32xf32, #tpu.memory_space<vmem>>, vector<32x32xf32>
    %cst_99 = arith.constant dense<0.000000e+00> : vector<64x32xf32>
    %145 = tpu.matmul %143, %144, %cst_99 {dimension_numbers = #tpu.dot_dimension_numbers<[1], [0], [0], [1], [0, 0, 1, 1], [], []>} : vector<64x32xf32>, vector<32x32xf32>, vector<64x32xf32> -> vector<64x32xf32>
    %cst_100 = arith.constant 9.99999997E-7 : f32
    %146 = vector.broadcast %cst_100 : f32 to vector<64x32xf32>
    %147 = arith.addf %145, %146 : vector<64x32xf32>
    %148 = math.rsqrt %147 : vector<64x32xf32>
    %149 = arith.mulf %142, %148 : vector<64x32xf32>
    %c0_101 = arith.constant 0 : index
    %c0_102 = arith.constant 0 : index
    %150 = vector.load %arg34[%c0_101, %c0_102] : memref<1x32xf32, #tpu.memory_space<vmem>>, vector<1x32xf32>
    %151 = vector.broadcast %150 : vector<1x32xf32> to vector<64x32xf32>
    %152 = arith.mulf %149, %151 : vector<64x32xf32>
    %c0_103 = arith.constant 0 : index
    %c0_104 = arith.constant 0 : index
    %153 = vector.load %arg35[%c0_103, %c0_104] : memref<1x32xf32, #tpu.memory_space<vmem>>, vector<1x32xf32>
    %154 = vector.broadcast %153 : vector<1x32xf32> to vector<64x32xf32>
    %155 = arith.addf %152, %154 : vector<64x32xf32>
    %cst_105 = arith.constant 5.000000e-01 : f32
    %156 = vector.broadcast %cst_105 : f32 to vector<64x32xf32>
    %157 = arith.mulf %156, %155 : vector<64x32xf32>
    %cst_106 = arith.constant 4.471500e-02 : f32
    %158 = vector.broadcast %cst_106 : f32 to vector<64x32xf32>
    %159 = arith.mulf %158, %155 : vector<64x32xf32>
    %160 = arith.mulf %159, %155 : vector<64x32xf32>
    %161 = arith.mulf %160, %155 : vector<64x32xf32>
    %162 = arith.addf %155, %161 : vector<64x32xf32>
    %cst_107 = arith.constant 0.797884583 : f32
    %163 = vector.broadcast %cst_107 : f32 to vector<64x32xf32>
    %164 = arith.mulf %163, %162 : vector<64x32xf32>
    %165 = math.tanh %164 : vector<64x32xf32>
    %cst_108 = arith.constant 1.000000e+00 : f32
    %166 = vector.broadcast %cst_108 : f32 to vector<64x32xf32>
    %167 = arith.addf %166, %165 : vector<64x32xf32>
    %168 = arith.mulf %157, %167 : vector<64x32xf32>
    %c0_109 = arith.constant 0 : index
    %c0_110 = arith.constant 0 : index
    %169 = vector.load %arg36[%c0_109, %c0_110] : memref<32x64xbf16, #tpu.memory_space<vmem>>, vector<32x64xbf16>
    %170 = arith.truncf %168 : vector<64x32xf32> to vector<64x32xbf16>
    %cst_111 = arith.constant dense<0.000000e+00> : vector<64x64xf32>
    %171 = tpu.matmul %170, %169, %cst_111 {dimension_numbers = #tpu.dot_dimension_numbers<[1], [0], [0], [1], [0, 0, 1, 1], [], []>} : vector<64x32xbf16>, vector<32x64xbf16>, vector<64x64xf32> -> vector<64x64xf32>
    %c0_112 = arith.constant 0 : index
    %c0_113 = arith.constant 0 : index
    %172 = vector.load %arg37[%c0_112, %c0_113] : memref<1x64xf32, #tpu.memory_space<vmem>>, vector<1x64xf32>
    %173 = vector.broadcast %172 : vector<1x64xf32> to vector<64x64xf32>
    %174 = arith.addf %171, %173 : vector<64x64xf32>
    %cst_114 = arith.constant 5.000000e-01 : f32
    %175 = vector.broadcast %cst_114 : f32 to vector<64x64xf32>
    %176 = arith.mulf %175, %174 : vector<64x64xf32>
    %cst_115 = arith.constant 4.471500e-02 : f32
    %177 = vector.broadcast %cst_115 : f32 to vector<64x64xf32>
    %178 = arith.mulf %177, %174 : vector<64x64xf32>
    %179 = arith.mulf %178, %174 : vector<64x64xf32>
    %180 = arith.mulf %179, %174 : vector<64x64xf32>
    %181 = arith.addf %174, %180 : vector<64x64xf32>
    %cst_116 = arith.constant 0.797884583 : f32
    %182 = vector.broadcast %cst_116 : f32 to vector<64x64xf32>
    %183 = arith.mulf %182, %181 : vector<64x64xf32>
    %184 = math.tanh %183 : vector<64x64xf32>
    %cst_117 = arith.constant 1.000000e+00 : f32
    %185 = vector.broadcast %cst_117 : f32 to vector<64x64xf32>
    %186 = arith.addf %185, %184 : vector<64x64xf32>
    %187 = arith.mulf %176, %186 : vector<64x64xf32>
    %c0_118 = arith.constant 0 : index
    %c0_119 = arith.constant 0 : index
    %188 = vector.load %arg39[%c0_118, %c0_119] : memref<64x5xf32, #tpu.memory_space<vmem>>, vector<64x5xf32>
    %c0_120 = arith.constant 0 : index
    %c0_121 = arith.constant 0 : index
    %189 = vector.load %arg38[%c0_120, %c0_121] : memref<5x20xf32, #tpu.memory_space<vmem>>, vector<5x20xf32>
    %190 = arith.mulf %129, %189 : vector<5x20xf32>
    %cst_122 = arith.constant dense<0.000000e+00> : vector<64x20xf32>
    %191 = tpu.matmul %188, %190, %cst_122 {dimension_numbers = #tpu.dot_dimension_numbers<[1], [0], [0], [1], [0, 0, 1, 1], [], []>} : vector<64x5xf32>, vector<5x20xf32>, vector<64x20xf32> -> vector<64x20xf32>
    %c0_123 = arith.constant 0 : index
    %c0_124 = arith.constant 0 : index
    %192 = vector.load %arg40[%c0_123, %c0_124] : memref<20x64xf32, #tpu.memory_space<vmem>>, vector<20x64xf32>
    %cst_125 = arith.constant dense<0.000000e+00> : vector<64x64xf32>
    %193 = tpu.matmul %191, %192, %cst_125 {dimension_numbers = #tpu.dot_dimension_numbers<[1], [0], [0], [1], [0, 0, 1, 1], [], []>} : vector<64x20xf32>, vector<20x64xf32>, vector<64x64xf32> -> vector<64x64xf32>
    %c0_126 = arith.constant 0 : index
    %c0_127 = arith.constant 0 : index
    %194 = vector.load %arg41[%c0_126, %c0_127] : memref<64x64xf32, #tpu.memory_space<vmem>>, vector<64x64xf32>
    %195 = arith.mulf %193, %194 : vector<64x64xf32>
    %196 = arith.truncf %187 : vector<64x64xf32> to vector<64x64xbf16>
    %197 = arith.truncf %195 : vector<64x64xf32> to vector<64x64xbf16>
    %cst_128 = arith.constant dense<0.000000e+00> : vector<64x64xf32>
    %198 = tpu.matmul %196, %197, %cst_128 {dimension_numbers = #tpu.dot_dimension_numbers<[1], [1], [0], [0], [0, 0, 1, 0], [], []>} : vector<64x64xbf16>, vector<64x64xbf16>, vector<64x64xf32> -> vector<64x64xf32>
    %c0_129 = arith.constant 0 : index
    %c0_130 = arith.constant 0 : index
    %c0_131 = arith.constant 0 : index
    %199 = vector.load %arg42[%c0_129, %c0_130, %c0_131] : memref<1x64x64xf32, #tpu.memory_space<vmem>>, vector<1x64x64xf32>
    %200 = vector.shape_cast %199 : vector<1x64x64xf32> to vector<64x64xf32>
    %201 = vector.shape_cast %198 : vector<64x64xf32> to vector<1x64x64xf32>
    tpu.vector_store %arg42[%c0_129, %c0_130, %c0_131], %201 {strides = array<i32>} : memref<1x64x64xf32, #tpu.memory_space<vmem>>, vector<1x64x64xf32>,
    return
  }
  func.func @transform_0(%arg0: i32) -> (i32, i32, i32) {
    %c0_i32 = arith.constant 0 : i32
    %c0_i32_0 = arith.constant 0 : i32
    %c0_i32_1 = arith.constant 0 : i32
    return %arg0, %c0_i32, %c0_i32_0 : i32, i32, i32
  }
  func.func @transform_1(%arg0: i32) -> (i32, i32, i32) {
    %c0_i32 = arith.constant 0 : i32
    %c0_i32_0 = arith.constant 0 : i32
    %c0_i32_1 = arith.constant 0 : i32
    %c0_i32_2 = arith.constant 0 : i32
    return %c0_i32, %c0_i32_0, %c0_i32_1 : i32, i32, i32
  }
  func.func @transform_2(%arg0: i32) -> (i32, i32, i32) {
    %c0_i32 = arith.constant 0 : i32
    %c0_i32_0 = arith.constant 0 : i32
    %c0_i32_1 = arith.constant 0 : i32
    %c0_i32_2 = arith.constant 0 : i32
    return %c0_i32, %c0_i32_0, %c0_i32_1 : i32, i32, i32
  }
  func.func @transform_3(%arg0: i32) -> (i32, i32, i32) {
    %c0_i32 = arith.constant 0 : i32
    %c0_i32_0 = arith.constant 0 : i32
    %c0_i32_1 = arith.constant 0 : i32
    return %arg0, %c0_i32, %c0_i32_0 : i32, i32, i32
  }
  func.func @transform_4(%arg0: i32) -> (i32, i32) {
    %c0_i32 = arith.constant 0 : i32
    %c0_i32_0 = arith.constant 0 : i32
    %c0_i32_1 = arith.constant 0 : i32
    return %c0_i32, %c0_i32_0 : i32, i32
  }
  func.func @transform_5(%arg0: i32) -> (i32, i32) {
    %c0_i32 = arith.constant 0 : i32
    %c0_i32_0 = arith.constant 0 : i32
    %c0_i32_1 = arith.constant 0 : i32
    return %c0_i32, %c0_i32_0 : i32, i32
  }
  func.func @transform_6(%arg0: i32) -> (i32, i32) {
    %c0_i32 = arith.constant 0 : i32
    %c0_i32_0 = arith.constant 0 : i32
    %c0_i32_1 = arith.constant 0 : i32
    return %c0_i32, %c0_i32_0 : i32, i32
  }
  func.func @transform_7(%arg0: i32) -> (i32, i32) {
    %c0_i32 = arith.constant 0 : i32
    %c0_i32_0 = arith.constant 0 : i32
    %c0_i32_1 = arith.constant 0 : i32
    return %c0_i32, %c0_i32_0 : i32, i32
  }
  func.func @transform_8(%arg0: i32) -> (i32, i32) {
    %c0_i32 = arith.constant 0 : i32
    %c0_i32_0 = arith.constant 0 : i32
    %c0_i32_1 = arith.constant 0 : i32
    return %c0_i32, %c0_i32_0 : i32, i32
  }
  func.func @transform_9(%arg0: i32) -> (i32, i32) {
    %c0_i32 = arith.constant 0 : i32
    %c0_i32_0 = arith.constant 0 : i32
    %c0_i32_1 = arith.constant 0 : i32
    return %c0_i32, %c0_i32_0 : i32, i32
  }
  func.func @transform_10(%arg0: i32) -> (i32, i32) {
    %c0_i32 = arith.constant 0 : i32
    %c0_i32_0 = arith.constant 0 : i32
    %c0_i32_1 = arith.constant 0 : i32
    return %c0_i32, %c0_i32_0 : i32, i32
  }
  func.func @transform_11(%arg0: i32) -> (i32, i32) {
    %c0_i32 = arith.constant 0 : i32
    %c0_i32_0 = arith.constant 0 : i32
    %c0_i32_1 = arith.constant 0 : i32
    return %c0_i32, %c0_i32_0 : i32, i32
  }
  func.func @transform_12(%arg0: i32) -> (i32, i32) {
    %c0_i32 = arith.constant 0 : i32
    %c0_i32_0 = arith.constant 0 : i32
    %c0_i32_1 = arith.constant 0 : i32
    return %c0_i32, %c0_i32_0 : i32, i32
  }
  func.func @transform_13(%arg0: i32) -> (i32, i32) {
    %c0_i32 = arith.constant 0 : i32
    %c0_i32_0 = arith.constant 0 : i32
    %c0_i32_1 = arith.constant 0 : i32
    return %c0_i32, %c0_i32_0 : i32, i32
  }
  func.func @transform_14(%arg0: i32) -> (i32, i32) {
    %c0_i32 = arith.constant 0 : i32
    %c0_i32_0 = arith.constant 0 : i32
    %c0_i32_1 = arith.constant 0 : i32
    return %c0_i32, %c0_i32_0 : i32, i32
  }
  func.func @transform_15(%arg0: i32) -> (i32, i32) {
    %c0_i32 = arith.constant 0 : i32
    %c0_i32_0 = arith.constant 0 : i32
    %c0_i32_1 = arith.constant 0 : i32
    return %c0_i32, %c0_i32_0 : i32, i32
  }
  func.func @transform_16(%arg0: i32) -> (i32, i32) {
    %c0_i32 = arith.constant 0 : i32
    %c0_i32_0 = arith.constant 0 : i32
    %c0_i32_1 = arith.constant 0 : i32
    return %c0_i32, %c0_i32_0 : i32, i32
  }
  func.func @transform_17(%arg0: i32) -> (i32, i32) {
    %c0_i32 = arith.constant 0 : i32
    %c0_i32_0 = arith.constant 0 : i32
    %c0_i32_1 = arith.constant 0 : i32
    return %c0_i32, %c0_i32_0 : i32, i32
  }
  func.func @transform_18(%arg0: i32) -> (i32, i32) {
    %c0_i32 = arith.constant 0 : i32
    %c0_i32_0 = arith.constant 0 : i32
    %c0_i32_1 = arith.constant 0 : i32
    return %c0_i32, %c0_i32_0 : i32, i32
  }
  func.func @transform_19(%arg0: i32) -> (i32, i32) {
    %c0_i32 = arith.constant 0 : i32
    %c0_i32_0 = arith.constant 0 : i32
    %c0_i32_1 = arith.constant 0 : i32
    return %c0_i32, %c0_i32_0 : i32, i32
  }
  func.func @transform_20(%arg0: i32) -> (i32, i32) {
    %c0_i32 = arith.constant 0 : i32
    %c0_i32_0 = arith.constant 0 : i32
    %c0_i32_1 = arith.constant 0 : i32
    return %c0_i32, %c0_i32_0 : i32, i32
  }
  func.func @transform_21(%arg0: i32) -> (i32, i32) {
    %c0_i32 = arith.constant 0 : i32
    %c0_i32_0 = arith.constant 0 : i32
    %c0_i32_1 = arith.constant 0 : i32
    return %c0_i32, %c0_i32_0 : i32, i32
  }
  func.func @transform_22(%arg0: i32) -> (i32, i32) {
    %c0_i32 = arith.constant 0 : i32
    %c0_i32_0 = arith.constant 0 : i32
    %c0_i32_1 = arith.constant 0 : i32
    return %c0_i32, %c0_i32_0 : i32, i32
  }
  func.func @transform_23(%arg0: i32) -> (i32, i32) {
    %c0_i32 = arith.constant 0 : i32
    %c0_i32_0 = arith.constant 0 : i32
    %c0_i32_1 = arith.constant 0 : i32
    return %c0_i32, %c0_i32_0 : i32, i32
  }
  func.func @transform_24(%arg0: i32) -> (i32, i32) {
    %c0_i32 = arith.constant 0 : i32
    %c0_i32_0 = arith.constant 0 : i32
    %c0_i32_1 = arith.constant 0 : i32
    return %c0_i32, %c0_i32_0 : i32, i32
  }
  func.func @transform_25(%arg0: i32) -> (i32, i32) {
    %c0_i32 = arith.constant 0 : i32
    %c0_i32_0 = arith.constant 0 : i32
    %c0_i32_1 = arith.constant 0 : i32
    return %c0_i32, %c0_i32_0 : i32, i32
  }
  func.func @transform_26(%arg0: i32) -> (i32, i32) {
    %c0_i32 = arith.constant 0 : i32
    %c0_i32_0 = arith.constant 0 : i32
    %c0_i32_1 = arith.constant 0 : i32
    return %c0_i32, %c0_i32_0 : i32, i32
  }
  func.func @transform_27(%arg0: i32) -> (i32, i32) {
    %c0_i32 = arith.constant 0 : i32
    %c0_i32_0 = arith.constant 0 : i32
    %c0_i32_1 = arith.constant 0 : i32
    return %c0_i32, %c0_i32_0 : i32, i32
  }
  func.func @transform_28(%arg0: i32) -> (i32, i32) {
    %c0_i32 = arith.constant 0 : i32
    %c0_i32_0 = arith.constant 0 : i32
    %c0_i32_1 = arith.constant 0 : i32
    return %c0_i32, %c0_i32_0 : i32, i32
  }
  func.func @transform_29(%arg0: i32) -> (i32, i32) {
    %c0_i32 = arith.constant 0 : i32
    %c0_i32_0 = arith.constant 0 : i32
    %c0_i32_1 = arith.constant 0 : i32
    return %c0_i32, %c0_i32_0 : i32, i32
  }
  func.func @transform_30(%arg0: i32) -> (i32, i32) {
    %c0_i32 = arith.constant 0 : i32
    %c0_i32_0 = arith.constant 0 : i32
    %c0_i32_1 = arith.constant 0 : i32
    return %c0_i32, %c0_i32_0 : i32, i32
  }
  func.func @transform_31(%arg0: i32) -> (i32, i32) {
    %c0_i32 = arith.constant 0 : i32
    %c0_i32_0 = arith.constant 0 : i32
    %c0_i32_1 = arith.constant 0 : i32
    return %c0_i32, %c0_i32_0 : i32, i32
  }
  func.func @transform_32(%arg0: i32) -> (i32, i32) {
    %c0_i32 = arith.constant 0 : i32
    %c0_i32_0 = arith.constant 0 : i32
    %c0_i32_1 = arith.constant 0 : i32
    return %c0_i32, %c0_i32_0 : i32, i32
  }
  func.func @transform_33(%arg0: i32) -> (i32, i32) {
    %c0_i32 = arith.constant 0 : i32
    %c0_i32_0 = arith.constant 0 : i32
    %c0_i32_1 = arith.constant 0 : i32
    return %c0_i32, %c0_i32_0 : i32, i32
  }
  func.func @transform_34(%arg0: i32) -> (i32, i32) {
    %c0_i32 = arith.constant 0 : i32
    %c0_i32_0 = arith.constant 0 : i32
    %c0_i32_1 = arith.constant 0 : i32
    return %c0_i32, %c0_i32_0 : i32, i32
  }
  func.func @transform_35(%arg0: i32) -> (i32, i32) {
    %c0_i32 = arith.constant 0 : i32
    %c0_i32_0 = arith.constant 0 : i32
    %c0_i32_1 = arith.constant 0 : i32
    return %c0_i32, %c0_i32_0 : i32, i32
  }
  func.func @transform_36(%arg0: i32) -> (i32, i32) {
    %c0_i32 = arith.constant 0 : i32
    %c0_i32_0 = arith.constant 0 : i32
    %c0_i32_1 = arith.constant 0 : i32
    return %c0_i32, %c0_i32_0 : i32, i32
  }
  func.func @transform_37(%arg0: i32) -> (i32, i32) {
    %c0_i32 = arith.constant 0 : i32
    %c0_i32_0 = arith.constant 0 : i32
    %c0_i32_1 = arith.constant 0 : i32
    return %c0_i32, %c0_i32_0 : i32, i32
  }
  func.func @transform_38(%arg0: i32) -> (i32, i32) {
    %c0_i32 = arith.constant 0 : i32
    %c0_i32_0 = arith.constant 0 : i32
    %c0_i32_1 = arith.constant 0 : i32
    return %c0_i32, %c0_i32_0 : i32, i32
  }
  func.func @transform_39(%arg0: i32) -> (i32, i32) {
    %c0_i32 = arith.constant 0 : i32
    %c0_i32_0 = arith.constant 0 : i32
    %c0_i32_1 = arith.constant 0 : i32
    return %c0_i32, %c0_i32_0 : i32, i32
  }
  func.func @transform_40(%arg0: i32) -> (i32, i32) {
    %c0_i32 = arith.constant 0 : i32
    %c0_i32_0 = arith.constant 0 : i32
    %c0_i32_1 = arith.constant 0 : i32
    return %c0_i32, %c0_i32_0 : i32, i32
  }
  func.func @transform_41(%arg0: i32) -> (i32, i32, i32) {
    %c0_i32 = arith.constant 0 : i32
    %c0_i32_0 = arith.constant 0 : i32
    %c0_i32_1 = arith.constant 0 : i32
    return %arg0, %c0_i32, %c0_i32_0 : i32, i32, i32
  }
  func.func @transform_42(%arg0: i32) -> (i32, i32, i32) {
    %c0_i32 = arith.constant 0 : i32
    %c0_i32_0 = arith.constant 0 : i32
    %c0_i32_1 = arith.constant 0 : i32
    return %arg0, %c0_i32, %c0_i32_0 : i32, i32, i32
  }
}

</mosaic_0001>

<bundles_post_ra>
// kernel: tile.38
= control target key start
LH: loop header
LB: loop body
LE: loop exit
PB: predicated region body
PF: predicated region fallthrough
CT: control target
= control target key end

     0   :  { %s22_s0 = inlined_call_operand.vmem [shape: f32[8], index: 0, kind: input, shape index: {}]   ;;  %s23_s1 = inlined_call_operand.vmem [shape: f32[4,8], index: 1, kind: output, shape index: {}]  }
   0x1   :  { %v4_v0 = vld [vmem:[%s22_s0] ss:$0 sm:$0xff] }
   0x2   :  { %5 = vst [vmem:[%s23_s1] sm:$0xf] %v4_v0 }

// kernel: tile.39
= control target key start
LH: loop header
LB: loop body
LE: loop exit
PB: predicated region body
PF: predicated region fallthrough
CT: control target
= control target key end

     0   :  { %s37_s8 = smov 8   ;;  %s38_s9 = smov 16   ;;  %vm7_vm0 = vcmask 64512   ;;  %vm13_vm1 = vcmask 261312   ;;  %vm19_vm2 = vcmask 195712   ;;  %vm25_vm3 = vcmask 130112   ;;  %s55_s0 = inlined_call_operand.vmem [shape: f32[4,8], index: 0, kind: input, shape index: {}]   ;;  %s56_s1 = inlined_call_operand.vmem [shape: f32[1,32], index: 1, kind: output, shape index: {}]  }
   0x1   :  { %v4_v0 = vld [vmem:[%s55_s0] sm:$0xf]  ;;  %s36_s0 = smov 24  }
   0x2   :  { %5 = vst [vmem:[#allocation1] sm:$0xf] %v4_v0 }
   0x9   :  { %v10_v1 = vld [vmem:[#allocation1 + $0x3] sm:$0x1]   ;;  %v22_v2 = vld [vmem:[#allocation1 + $0x1] sm:$0x1]   ;;  %v16_v3 = vld [vmem:[#allocation1 + $0x2] sm:$0x1]  }
   0xa   :  { %11 = vrot.lane.b32.xlu0 %v10_v1, %s36_s0  ;;  %23 = vrot.lane.b32.xlu1 %v22_v2, %s37_s8  ;;  %v6_v4 = vld [vmem:[#allocation1] sm:$0x1]  }
   0xb   :  { %8 = vst.msk [vmem:[#allocation0] sm:$0x1] %vm7_vm0, %v6_v4  }
  0x12   :  { %17 = vrot.lane.b32.xlu0 %v16_v3, %s38_s9 }
  0x7c   :  { %v12_v5 = vpop.permute.xlu0 %11   ;;  %v24_v6 = vpop.permute.xlu1 %23  }
  0x7d   :  { %14 = vst.msk [vmem:[#allocation0] sm:$0x1] %vm13_vm1, %v12_v5  }
  0x84   :  { %v18_v7 = vpop.permute.xlu0 %17  }
  0x85   :  { %20 = vst.msk [vmem:[#allocation0] sm:$0x1] %vm19_vm2, %v18_v7  }
  0x86   :  { %26 = vst.msk [vmem:[#allocation0] sm:$0x1] %vm25_vm3, %v24_v6  }
  0x8d   :  { %v29_v8 = vld [vmem:[#allocation0] sm:$0x1] }
  0x8e   :  { %32 = vst [vmem:[%s56_s1] sm:$0x1] %v29_v8 }

// kernel: tile.28
= control target key start
LH: loop header
LB: loop body
LE: loop exit
PB: predicated region body
PF: predicated region fallthrough
CT: control target
= control target key end

     0   :  { %s28_s0 = inlined_call_operand.vmem [shape: f32[4], index: 0, kind: input, shape index: {}]   ;;  %s29_s1 = inlined_call_operand.vmem [shape: f32[16,4], index: 1, kind: output, shape index: {}]  }
   0x1   :  { %v4_v0 = vld [vmem:[%s28_s0] ss:$0 sm:$0xff] }
   0x2   :  { %5 = vst [vmem:[%s29_s1] sm:$0xff] %v4_v0 }
   0x3   :  { %8 = vst [vmem:[%s29_s1 + $0x8] sm:$0xff] %v4_v0 }

// kernel: tile.29
= control target key start
LH: loop header
LB: loop body
LE: loop exit
PB: predicated region body
PF: predicated region fallthrough
CT: control target
= control target key end

     0   :  { %s131_s10 = smov 60   ;;  %s132_s11 = smov 52   ;;  %vm3_vm0 = vcmask 31744   ;;  %vm9_vm1 = vcmask 523744   ;;  %vm15_vm2 = vcmask 490944   ;;  %vm21_vm3 = vcmask 458144   ;;  %s207_s0 = inlined_call_operand.vmem [shape: f32[16,4], index: 0, kind: input, shape index: {}]   ;;  %s208_s1 = inlined_call_operand.vmem [shape: f32[1,64], index: 1, kind: output, shape index: {}]  }
   0x1   :  { %v101_v0 = vld [vmem:[%s207_s0 + $0xf] sm:$0x1]   ;;  %v103_v1 = vld [vmem:[%s207_s0 + $0xd] sm:$0x1]   ;;  %v105_v2 = vld [vmem:[%s207_s0 + $0xb] sm:$0x1]  }
   0x2   :  { %7 = vrot.lane.b32.xlu0 %v101_v0, %s131_s10  ;;  %19 = vrot.lane.b32.xlu1 %v103_v1, %s132_s11  ;;  %s133_s14 = smov 44   ;;  %v102_v3 = vld [vmem:[%s207_s0 + $0xe] sm:$0x1]   ;;  %v104_v4 = vld [vmem:[%s207_s0 + $0xc] sm:$0x1]   ;;  %s134_s19 = smov 56  }
   0x3   :  { %31 = vrot.lane.b32.xlu2 %v105_v2, %s133_s14  ;;  %s135_s20 = smov 48   ;;  %v106_v5 = vld [vmem:[%s207_s0 + $0xa] sm:$0x1]   ;;  %s136_s23 = smov 40   ;;  %v107_v6 = vld [vmem:[%s207_s0 + $0x9] sm:$0x1]  }
   0x4   :  { %v108_v7 = vld [vmem:[%s207_s0 + $0x8] sm:$0x1]   ;;  %s137_s28 = smov 36   ;;  %s138_s29 = smov 32   ;;  %v109_v8 = vld [vmem:[%s207_s0 + $0x7] sm:$0x1]  }
   0x5   :  { %s139_s3 = smov 28   ;;  %v110_v9 = vld [vmem:[%s207_s0 + $0x6] sm:$0x1]   ;;  %v111_v10 = vld [vmem:[%s207_s0 + $0x5] sm:$0x1]   ;;  %s140_s8 = smov 24  }
   0x6   :  { %s141_s9 = smov 20   ;;  %v112_v11 = vld [vmem:[%s207_s0 + $0x4] sm:$0x1]   ;;  %s142_s12 = smov 16   ;;  %v113_v12 = vld [vmem:[%s207_s0 + $0x3] sm:$0x1]  }
   0x7   :  { %v114_v13 = vld [vmem:[%s207_s0 + $0x2] sm:$0x1]   ;;  %s143_s17 = smov 12   ;;  %s144_s18 = smov 8   ;;  %v115_v14 = vld [vmem:[%s207_s0 + $0x1] sm:$0x1]  }
   0x8   :  { %s145_s21 = smov 4   ;;  %v2_v15 = vld [vmem:[%s207_s0] sm:$0x1]   ;;  %vm27_vm4 = vcmask 425344   ;;  %vm33_vm5 = vcmask 392544   ;;  %vm39_vm6 = vcmask 359744  }
   0x9   :  { %4 = vst.msk [vmem:[#allocation0] sm:$0x1] %vm3_vm0, %v2_v15   ;;  %vm45_vm7 = vcmask 326944   ;;  %vm51_vm8 = vcmask 294144   ;;  %vm57_vm9 = vcmask 261344   ;;  %vm63_vm10 = vcmask 228544  }
   0xa   :  { %13 = vrot.lane.b32.xlu0 %v102_v3, %s134_s19  ;;  %25 = vrot.lane.b32.xlu1 %v104_v4, %s135_s20  ;;  %vm69_vm11 = vcmask 195744   ;;  %vm75_vm12 = vcmask 162944   ;;  %vm81_vm13 = vcmask 130144   ;;  %vm87_vm14 = vcmask 97344  }
   0xb   :  { %37 = vrot.lane.b32.xlu2 %v106_v5, %s136_s23  ;;  %vm93_vm15 = vcmask 64544  }
  0x12   :  { %43 = vrot.lane.b32.xlu0 %v107_v6, %s137_s28  ;;  %49 = vrot.lane.b32.xlu1 %v108_v7, %s138_s29 }
  0x13   :  { %55 = vrot.lane.b32.xlu2 %v109_v8, %s139_s3 }
  0x1a   :  { %61 = vrot.lane.b32.xlu0 %v110_v9, %s140_s8  ;;  %67 = vrot.lane.b32.xlu1 %v111_v10, %s141_s9 }
  0x1b   :  { %73 = vrot.lane.b32.xlu2 %v112_v11, %s142_s12 }
  0x22   :  { %79 = vrot.lane.b32.xlu0 %v113_v12, %s143_s17  ;;  %85 = vrot.lane.b32.xlu1 %v114_v13, %s144_s18 }
  0x23   :  { %91 = vrot.lane.b32.xlu2 %v115_v14, %s145_s21 }
  0x5d   :  { %v32_v16 = vpop.permute.xlu2 %31  }
  0x65   :  { %v38_v17 = vpop.permute.xlu2 %37  }
  0x6d   :  { %v56_v18 = vpop.permute.xlu2 %55  }
  0x74   :  { %v8_v19 = vpop.permute.xlu0 %7   ;;  %v20_v20 = vpop.permute.xlu1 %19  }
  0x75   :  { %10 = vst.msk [vmem:[#allocation0] sm:$0x1] %vm9_vm1, %v8_v19   ;;  %v74_v21 = vpop.permute.xlu2 %73  }
  0x7c   :  { %v14_v22 = vpop.permute.xlu0 %13   ;;  %v26_v23 = vpop.permute.xlu1 %25  }
  0x7d   :  { %16 = vst.msk [vmem:[#allocation0] sm:$0x1] %vm15_vm2, %v14_v22   ;;  %v92_v24 = vpop.permute.xlu2 %91  }
  0x7e   :  { %22 = vst.msk [vmem:[#allocation0] sm:$0x1] %vm21_vm3, %v20_v20  }
  0x7f   :  { %28 = vst.msk [vmem:[#allocation0] sm:$0x1] %vm27_vm4, %v26_v23  }
  0x80   :  { %34 = vst.msk [vmem:[#allocation0] sm:$0x1] %vm33_vm5, %v32_v16  }
  0x81   :  { %40 = vst.msk [vmem:[#allocation0] sm:$0x1] %vm39_vm6, %v38_v17  }
  0x84   :  { %v44_v25 = vpop.permute.xlu0 %43   ;;  %v50_v26 = vpop.permute.xlu1 %49  }
  0x85   :  { %46 = vst.msk [vmem:[#allocation0] sm:$0x1] %vm45_vm7, %v44_v25  }
  0x86   :  { %52 = vst.msk [vmem:[#allocation0] sm:$0x1] %vm51_vm8, %v50_v26  }
  0x87   :  { %58 = vst.msk [vmem:[#allocation0] sm:$0x1] %vm57_vm9, %v56_v18  }
  0x8c   :  { %v62_v27 = vpop.permute.xlu0 %61   ;;  %v68_v28 = vpop.permute.xlu1 %67  }
  0x8d   :  { %64 = vst.msk [vmem:[#allocation0] sm:$0x1] %vm63_vm10, %v62_v27  }
  0x8e   :  { %70 = vst.msk [vmem:[#allocation0] sm:$0x1] %vm69_vm11, %v68_v28  }
  0x8f   :  { %76 = vst.msk [vmem:[#allocation0] sm:$0x1] %vm75_vm12, %v74_v21  }
  0x94   :  { %v80_v29 = vpop.permute.xlu0 %79   ;;  %v86_v30 = vpop.permute.xlu1 %85  }
  0x95   :  { %82 = vst.msk [vmem:[#allocation0] sm:$0x1] %vm81_vm13, %v80_v29  }
  0x96   :  { %88 = vst.msk [vmem:[#allocation0] sm:$0x1] %vm87_vm14, %v86_v30  }
  0x97   :  { %94 = vst.msk [vmem:[#allocation0] sm:$0x1] %vm93_vm15, %v92_v24  }
  0x9e   :  { %v97_v31 = vld [vmem:[#allocation0] sm:$0x1] }
  0x9f   :  { %100 = vst [vmem:[%s208_s1] sm:$0x1] %v97_v31 }

// kernel: mask_decoder_forward.1
= control target key start
LH: loop header
LB: loop body
LE: loop exit
PB: predicated region body
PF: predicated region fallthrough
CT: control target
= control target key end

     0   :  { %s3916_s6 = smov 1   ;;  %s3917_s10 = smov 2   ;;  %s4662_s0 = inlined_call_operand.smem [shape: u32[43], index: -1, kind: input, shape index: {}] }
   0x1   :  { %s3967_s5 = sld [smem:[%s4662_s0]]   ;;  %s3918_s14 = smov 3  }
   0x2   :  { %s3972_s9 = sld [smem:[%s4662_s0 + %s3916_s6]]   ;;  %s3919_s18 = smov 4  }
   0x3   :  { %s3977_s13 = sld [smem:[%s4662_s0 + %s3917_s10]]   ;;  %s3920_s22 = smov 5  }
   0x4   :  { %s3982_s17 = sld [smem:[%s4662_s0 + %s3918_s14]]   ;;  %s3921_s26 = smov 6  }
   0x5   :  { %s3987_s21 = sld [smem:[%s4662_s0 + %s3919_s18]]   ;;  %s3922_s30 = smov 7  }
   0x6   :  { %s3992_s25 = sld [smem:[%s4662_s0 + %s3920_s22]]   ;;  %s3923_s4 = smov 8  }
   0x7   :  { %s3997_s29 = sld [smem:[%s4662_s0 + %s3921_s26]]   ;;  %s3924_s10 = smov 9  }
   0x8   :  { %s4002_s3 = sld [smem:[%s4662_s0 + %s3922_s30]]   ;;  %s3925_s15 = smov 10  }
   0x9   :  { %s4007_s8 = sld [smem:[%s4662_s0 + %s3923_s4]]   ;;  %s3926_s20 = smov 11  }
   0xa   :  { %s4012_s14 = sld [smem:[%s4662_s0 + %s3924_s10]]   ;;  %s3927_s26 = smov 12  }
   0xb   :  { %s4017_s19 = sld [smem:[%s4662_s0 + %s3925_s15]]   ;;  %s3928_s1 = smov 13  }
   0xc   :  { %s4022_s24 = sld [smem:[%s4662_s0 + %s3926_s20]]   ;;  %s3929_s7 = smov 14  }
   0xd   :  { %s4027_s30 = sld [smem:[%s4662_s0 + %s3927_s26]]   ;;  %s3930_s15 = smov 15  }
   0xe   :  { %s4032_s6 = sld [smem:[%s4662_s0 + %s3928_s1]]   ;;  %s3931_s22 = smov 16  }
   0xf   :  { %s4037_s12 = sld [smem:[%s4662_s0 + %s3929_s7]]   ;;  %s3932_s28 = smov 17  }
  0x10   :  { %s4042_s20 = sld [smem:[%s4662_s0 + %s3930_s15]]   ;;  %s3933_s7 = smov 18  }
  0x11   :  { %s4047_s27 = sld [smem:[%s4662_s0 + %s3931_s22]]   ;;  %s3934_s15 = smov 19  }
  0x12   :  { %s4052_s4 = sld [smem:[%s4662_s0 + %s3932_s28]]   ;;  %s3935_s22 = smov 20  }
  0x13   :  { %s3936_s28 = smov 21  }
  0x14   :  { %4677 = sst [smem:[#allocation2_spill]] %s4032_s6 }
  0x15   :  { %s4057_s6 = sld [smem:[%s4662_s0 + %s3933_s7]]   ;;  %s3937_s7 = smov 22  }
  0x16   :  { %4678 = sst [smem:[#allocation3_spill]] %s4042_s20 }
  0x17   :  { %4679 = sst [smem:[#allocation4_spill]] %s4047_s27 }
  0x18   :  { %4680 = sst [smem:[#allocation5_spill]] %s4052_s4 }
  0x19   :  { %s4062_s20 = sld [smem:[%s4662_s0 + %s3934_s15]]   ;;  %s3938_s15 = smov 23  }
  0x1a   :  { %s4067_s27 = sld [smem:[%s4662_s0 + %s3935_s22]]   ;;  %s3939_s22 = smov 24  }
  0x1b   :  { %4681 = sst [smem:[#allocation6_spill]] %s4057_s6 }
  0x1c   :  { %s4072_s4 = sld [smem:[%s4662_s0 + %s3936_s28]]   ;;  %s3940_s28 = smov 25  }
  0x1d   :  { %s4077_s6 = sld [smem:[%s4662_s0 + %s3937_s7]]   ;;  %s3941_s7 = smov 26  }
  0x1f   :  { %4682 = sst [smem:[#allocation7_spill]] %s4062_s20 }
  0x20   :  { %4683 = sst [smem:[#allocation8_spill]] %s4067_s27 }
  0x21   :  { %s4082_s20 = sld [smem:[%s4662_s0 + %s3938_s15]]   ;;  %s3942_s15 = smov 27  }
  0x22   :  { %4684 = sst [smem:[#allocation9_spill]] %s4072_s4 }
  0x23   :  { %4685 = sst [smem:[#allocation10_spill]] %s4077_s6 }
  0x24   :  { %s4087_s27 = sld [smem:[%s4662_s0 + %s3939_s22]]   ;;  %s3943_s22 = smov 28  }
  0x25   :  { %s4092_s4 = sld [smem:[%s4662_s0 + %s3940_s28]]   ;;  %s3944_s28 = smov 29  }
  0x26   :  { %s4097_s6 = sld [smem:[%s4662_s0 + %s3941_s7]]   ;;  %s3945_s7 = smov 30  }
  0x27   :  { %4686 = sst [smem:[#allocation11_spill]] %s4082_s20 }
  0x28   :  { %s4102_s20 = sld [smem:[%s4662_s0 + %s3942_s15]]   ;;  %s3946_s15 = smov 31  }
  0x2a   :  { %4687 = sst [smem:[#allocation12_spill]] %s4087_s27 }
  0x2b   :  { %4688 = sst [smem:[#allocation13_spill]] %s4092_s4 }
  0x2c   :  { %4689 = sst [smem:[#allocation14_spill]] %s4097_s6 }
  0x2d   :  { %s4107_s27 = sld [smem:[%s4662_s0 + %s3943_s22]]   ;;  %s3947_s22 = smov 32  }
  0x2e   :  { %4690 = sst [smem:[#allocation15_spill]] %s4102_s20 }
  0x2f   :  { %s4112_s4 = sld [smem:[%s4662_s0 + %s3944_s28]]   ;;  %s3948_s28 = smov 33  }
  0x30   :  { %s4117_s6 = sld [smem:[%s4662_s0 + %s3945_s7]]   ;;  %s3949_s7 = smov 34  }
  0x31   :  { %s4122_s20 = sld [smem:[%s4662_s0 + %s3946_s15]]   ;;  %s3950_s15 = smov 35  }
  0x33   :  { %4691 = sst [smem:[#allocation16_spill]] %s4107_s27 }
  0x34   :  { %s4127_s27 = sld [smem:[%s4662_s0 + %s3947_s22]]   ;;  %s3951_s22 = smov 36  }
  0x35   :  { %4692 = sst [smem:[#allocation17_spill]] %s4112_s4 }
  0x36   :  { %4693 = sst [smem:[#allocation18_spill]] %s4117_s6 }
  0x37   :  { %4694 = sst [smem:[#allocation19_spill]] %s4122_s20 }
  0x38   :  { %s4132_s4 = sld [smem:[%s4662_s0 + %s3948_s28]]   ;;  %s3952_s28 = smov 37  }
  0x39   :  { %s4137_s6 = sld [smem:[%s4662_s0 + %s3949_s7]]   ;;  %s3953_s7 = smov 38  }
  0x3a   :  { %4695 = sst [smem:[#allocation20_spill]] %s4127_s27 }
  0x3b   :  { %s4142_s20 = sld [smem:[%s4662_s0 + %s3950_s15]]   ;;  %s3954_s15 = smov 39  }
  0x3c   :  { %s4147_s27 = sld [smem:[%s4662_s0 + %s3951_s22]]   ;;  %s3955_s22 = smov 40  }
  0x3e   :  { %4696 = sst [smem:[#allocation21_spill]] %s4132_s4 }
  0x3f   :  { %4697 = sst [smem:[#allocation22_spill]] %s4137_s6 }
  0x40   :  { %s4152_s4 = sld [smem:[%s4662_s0 + %s3952_s28]]   ;;  %s3956_s28 = smov 41  }
  0x41   :  { %4698 = sst [smem:[#allocation23_spill]] %s4142_s20 }
  0x42   :  { %4699 = sst [smem:[#allocation24_spill]] %s4147_s27 }
  0x43   :  { %s4157_s6 = sld [smem:[%s4662_s0 + %s3953_s7]]   ;;  %s3957_s7 = smov 42  }
  0x44   :  { %s4162_s20 = sld [smem:[%s4662_s0 + %s3954_s15]]   ;;  %s4179_s15 = smov 0  }
  0x45   :  { %s4167_s27 = sld [smem:[%s4662_s0 + %s3955_s22]]  }
  0x46   :  { %4700 = sst [smem:[#allocation25_spill]] %s4152_s4 }
  0x47   :  { %s4172_s4 = sld [smem:[%s4662_s0 + %s3956_s28]]  }
  0x49   :  { %4701 = sst [smem:[#allocation26_spill]] %s4157_s6 }
  0x4a   :  { %s4177_s6 = sld [smem:[%s4662_s0 + %s3957_s7]]  }
  0x4b LB: > { %s3360_s16 = sadd.s32 4294967295, %s3914_s15   ;;  %p3364_p0 = scmp.ge.s32.totalorder %s3914_s15, 1  ;;  %s3914_s15 = sphi %s4179_s15, %s96_s15  }
  0x4c   : > { %p1167_p1 = scmp.lt.s32.totalorder %s3914_s15, 3 }
  0x4e   : > { %p1168_p2 = pnand %p3364_p0, %p1167_p1 }
  0x4f   : > { %p1276_p3 = scmp.lt.s32.totalorder (!%p1168_p2), %s3360_s16, 1  ;;  %s4702_s26 = sld [smem:[#allocation4_spill]] (!%p1168_p2) }
  0x50   : > { %1171 = sbr.rel (%p1168_p2) target bundleno = 2842 (0xb1a), region = 184  ;;  %s4703_s28 = sld [smem:[#allocation2_spill]] (!%p1168_p2) }
  0x51   : > { %s4704_s1 = sld [smem:[#allocation6_spill]] (!%p1168_p2) }
  0x52   : > { %s4705_s2 = sld [smem:[#allocation8_spill]] (!%p1168_p2) }
  0x53   : > { %s4706_s7 = sld [smem:[#allocation3_spill]] (!%p1168_p2) }
  0x54   : > { %s4707_s10 = sld [smem:[#allocation7_spill]] (!%p1168_p2) }
  0x55   : > { %v3700_v0 = vld [vmem:[%s3997_s29 + $0x8] sm:$0xff]  ;;  %v3699_v1 = vld [vmem:[%s3997_s29] sm:$0xff]  ;;  %s4729_s16 = smov (!%p1276_p3, %s3360_s16), 1  ;;  %vm1356_vm0 = vcmask 261120   ;;  %v1297_v13 = vld [vmem:[%s3972_s9 + $0x10] sm:$0xff]  ;;  %vm1536_vm1 = vcmask 522240  }
  0x56   : > { %1415 = vmatpush.bf16.msra.mxu1 %v3700_v0  ;;  %v1295_v2 = vld [vmem:[%s3972_s9] sm:$0xff]  ;;  %s4674_s0 = sshll.u32 %s4729_s16, 6  ;;  %v1296_v3 = vld [vmem:[%s3972_s9 + $0x8] sm:$0xff]  ;;  %v1298_v14 = vld [vmem:[%s3972_s9 + $0x18] sm:$0xff]  ;;  %s3365_s22 = sshll.u32 %s4729_s16, 3  ;;  %vm1553_vm2 = vcmask 523264  }
  0x57   : > { %v1319_v4 = vld [vmem:[%s3977_s13] sm:$0xff]  ;;  %s4198_s18 = scalar_lea.vmem %s3982_s17, %s4674_s0  ;;  %v1320_v7 = vld [vmem:[%s3977_s13 + $0x8] sm:$0xff]  ;;  %v1321_v19 = vld [vmem:[%s3977_s13 + $0x10] sm:$0xff]  ;;  %s1279_s23 = scalar_lea.vmem %s3967_s5, %s3365_s22  ;;  %vm1976_vm3 = vcmask 1042432   ;;  %vm1977_vm4 = vcmask 1043456   ;;  %vm1870_vm5 = vcmask 56320  }
  0x58   : > { %v1303_v5 = vld [vmem:[%s4198_s18] sm:$0xff]  ;;  %v1304_v6 = vld [vmem:[%s4198_s18 + $0x8] sm:$0xff]  ;;  %v1305_v15 = vld [vmem:[%s4198_s18 + $0x10] sm:$0xff]  ;;  %s4708_s11 = sld [smem:[#allocation9_spill]]  ;;  %vm2451_vm6 = vcmask 24576   ;;  %vm3024_vm7 = vcmask 1044480  }
  0x59   : > { %v4203_v8 = vadd.f32 %v1303_v5, %v1295_v2  ;;  %v4205_v9 = vadd.f32 %v1304_v6, %v1296_v3  ;;  %v1306_v16 = vld [vmem:[%s4198_s18 + $0x18] sm:$0xff]  ;;  %v4217_v17 = vadd.f32 %v1305_v15, %v1297_v13  ;;  %v1299_v24 = vld [vmem:[%s3972_s9 + $0x20] sm:$0xff]  ;;  %v3698_v25 = vld [vmem:[%s3987_s21 + $0x8] sm:$0xff]  ;;  %s4710_s22 = sld [smem:[#allocation12_spill]]  ;;  %vm2999_vm8 = vcmask 39936  }
  0x5a   : > { %1416 = vmatpush.bf16.msra.mxu1 %v3699_v1  ;;  %v4219_v18 = vadd.f32 %v1306_v16, %v1298_v14  ;;  %v1322_v20 = vld [vmem:[%s3977_s13 + $0x18] sm:$0xff]  ;;  %v1300_v26 = vld [vmem:[%s3972_s9 + $0x28] sm:$0xff]  ;;  %v1307_v27 = vld [vmem:[%s4198_s18 + $0x20] sm:$0xff]  ;;  %1366 = vmatpush.bf16.msra.mxu0 %v3698_v25  ;;  %s4720_s0 = sld [smem:[#allocation17_spill]]  ;;  %vm3072_vm9 = vcmask 162816  }
  0x5b   : > { %v1327_v10 = vadd.f32 %v1319_v4, %v4203_v8  ;;  %v1328_v11 = vadd.f32 %v1320_v7, %v4205_v9  ;;  %v1329_v21 = vadd.f32 %v1321_v19, %v4217_v17  ;;  %v1308_v28 = vld [vmem:[%s4198_s18 + $0x28] sm:$0xff]  ;;  %v3697_v29 = vld [vmem:[%s3987_s21] sm:$0xff]  ;;  %v4239_v31 = vadd.f32 %v1307_v27, %v1299_v24  ;;  %v1301_v39 = vld [vmem:[%s3972_s9 + $0x30] sm:$0xff] }
  0x5c   : > { %v1330_v22 = vadd.f32 %v1322_v20, %v4219_v18  ;;  %v4237_v30 = vld [vmem:[%s1279_s23] sm:$0x7f]  ;;  %v4241_v32 = vadd.f32 %v1308_v28, %v1300_v26  ;;  %v1324_v34 = vld [vmem:[%s3977_s13 + $0x28] sm:$0xff]  ;;  %v1302_v40 = vld [vmem:[%s3972_s9 + $0x38] sm:$0xff]  ;;  %v1442_v6 = vpack.c.bf16 %v4205_v9, %v4203_v8  ;;  %s4711_s23 = sld [smem:[#allocation14_spill]] }
  0x5d   : > { %v4209_v12 = vpack.c.bf16 %v1328_v11, %v1327_v10  ;;  %v1323_v33 = vld [vmem:[%s3977_s13 + $0x20] sm:$0xff]  ;;  %v1339_v35 = vpack.c.bf16 %v4237_v30, %v4237_v30  ;;  %v1309_v41 = vld [vmem:[%s4198_s18 + $0x30] sm:$0xff]  ;;  %v1310_v42 = vld [vmem:[%s4198_s18 + $0x38] sm:$0xff]  ;;  %s4709_s18 = sld [smem:[#allocation5_spill]] }
  0x5e   : > { %v4225_v23 = vpack.c.bf16 %v1330_v22, %v1329_v21  ;;  %1367 = vmatpush.bf16.msra.mxu0 %v3697_v29  ;;  %v1331_v36 = vadd.f32 %v1323_v33, %v4239_v31  ;;  %v1332_v37 = vadd.f32 %v1324_v34, %v4241_v32  ;;  %v4258_v43 = vadd.f32 %v1309_v41, %v1301_v39  ;;  %v1325_v45 = vld [vmem:[%s3977_s13 + $0x30] sm:$0xff]  ;;  %v1326_v46 = vld [vmem:[%s3977_s13 + $0x38] sm:$0xff]  ;;  %v3809_v59 = vld [vmem:[%s4002_s3] ss:$0 sm:$0xff] }
  0x5f   : > { %3387 = vmatmul.msk.bf16.vlgmr.msra.gmra.mxu1 %vm1356_vm0, %v4209_v12  ;;  %v4260_v44 = vadd.f32 %v1310_v42, %v1302_v40  ;;  %v3702_v2 = vld [vmem:[%s4007_s8 + $0x8] sm:$0xff]  ;;  %v3701_v4 = vld [vmem:[%s4007_s8] sm:$0xff]  ;;  %v1443_v21 = vpack.c.bf16 %v4219_v18, %v4217_v17  ;;  %v1444_v26 = vpack.c.bf16 %v4241_v32, %v4239_v31 }
  0x60   : > { %v4250_v38 = vpack.c.bf16 %v1332_v37, %v1331_v36  ;;  %v1333_v47 = vadd.f32 %v1325_v45, %v4258_v43  ;;  %1480 = vmatpush.bf16.msra.mxu2 %v3702_v2  ;;  %v3810_v19 = vld [vmem:[%s3992_s25] ss:$0 sm:$0xff] }
  0x61   : > { %3378 = vmatmul.msk.bf16.vlgmr.msra.gmra.mxu0 %vm1356_vm0, %v1339_v35  ;;  %v1334_v48 = vadd.f32 %v1326_v46, %v4260_v44  ;;  %v1445_v27 = vpack.c.bf16 %v4260_v44, %v4258_v43 }
  0x63   : > { %v4266_v49 = vpack.c.bf16 %v1334_v48, %v1333_v47 }
  0x64   : > { %1481 = vmatpush.bf16.msra.mxu2 %v3701_v4 }
  0x67   : > { %3399 = vmatmul.msk.bf16.vlgmr.msra.gmra.mxu2 %vm1356_vm0, %v1442_v6 }
  0x6f   : > { %3388 = vmatmul.msk.bf16.gmra.mxu1 %vm1356_vm0, %v4225_v23 }
  0x77   : > { %3400 = vmatmul.msk.bf16.gmra.mxu2 %vm1356_vm0, %v1443_v21 }
  0x7f   : > { %3389 = vmatmul.msk.bf16.gmra.mxu1 %vm1356_vm0, %v4250_v38 }
  0x87   : > { %3401 = vmatmul.msk.bf16.gmra.mxu2 %vm1356_vm0, %v1444_v26  ;;  %v3707_v26 = vld [vmem:[%s4037_s12] sm:$0xff] }
  0x8f   : > { %3390 = vmatmul.msk.bf16.gmra.mxu1 %vm1356_vm0, %v4266_v49 }
  0x97   : > { %3402 = vmatmul.msk.bf16.gmra.mxu2 %vm1356_vm0, %v1445_v27  ;;  %v3712_v27 = vld [vmem:[%s4702_s26 + $0x8] sm:$0xff] }
  0xdc   : > { %v1418_v50 = vpop.f32.mrf.mxu1 }
  0xdd   : > { %v1419_v16 = vadd.f32 %v3809_v59, %v1418_v50  ;;  %v3811_v50 = vld [vmem:[%s4012_s14] ss:$0 sm:$0xff] }
  0xde   : > { %v1369_v56 = vpop.f32.mrf.mxu0 }
  0xdf   : > { %v1370_v22 = vadd.f32 %v3810_v19, %v1369_v56 }
  0xe1   : > { %v1503_v25 = vpack.c.bf16 %v1370_v22, %v1370_v22 }
  0xe4   : > { %v1420_v51 = vpop.f32.mrf.mxu1 }
  0xe5   : > { %v1421_v14 = vadd.f32 %v3809_v59, %v1420_v51 }
  0xe6   : > { %v1371_v58 = vpop.f32.mrf.mxu0 }
  0xe7   : > { %v1504_v20 = vpack.c.bf16 %v1421_v14, %v1419_v16  ;;  %v3710_v14 = vld [vmem:[%s4037_s12 + $0x18] sm:$0xff]  ;;  %v3812_v16 = vld [vmem:[%s4022_s24] ss:$0 sm:$0xff] }
  0xe9   : > { %v1512_v24 = vsel %vm1356_vm0, %v1504_v20, 0 }
  0xea   : > { %v1483_v34 = vpop.f32.mrf.mxu2 }
  0xec   : > { %v1423_v52 = vpop.f32.mrf.mxu1 }
  0xed   : > { %v1424_v11 = vadd.f32 %v3809_v59, %v1423_v52 }
  0xf2   : > { %v1485_v35 = vpop.f32.mrf.mxu2 }
  0xf4   : > { %v1425_v53 = vpop.f32.mrf.mxu1 }
  0xf5   : > { %v1426_v7 = vadd.f32 %v3809_v59, %v1425_v53 }
  0xf7   : > { %v1505_v13 = vpack.c.bf16 %v1426_v7, %v1424_v11  ;;  %v3706_v11 = vld [vmem:[%s4027_s30 + $0x8] sm:$0xff] }
  0xf9   : > { %v1515_v15 = vsel %vm1356_vm0, %v1505_v13, 0  ;;  %v3705_v13 = vld [vmem:[%s4027_s30] sm:$0xff] }
  0xfa   : > { %v1488_v36 = vpop.f32.mrf.mxu2 }
  0xfc   : > { %v1428_v54 = vpop.f32.mrf.mxu1 }
  0xfd   : > { %v1429_v3 = vadd.f32 %v3809_v59, %v1428_v54 }
 0x102   : > { %v1490_v37 = vpop.f32.mrf.mxu2 }
 0x103   : > { %v1491_v58 = vadd.f32 %v3811_v50, %v1490_v37  ;;  %v3716_v37 = vld [vmem:[%s4705_s2 + $0x8] sm:$0xff] }
 0x104   : > { %v1430_v55 = vpop.f32.mrf.mxu1  ;;  %1814 = vmatpush.bf16.msrb.mxu1 %v3716_v37 }
 0x105   : > { %v1431_v0 = vadd.f32 %v3809_v59, %v1430_v55 }
 0x107   : > { %v1506_v5 = vpack.c.bf16 %v1431_v0, %v1429_v3  ;;  %v3704_v0 = vld [vmem:[%s4017_s19 + $0x8] sm:$0xff] }
 0x109   : > { %v1518_v10 = vsel %vm1356_vm0, %v1506_v5, 0  ;;  %v3703_v5 = vld [vmem:[%s4017_s19] sm:$0xff] }
 0x10a   : > { %v1493_v39 = vpop.f32.mrf.mxu2 }
 0x10b   : > { %v1494_v53 = vadd.f32 %v3811_v50, %v1493_v39  ;;  %v3713_v39 = vld [vmem:[%s4704_s1] sm:$0xff] }
 0x10c   : > { %v1433_v57 = vpop.f32.mrf.mxu1 }
 0x10d   : > { %v1434_v61 = vadd.f32 %v3809_v59, %v1433_v57  ;;  %v1489_v57 = vadd.f32 %v3811_v50, %v1488_v36 }
 0x112   : > { %v1495_v45 = vpop.f32.mrf.mxu2 }
 0x113   : > { %v1496_v54 = vadd.f32 %v3811_v50, %v1495_v45 }
 0x114   : > { %v1435_v60 = vpop.f32.mrf.mxu1 }
 0x115   : > { %v1436_v62 = vadd.f32 %v3809_v59, %v1435_v60  ;;  %v1551_v59 = vpack.c.bf16 %v1496_v54, %v1494_v53  ;;  %v1484_v60 = vadd.f32 %v3811_v50, %v1483_v34 }
 0x117   : > { %v1507_v63 = vpack.c.bf16 %v1436_v62, %v1434_v61  ;;  %v1486_v61 = vadd.f32 %v3811_v50, %v1485_v35  ;;  %v1550_v62 = vpack.c.bf16 %v1491_v58, %v1489_v57 }
 0x119   : > { %v1521_v1 = vsel %vm1356_vm0, %v1507_v63, 0  ;;  %v1549_v63 = vpack.c.bf16 %v1486_v61, %v1484_v60 }
 0x11a   : > { %1527 = vmatpush.bf16.xpose.msra.mxu3 %v1521_v1  ;;  %v1498_v48 = vpop.f32.mrf.mxu2 }
 0x11b   : > { %v1499_v51 = vadd.f32 %v3811_v50, %v1498_v48  ;;  %v3816_v48 = vld [vmem:[%s4707_s10] ss:$0 sm:$0xff]  ;;  %s4714_s10 = sld [smem:[#allocation18_spill]] }
 0x122   : > { %1528 = vmatpush.bf16.xpose.msra.mxu3 %v1518_v10  ;;  %v1500_v52 = vpop.f32.mrf.mxu2 }
 0x123   : > { %v1501_v55 = vadd.f32 %v3811_v50, %v1500_v52  ;;  %v3817_v50 = vld [vmem:[%s4708_s11] ss:$0 sm:$0xff]  ;;  %s4715_s11 = sld [smem:[#allocation11_spill]] }
 0x125   : > { %v1552_v56 = vpack.c.bf16 %v1501_v55, %v1499_v51  ;;  %v3958_v51 = vmov 65535  }
 0x126   : > { %v1978_v52 = vsel %vm1976_vm3, 4294967295, %v3958_v51 }
 0x127   : > { %1561 = vmatpush.bf16.msrb.mxu0 %v1552_v56  ;;  %v1979_v57 = vsel %vm1977_vm4, %v1978_v52, 0 }
 0x12a   : > { %1529 = vmatpush.bf16.xpose.msra.mxu3 %v1515_v15  ;;  %v3709_v15 = vld [vmem:[%s4037_s12 + $0x10] sm:$0xff] }
 0x12b   : > { %1562 = vmatpush.bf16.msrb.mxu0 %v1551_v59  ;;  %v3815_v59 = vld [vmem:[%s4709_s18] ss:$0 sm:$0xff]  ;;  %s4716_s18 = sld [smem:[#allocation16_spill]] }
 0x12f   : > { %1563 = vmatpush.bf16.msrb.mxu0 %v1550_v62 }
 0x132   : > { %1530 = vmatpush.bf16.xpose.msra.mxu3 %v1512_v24 }
 0x133   : > { %1564 = vmatpush.bf16.msrb.mxu0 %v1549_v63 }
 0x137   : > { %1596 = vmatpush.bf16.msra.mxu0 %v3704_v0 }
 0x139   : > { %3403 = vmatmul.msk.bf16.vlgmr.msra.gmra.mxu3 %vm1356_vm0, %v1503_v25  ;;  %v3708_v25 = vld [vmem:[%s4037_s12 + $0x8] sm:$0xff] }
 0x13a   : > { %1639 = vmatpush.bf16.msrb.mxu3 %v3706_v11 }
 0x13b   : > { %1597 = vmatpush.bf16.msra.mxu0 %v3703_v5 }
 0x13e   : > { %1640 = vmatpush.bf16.msrb.mxu3 %v3705_v13  ;;  %v3721_v13 = vld [vmem:[%s4710_s22 + $0x14] sm:$0xf] }
 0x142   : > { %1728 = vmatpush.bf16.msra.mxu3 %v3712_v27 }
 0x1bc   : > { %v1532_v28 = vpop.f32.mrf.mxu3 }
 0x1bd   : > { %v1537_v29 = vsel %vm1536_vm1, %v1532_v28, -inf }
 0x1be   : > { %1538 = vmax.xlane.f32.xlu0 %v1537_v29 }
 0x1c4   : > { %v1534_v33 = vpop.f32.mrf.mxu3 }
 0x231   : > { %v1539_v40 = vpop.xlane.xlu0 %1538 }
 0x232   : > { %v1540_v41 = vsub.f32 %v1532_v28, %v1539_v40  ;;  %v3711_v28 = vld [vmem:[%s4702_s26] sm:$0xff] }
 0x233   : > { %1729 = vmatpush.bf16.msra.mxu3 %v3711_v28  ;;  %v3715_v40 = vld [vmem:[%s4705_s2] sm:$0xff]  ;;  %s1292_s2 = scalar_lea.vmem %s4177_s6, %s4729_s16 }
 0x234   : > { %v1541_v42 = vmul.f32 1.442695, %v1540_v41  ;;  %1815 = vmatpush.bf16.msrb.mxu1 %v3715_v40 }
 0x236   : > { %3824 = vpow2.f32 %v1541_v42 }
 0x23c   : > { %v3825_v46 = vpop.eup %3824 }
 0x23d   : > { %v1543_v47 = vsel %vm1536_vm1, %v3825_v46, 0.0 }
 0x23e   : > { %1544 = vadd.xlane.f32.xlu0 %v1543_v47 }
 0x2b1   : > { %v1545_v1 = vpop.xlane.xlu0 %1544 }
 0x2b2   : > { %3826 = vrcp.f32 %v1545_v1 }
 0x2b8   : > { %v3827_v2 = vpop.eup %3826 }
 0x2b9   : > { %v1547_v3 = vmul.f32 %v3827_v2, %v3825_v46 }
 0x2bb   : > { %v1548_v4 = vpack.c.bf16 %v1547_v3, %v1547_v3 }
 0x2bd   : > { %3404 = vmatmul.msk.bf16.vlgmr.msrb.gmra.mxu0 %vm1553_vm2, %v1548_v4 }
 0x2be   : > { %1687 = vmatpush.bf16.msrb.mxu0 %v3710_v14  ;;  %v3502_v14 = vld [vmem:[%s4710_s22 + $0x18] sm:$0xf0] }
 0x2c2   : > { %1688 = vmatpush.bf16.msrb.mxu0 %v3709_v15  ;;  %v3719_v15 = vld [vmem:[%s4710_s22 + $0x4] sm:$0xf] }
 0x2c6   : > { %1689 = vmatpush.bf16.msrb.mxu0 %v3708_v25 }
 0x2ca   : > { %1690 = vmatpush.bf16.msrb.mxu0 %v3707_v26 }
 0x33a   : > { %v1566_v6 = vpop.f32.mrf.mxu0 }
 0x33b   : > { %v1574_v7 = vpack.c.bf16 %v1566_v6, %v1566_v6 }
 0x33d   : > { %3413 = vmatmul.msk.bf16.vlgmr.msra.gmra.mxu0 %vm1356_vm0, %v1574_v7 }
 0x342   : > { %v1568_v10 = vpop.f32.mrf.mxu0 }
 0x3ba   : > { %v1599_v19 = vpop.f32.mrf.mxu0 }
 0x3bb   : > { %v1603_v20 = vadd.f32 %v1599_v19, %v4237_v30  ;;  %v3813_v30 = vld [vmem:[%s4703_s28] ss:$0 sm:$0xff]  ;;  %v3494_v19 = vld [vmem:[%s4710_s22 + $0x8] sm:$0xf0]  ;;  %s4712_s28 = sld [smem:[#allocation13_spill]] }
 0x3bd   : > { %v1608_v21 = vadd.f32 %v3812_v16, %v1603_v20  ;;  %v3505_v16 = vor.u32 %v3721_v13, %v3502_v14 }
 0x3bf   : > { %v1613_v22 = vpack.c.bf16 %v1608_v21, %v1608_v21 }
 0x3c1   : > { %3422 = vmatmul.msk.bf16.vlgmr.msrb.gmra.mxu3 %vm1356_vm0, %v1613_v22 }
 0x3c2   : > { %v1601_v24 = vpop.f32.mrf.mxu0 }
 0x3d1   : > { %3448 = vmatmul.msk.bf16.vlgmr.msra.gmra.mxu3 %vm1356_vm0, %v4209_v12  ;;  %v3714_v12 = vld [vmem:[%s4704_s1 + $0x8] sm:$0xff]  ;;  %s4722_s1 = sld [smem:[#allocation26_spill]] }
 0x3d2   : > { %1781 = vmatpush.bf16.msra.mxu0 %v3714_v12 }
 0x3d6   : > { %1782 = vmatpush.bf16.msra.mxu0 %v3713_v39 }
 0x3e1   : > { %3449 = vmatmul.msk.bf16.gmra.mxu3 %vm1356_vm0, %v4225_v23  ;;  %v3814_v23 = vld [vmem:[%s4706_s7] ss:$0 sm:$0xff]  ;;  %s4713_s7 = sld [smem:[#allocation10_spill]] }
 0x3f1   : > { %3450 = vmatmul.msk.bf16.gmra.mxu3 %vm1356_vm0, %v4250_v38 }
 0x401   : > { %3451 = vmatmul.msk.bf16.gmra.mxu3 %vm1356_vm0, %v4266_v49 }
 0x444   : > { %v1642_v29 = vpop.f32.mrf.mxu3 }
 0x445   : > { %v1643_v33 = vadd.f32 %v3813_v30, %v1642_v29 }
 0x447   : > { %v1646_v34 = vmax.f32 %v1643_v33, 0.0 }
 0x449   : > { %v1655_v35 = vpack.c.bf16 %v1646_v34, %v1646_v34 }
 0x44b   : > { %3439 = vmatmul.msk.bf16.vlgmr.msrb.gmra.mxu0 %vm1553_vm2, %v1655_v35 }
 0x44c   : > { %v1644_v36 = vpop.f32.mrf.mxu3 }
 0x454   : > { %v1731_v49 = vpop.f32.mrf.mxu3 }
 0x455   : > { %v1732_v0 = vadd.f32 %v3815_v59, %v1731_v49  ;;  %v3739_v49 = vld [vmem:[%s4711_s23 + $0x84] sm:$0xf] }
 0x45c   : > { %v1733_v47 = vpop.f32.mrf.mxu3 }
 0x45d   : > { %v1734_v1 = vadd.f32 %v3815_v59, %v1733_v47  ;;  %v3576_v47 = vld [vmem:[%s4711_s23 + $0x88] sm:$0xf0] }
 0x45f   : > { %v1821_v4 = vpack.c.bf16 %v1734_v1, %v1732_v0 }
 0x464   : > { %v1736_v58 = vpop.f32.mrf.mxu3 }
 0x465   : > { %v1737_v7 = vadd.f32 %v3815_v59, %v1736_v58 }
 0x46c   : > { %v1738_v5 = vpop.f32.mrf.mxu3 }
 0x46d   : > { %v1739_v10 = vadd.f32 %v3815_v59, %v1738_v5 }
 0x46f   : > { %v1822_v11 = vpack.c.bf16 %v1739_v10, %v1737_v7 }
 0x474   : > { %v1741_v6 = vpop.f32.mrf.mxu3 }
 0x475   : > { %v1742_v22 = vadd.f32 %v3815_v59, %v1741_v6 }
 0x47c   : > { %v1743_v20 = vpop.f32.mrf.mxu3 }
 0x47d   : > { %v1744_v24 = vadd.f32 %v3815_v59, %v1743_v20 }
 0x47f   : > { %v1823_v26 = vpack.c.bf16 %v1744_v24, %v1742_v22 }
 0x484   : > { %v1746_v25 = vpop.f32.mrf.mxu3 }
 0x485   : > { %v1747_v28 = vadd.f32 %v3815_v59, %v1746_v25 }
 0x48c   : > { %v1748_v27 = vpop.f32.mrf.mxu3 }
 0x48d   : > { %v1749_v30 = vadd.f32 %v3815_v59, %v1748_v27 }
 0x48f   : > { %v1824_v29 = vpack.c.bf16 %v1749_v30, %v1747_v28 }
 0x4c8   : > { %v1692_v41 = vpop.f32.mrf.mxu0 }
 0x4c9   : > { %v1696_v42 = vadd.f32 %v1692_v41, %v1608_v21  ;;  %v3497_v21 = vor.u32 %v3719_v15, %v3494_v19  ;;  %v3584_v41 = vld [vmem:[%s4711_s23 + $0x98] sm:$0xf0] }
 0x4cb   : > { %v1701_v45 = vadd.f32 %v3814_v23, %v1696_v42  ;;  %v3741_v23 = vld [vmem:[%s4711_s23 + $0x94] sm:$0xf] }
 0x4cc   : > { %v3587_v42 = vor.u32 %v3741_v23, %v3584_v41 }
 0x4cd   : > { %v4324_v46 = vpack.c.bf16 %v1701_v45, %v1701_v45 }
 0x4cf   : > { %3460 = vmatmul.msk.bf16.vlgmr.msra.gmra.mxu0 %vm1356_vm0, %v4324_v46  ;;  %3469 = vmatmul.msk.bf16.vlgmr.msrb.gmra.mxu1 %vm1356_vm0, %v4324_v46 }
 0x4d0   : > { %v1694_v38 = vpop.f32.mrf.mxu0 }
 0x54c   : > { %v1784_v53 = vpop.f32.mrf.mxu0  ;;  %v1817_v54 = vpop.f32.mrf.mxu1 }
 0x54d   : > { %v1785_v55 = vadd.f32 %v3816_v48, %v1784_v53  ;;  %v1818_v56 = vadd.f32 %v3817_v50, %v1817_v54  ;;  %v3579_v48 = vor.u32 %v3739_v49, %v3576_v47 }
 0x54f   : > { %v1825_v60 = vpack.c.bf16 %v1785_v55, %v1785_v55  ;;  %v1963_v61 = vpack.c.bf16 %v1818_v56, %v1818_v56  ;;  %v4358_v56 = vld [vmem:[%s4712_s28] sm:$0x3]  ;;  %s4717_s28 = sld [smem:[#allocation20_spill]] }
 0x551   : > { %v1981_v62 = vand.u32 %v1979_v57, %v1963_v61  ;;  %v1839_v63 = vsel %vm1356_vm0, %v1825_v60, 0  ;;  %v2100_v57 = vperm.slane %v4358_v56, 1 }
 0x552   : > { %1848 = vmatpush.bf16.xpose.msrb.mxu2 %v1839_v63 }
 0x553   : > { %1990 = vmatpush.bf16.msrb.mxu0 %v1981_v62  ;;  %3757 = vmatpush.bf16.msrb.mxu3 %v1981_v62 }
 0x554   : > { %v1786_v2 = vpop.f32.mrf.mxu0  ;;  %v1819_v3 = vpop.f32.mrf.mxu1 }
 0x559   : > { %3470 = vmatmul.msk.bf16.vlgmr.msrb.gmra.mxu2 %vm1356_vm0, %v1821_v4 }
 0x55a   : > { %2142 = vmatpush.bf16.msra.mxu2 %v3505_v16 }
 0x55e   : > { %2143 = vmatpush.bf16.msra.mxu2 %v3497_v21 }
 0x562   : > { %2327 = vmatpush.bf16.msrb.mxu2 %v3587_v42 }
 0x566   : > { %2328 = vmatpush.bf16.msrb.mxu2 %v3579_v48 }
 0x569   : > { %3471 = vmatmul.msk.bf16.gmra.mxu2 %vm1356_vm0, %v1822_v11 }
 0x579   : > { %3472 = vmatmul.msk.bf16.gmra.mxu2 %vm1356_vm0, %v1823_v26 }
 0x589   : > { %3473 = vmatmul.msk.bf16.gmra.mxu2 %vm1356_vm0, %v1824_v29 }
 0x599   : > { %3507 = vmatmul.msk.bf16.vlgmr.msra.gmra.mxu2 %vm1356_vm0, %v4324_v46 }
 0x5dc   : > { %v1850_v33 = vpop.f32.mrf.mxu2 }
 0x5dd   : > { %v1871_v34 = vsel %vm1870_vm5, %v1850_v33, -inf }
 0x5de   : > { %1872 = vmax.xlane.f32.xlu1 %v1871_v34 }
 0x5e4   : > { %v1852_v35 = vpop.f32.mrf.mxu2 }
 0x5e5   : > { %v1874_v36 = vsel %vm1870_vm5, %v1852_v35, -inf }
 0x5e6   : > { %1875 = vmax.xlane.f32.xlu1 %v1874_v36 }
 0x5ec   : > { %v1855_v12 = vpop.f32.mrf.mxu2 }
 0x5ed   : > { %v1877_v37 = vsel %vm1870_vm5, %v1855_v12, -inf }
 0x5ee   : > { %1878 = vmax.xlane.f32.xlu2 %v1877_v37 }
 0x5f4   : > { %v1857_v39 = vpop.f32.mrf.mxu2 }
 0x5f5   : > { %v1880_v40 = vsel %vm1870_vm5, %v1857_v39, -inf }
 0x5f6   : > { %1881 = vmax.xlane.f32.xlu2 %v1880_v40 }
 0x5fc   : > { %v1860_v45 = vpop.f32.mrf.mxu2 }
 0x5fd   : > { %v1883_v38 = vsel %vm1870_vm5, %v1860_v45, -inf }
 0x5fe   : > { %1884 = vmax.xlane.f32.xlu0 %v1883_v38 }
 0x604   : > { %v1862_v50 = vpop.f32.mrf.mxu2 }
 0x605   : > { %v1886_v51 = vsel %vm1870_vm5, %v1862_v50, -inf }
 0x606   : > { %1887 = vmax.xlane.f32.xlu1 %v1886_v51 }
 0x60c   : > { %v1865_v52 = vpop.f32.mrf.mxu2 }
 0x60d   : > { %v1889_v53 = vsel %vm1870_vm5, %v1865_v52, -inf }
 0x60e   : > { %1890 = vmax.xlane.f32.xlu2 %v1889_v53 }
 0x614   : > { %v1867_v54 = vpop.f32.mrf.mxu2 }
 0x615   : > { %v1892_v55 = vsel %vm1870_vm5, %v1867_v54, -inf }
 0x616   : > { %1893 = vmax.xlane.f32.xlu0 %v1892_v55 }
 0x61c   : > { %v2145_v58 = vpop.f32.mrf.mxu2 }
 0x61d   : > { %v2146_v59 = vadd.f32 %v2145_v58, %v2100_v57 }
 0x61f   : > { %v2150_v60 = vmax.f32 %v2146_v59, 0.0 }
 0x621   : > { %v4361_v61 = vpack.c.bf16 %v2150_v60, %v2150_v60 }
 0x623   : > { %3589 = vmatmul.msk.bf16.vlgmr.msrb.gmra.mxu2 %vm1356_vm0, %v4361_v61 }
 0x624   : > { %v2147_v62 = vpop.f32.mrf.mxu2 }
 0x651   : > { %v1873_v63 = vpop.xlane.xlu1 %1872 }
 0x652   : > { %v1895_v0 = vsub.f32 %v1850_v33, %v1873_v63 }
 0x654   : > { %v1903_v1 = vmul.f32 1.442695, %v1895_v0 }
 0x656   : > { %3828 = vpow2.f32 %v1903_v1 }
 0x659   : > { %v1876_v2 = vpop.xlane.xlu1 %1875 }
 0x65a   : > { %v1896_v3 = vsub.f32 %v1852_v35, %v1876_v2 }
 0x65c   : > { %v3829_v4 = vpop.eup %3828  ;;  %v1905_v5 = vmul.f32 1.442695, %v1896_v3  ;;  %v3500_v3 = vld [vmem:[%s4710_s22 + $0x10] sm:$0xf] }
 0x65d   : > { %v1919_v6 = vsel %vm1870_vm5, %v3829_v4, 0.0 }
 0x65e   : > { %3830 = vpow2.f32 %v1905_v5  ;;  %1920 = vadd.xlane.f32.xlu1 %v1919_v6  ;;  %v3492_v5 = vld [vmem:[%s4710_s22] sm:$0xf] }
 0x661   : > { %v1879_v7 = vpop.xlane.xlu2 %1878 }
 0x662   : > { %v1897_v10 = vsub.f32 %v1855_v12, %v1879_v7  ;;  %v3720_v7 = vld [vmem:[%s4710_s22 + $0x4] sm:$0xf0] }
 0x664   : > { %v3831_v11 = vpop.eup %3830  ;;  %v1907_v13 = vmul.f32 1.442695, %v1897_v10  ;;  %v3493_v10 = vor.u32 %v3720_v7, %v3492_v5  ;;  %v3731_v5 = vld [vmem:[%s4711_s23 + $0x44] sm:$0xf]  ;;  %v3544_v7 = vld [vmem:[%s4711_s23 + $0x48] sm:$0xf0] }
 0x665   : > { %v1922_v14 = vsel %vm1870_vm5, %v3831_v11, 0.0 }
 0x666   : > { %3832 = vpow2.f32 %v1907_v13  ;;  %1923 = vadd.xlane.f32.xlu2 %v1922_v14 }
 0x669   : > { %v1882_v15 = vpop.xlane.xlu2 %1881 }
 0x66a   : > { %v1898_v16 = vsub.f32 %v1857_v39, %v1882_v15 }
 0x66c   : > { %v3833_v19 = vpop.eup %3832  ;;  %v1909_v20 = vmul.f32 1.442695, %v1898_v16 }
 0x66d   : > { %v1925_v21 = vsel %vm1870_vm5, %v3833_v19, 0.0 }
 0x66e   : > { %3834 = vpow2.f32 %v1909_v20  ;;  %1926 = vadd.xlane.f32.xlu0 %v1925_v21  ;;  %v3582_v21 = vld [vmem:[%s4711_s23 + $0x90] sm:$0xf] }
 0x671   : > { %v1885_v22 = vpop.xlane.xlu0 %1884 }
 0x672   : > { %v1899_v24 = vsub.f32 %v1860_v45, %v1885_v22  ;;  %v3742_v22 = vld [vmem:[%s4711_s23 + $0x94] sm:$0xf0] }
 0x674   : > { %v3835_v25 = vpop.eup %3834  ;;  %v1911_v26 = vmul.f32 1.442695, %v1899_v24  ;;  %v3574_v24 = vld [vmem:[%s4711_s23 + $0x80] sm:$0xf] }
 0x675   : > { %v1928_v27 = vsel %vm1870_vm5, %v3835_v25, 0.0 }
 0x676   : > { %3836 = vpow2.f32 %v1911_v26  ;;  %1929 = vadd.xlane.f32.xlu1 %v1928_v27  ;;  %v3740_v26 = vld [vmem:[%s4711_s23 + $0x84] sm:$0xf0] }
 0x677   : > { %v3575_v27 = vor.u32 %v3740_v26, %v3574_v24 }
 0x679   : > { %v1888_v28 = vpop.xlane.xlu1 %1887 }
 0x67a   : > { %v1900_v30 = vsub.f32 %v1862_v50, %v1888_v28 }
 0x67c   : > { %v3837_v29 = vpop.eup %3836  ;;  %v1913_v33 = vmul.f32 1.442695, %v1900_v30 }
 0x67d   : > { %v1931_v34 = vsel %vm1870_vm5, %v3837_v29, 0.0 }
 0x67e   : > { %3838 = vpow2.f32 %v1913_v33  ;;  %1932 = vadd.xlane.f32.xlu2 %v1931_v34 }
 0x681   : > { %v1891_v35 = vpop.xlane.xlu2 %1890 }
 0x682   : > { %v1901_v36 = vsub.f32 %v1865_v52, %v1891_v35 }
 0x684   : > { %v3839_v12 = vpop.eup %3838  ;;  %v1915_v37 = vmul.f32 1.442695, %v1901_v36  ;;  %v3718_v36 = vld [vmem:[%s4713_s7 + $0x8] sm:$0xff] }
 0x685   : > { %v1934_v39 = vsel %vm1870_vm5, %v3839_v12, 0.0  ;;  %2050 = vmatpush.bf16.msra.mxu1 %v3718_v36  ;;  %v3723_v36 = vld [vmem:[%s4711_s23 + $0x4] sm:$0xf] }
 0x686   : > { %3840 = vpow2.f32 %v1915_v37  ;;  %1935 = vadd.xlane.f32.xlu0 %v1934_v39 }
 0x689   : > { %v1894_v40 = vpop.xlane.xlu0 %1893 }
 0x68a   : > { %v1902_v23 = vsub.f32 %v1867_v54, %v1894_v40 }
 0x68c   : > { %v3841_v41 = vpop.eup %3840  ;;  %v1917_v42 = vmul.f32 1.442695, %v1902_v23  ;;  %v3566_v23 = vld [vmem:[%s4711_s23 + $0x70] sm:$0xf] }
 0x68d   : > { %v1937_v45 = vsel %vm1870_vm5, %v3841_v41, 0.0 }
 0x68e   : > { %3842 = vpow2.f32 %v1917_v42  ;;  %1938 = vadd.xlane.f32.xlu1 %v1937_v45  ;;  %v3558_v42 = vld [vmem:[%s4711_s23 + $0x60] sm:$0xf]  ;;  %v3737_v45 = vld [vmem:[%s4711_s23 + $0x74] sm:$0xf] }
 0x694   : > { %v3843_v38 = vpop.eup %3842 }
 0x695   : > { %v1940_v49 = vsel %vm1870_vm5, %v3843_v38, 0.0 }
 0x696   : > { %1941 = vadd.xlane.f32.xlu2 %v1940_v49 }
 0x6a6   : > { %v4373_v47 = vpop.f32.mrf.mxu2 }
 0x6ae   : > { %v2332_v48 = vpop.f32.mrf.mxu2 }
 0x6af   : > { %v3568_v48 = vld [vmem:[%s4711_s23 + $0x78] sm:$0xf0] }
 0x6d1   : > { %v1921_v50 = vpop.xlane.xlu1 %1920 }
 0x6d2   : > { %3844 = vrcp.f32 %v1921_v50  ;;  %v3571_v50 = vor.u32 %v3737_v45, %v3568_v48 }
 0x6d8   : > { %v3845_v52 = vpop.eup %3844 }
 0x6d9   : > { %v1924_v51 = vpop.xlane.xlu2 %1923  ;;  %v1951_v54 = vmul.f32 %v3845_v52, %v3829_v4  ;;  %v3722_v4 = vld [vmem:[%s4710_s22 + $0x14] sm:$0xf0] }
 0x6da   : > { %3846 = vrcp.f32 %v1924_v51  ;;  %v3501_v6 = vor.u32 %v3722_v4, %v3500_v3  ;;  %v3550_v51 = vld [vmem:[%s4711_s23 + $0x50] sm:$0xf]  ;;  %v3734_v52 = vld [vmem:[%s4711_s23 + $0x54] sm:$0xf0] }
 0x6db   : > { %v3534_v3 = vld [vmem:[%s4711_s23 + $0x30] sm:$0xf]  ;;  %v3730_v4 = vld [vmem:[%s4711_s23 + $0x34] sm:$0xf0] }
 0x6dc   : > { %2129 = vmatpush.bf16.msra.mxu3 %v3501_v6  ;;  %v3535_v6 = vor.u32 %v3730_v4, %v3534_v3 }
 0x6e0   : > { %v3847_v53 = vpop.eup %3846  ;;  %2130 = vmatpush.bf16.msra.mxu3 %v3493_v10  ;;  %v3547_v10 = vor.u32 %v3731_v5, %v3544_v7  ;;  %v3746_v5 = vld [vmem:[%s4716_s18 + $0x18] sm:$0xff] }
 0x6e1   : > { %v1952_v55 = vmul.f32 %v3847_v53, %v3831_v11  ;;  %v1927_v58 = vpop.xlane.xlu0 %1926  ;;  %v3735_v53 = vld [vmem:[%s4711_s23 + $0x64] sm:$0xf] }
 0x6e2   : > { %3848 = vrcp.f32 %v1927_v58  ;;  %v3542_v58 = vld [vmem:[%s4711_s23 + $0x40] sm:$0xf] }
 0x6e3   : > { %v1959_v57 = vpack.c.bf16 %v1952_v55, %v1951_v54  ;;  %v3551_v54 = vor.u32 %v3734_v52, %v3550_v51  ;;  %v3560_v55 = vld [vmem:[%s4711_s23 + $0x68] sm:$0xf0] }
 0x6e4   : > { %v3754_v52 = vld [vmem:[%s4714_s10 + $0x8] sm:$0xff] }
 0x6e5   : > { %3474 = vmatmul.msk.bf16.vlgmr.msrb.gmra.mxu0 %vm1870_vm5, %v1959_v57  ;;  %v3563_v57 = vor.u32 %v3735_v53, %v3560_v55  ;;  %v3753_v53 = vld [vmem:[%s4714_s10] sm:$0xff] }
 0x6e6   : > { %v3818_v55 = vld [vmem:[%s4715_s11] ss:$0 sm:$0xff]  ;;  %s4718_s11 = sld [smem:[#allocation15_spill]] }
 0x6e8   : > { %v3849_v60 = vpop.eup %3848 }
 0x6e9   : > { %v1930_v59 = vpop.xlane.xlu1 %1929  ;;  %v1953_v63 = vmul.f32 %v3849_v60, %v3833_v19  ;;  %v3733_v60 = vld [vmem:[%s4711_s23 + $0x54] sm:$0xf] }
 0x6ea   : > { %3850 = vrcp.f32 %v1930_v59  ;;  %v3732_v59 = vld [vmem:[%s4711_s23 + $0x44] sm:$0xf0] }
 0x6f0   : > { %v3851_v62 = vpop.eup %3850 }
 0x6f1   : > { %v1954_v0 = vmul.f32 %v3851_v62, %v3835_v25  ;;  %v1933_v2 = vpop.xlane.xlu2 %1932  ;;  %v3583_v25 = vor.u32 %v3742_v22, %v3582_v21  ;;  %v3543_v62 = vor.u32 %v3732_v59, %v3542_v58  ;;  %v3726_v21 = vld [vmem:[%s4711_s23 + $0x14] sm:$0xf0]  ;;  %v3727_v22 = vld [vmem:[%s4711_s23 + $0x24] sm:$0xf] }
 0x6f2   : > { %3852 = vrcp.f32 %v1933_v2  ;;  %v3750_v59 = vld [vmem:[%s4716_s18 + $0x38] sm:$0xff] }
 0x6f3   : > { %v1960_v1 = vpack.c.bf16 %v1954_v0, %v1953_v63  ;;  %v3552_v63 = vld [vmem:[%s4711_s23 + $0x58] sm:$0xf0] }
 0x6f5   : > { %3475 = vmatmul.msk.bf16.gmra.mxu0 %vm1870_vm5, %v1960_v1  ;;  %v3555_v1 = vor.u32 %v3733_v60, %v3552_v63 }
 0x6f8   : > { %v3853_v13 = vpop.eup %3852 }
 0x6f9   : > { %v1936_v11 = vpop.xlane.xlu0 %1935  ;;  %v1955_v15 = vmul.f32 %v3853_v13, %v3837_v29  ;;  %v3728_v13 = vld [vmem:[%s4711_s23 + $0x24] sm:$0xf0] }
 0x6fa   : > { %3854 = vrcp.f32 %v1936_v11  ;;  %v3526_v11 = vld [vmem:[%s4711_s23 + $0x20] sm:$0xf] }
 0x700   : > { %v3855_v14 = vpop.eup %3854 }
 0x701   : > { %v1956_v16 = vmul.f32 %v3855_v14, %v3839_v12  ;;  %v1939_v20 = vpop.xlane.xlu1 %1938  ;;  %v3717_v12 = vld [vmem:[%s4713_s7] sm:$0xff]  ;;  %v3729_v14 = vld [vmem:[%s4711_s23 + $0x34] sm:$0xf] }
 0x702   : > { %3856 = vrcp.f32 %v1939_v20  ;;  %2051 = vmatpush.bf16.msra.mxu1 %v3717_v12  ;;  %v3518_v20 = vld [vmem:[%s4711_s23 + $0x10] sm:$0xf]  ;;  %v3512_v12 = vld [vmem:[%s4711_s23 + $0x8] sm:$0xf0] }
 0x703   : > { %v1961_v19 = vpack.c.bf16 %v1956_v16, %v1955_v15  ;;  %v3527_v15 = vor.u32 %v3728_v13, %v3526_v11  ;;  %v3536_v16 = vld [vmem:[%s4711_s23 + $0x38] sm:$0xf0]  ;;  %v3519_v24 = vor.u32 %v3726_v21, %v3518_v20  ;;  %v3745_v11 = vld [vmem:[%s4716_s18 + $0x10] sm:$0xff]  ;;  %v3744_v13 = vld [vmem:[%s4716_s18 + $0x8] sm:$0xff] }
 0x704   : > { %v2521_v21 = vld [vmem:[%s4717_s28 + $0x18] sm:$0xff] }
 0x705   : > { %3476 = vmatmul.msk.bf16.vlgmr.msrb.gmra.mxu3 %vm1870_vm5, %v1961_v19  ;;  %v3539_v19 = vor.u32 %v3729_v14, %v3536_v16  ;;  %v3743_v14 = vld [vmem:[%s4716_s18] sm:$0xff]  ;;  %2558 = vmatpush.msra.mxu2 %v2521_v21 }
 0x706   : > { %2301 = vmatpush.bf16.msrb.mxu3 %v3583_v25  ;;  %2308 = vmatpush.bf16.msrb.mxu1 %v3571_v50  ;;  %v3528_v25 = vld [vmem:[%s4711_s23 + $0x28] sm:$0xf0] }
 0x707   : > { %v3531_v26 = vor.u32 %v3727_v22, %v3528_v25  ;;  %v2520_v22 = vld [vmem:[%s4717_s28 + $0x10] sm:$0xff] }
 0x708   : > { %v3857_v30 = vpop.eup %3856  ;;  %2559 = vmatpush.msra.mxu2 %v2520_v22 }
 0x709   : > { %v1942_v28 = vpop.xlane.xlu2 %1941  ;;  %v1957_v33 = vmul.f32 %v3857_v30, %v3841_v41  ;;  %v3738_v41 = vld [vmem:[%s4711_s23 + $0x74] sm:$0xf0]  ;;  %v3724_v30 = vld [vmem:[%s4711_s23 + $0x4] sm:$0xf0] }
 0x70a   : > { %3858 = vrcp.f32 %v1942_v28  ;;  %2302 = vmatpush.bf16.msrb.mxu3 %v3575_v27  ;;  %2309 = vmatpush.bf16.msrb.mxu1 %v3563_v57  ;;  %v3510_v28 = vld [vmem:[%s4711_s23] sm:$0xf] }
 0x70e   : > { %2310 = vmatpush.bf16.msrb.mxu1 %v3555_v1 }
 0x710   : > { %v3859_v29 = vpop.eup %3858 }
 0x711   : > { %v1958_v34 = vmul.f32 %v3859_v29, %v3843_v38  ;;  %v3725_v29 = vld [vmem:[%s4711_s23 + $0x14] sm:$0xf] }
 0x712   : > { %2311 = vmatpush.bf16.msrb.mxu1 %v3547_v10 }
 0x713   : > { %v1962_v35 = vpack.c.bf16 %v1958_v34, %v1957_v33  ;;  %v3511_v33 = vor.u32 %v3724_v30, %v3510_v28  ;;  %v3520_v34 = vld [vmem:[%s4711_s23 + $0x18] sm:$0xf0]  ;;  %v2173_v28 = vld [vmem:[%s4718_s11] sm:$0x3]  ;;  %s4719_s11 = sld [smem:[#allocation19_spill]] }
 0x715   : > { %3477 = vmatmul.msk.bf16.gmra.mxu3 %vm1870_vm5, %v1962_v35  ;;  %v3523_v35 = vor.u32 %v3725_v29, %v3520_v34 }
 0x716   : > { %2312 = vmatpush.bf16.msrb.mxu1 %v3539_v19 }
 0x71a   : > { %2313 = vmatpush.bf16.msrb.mxu1 %v3531_v26 }
 0x71e   : > { %2314 = vmatpush.bf16.msrb.mxu1 %v3523_v35 }
 0x725   : > { %3506 = vmatmul.msk.bf16.vlgmr.msra.gmra.mxu3 %vm1356_vm0, %v4324_v46  ;;  %v3567_v46 = vor.u32 %v3738_v41, %v3566_v23 }
 0x726   : > { %2425 = vmatpush.bf16.msra.mxu3 %v3750_v59 }
 0x727   : > { %2282 = vmatpush.bf16.msra.mxu0 %v3567_v46 }
 0x735   : > { %3588 = vmatmul.msk.bf16.vlgmr.msrb.gmra.mxu3 %vm1356_vm0, %v4361_v61  ;;  %v3736_v61 = vld [vmem:[%s4711_s23 + $0x64] sm:$0xf0] }
 0x736   : > { %v3559_v49 = vor.u32 %v3736_v61, %v3558_v42  ;;  %v2099_v42 = vperm.slane %v4358_v56, 0 }
 0x738   : > { %2283 = vmatpush.bf16.msra.mxu0 %v3559_v49 }
 0x73c   : > { %2284 = vmatpush.bf16.msra.mxu0 %v3551_v54 }
 0x740   : > { %2285 = vmatpush.bf16.msra.mxu0 %v3543_v62 }
 0x744   : > { %2286 = vmatpush.bf16.msra.mxu0 %v3535_v6 }
 0x748   : > { %2287 = vmatpush.bf16.msra.mxu0 %v3527_v15  ;;  %v3752_v15 = vld [vmem:[%s4716_s18 + $0x48] sm:$0xff] }
 0x74c   : > { %2288 = vmatpush.bf16.msra.mxu0 %v3519_v24 }
 0x750   : > { %2289 = vmatpush.bf16.msra.mxu0 %v3511_v33  ;;  %v2175_v33 = vperm.slane %v2173_v28, 0 }
 0x754   : > { %2444 = vmatpush.bf16.msrb.mxu0 %v3752_v15  ;;  %v2993_v15 = vld [vmem:[%s4722_s1 + $0x20] sm:$0xff] }
 0x762   : > { %v1992_v37 = vpop.f32.mrf.mxu0 }
 0x76a   : > { %v1994_v39 = vpop.f32.mrf.mxu0 }
 0x76b   : > { %v2016_v40 = vpack.c.bf16 %v1994_v39, %v1992_v37  ;;  %v3515_v37 = vor.u32 %v3723_v36, %v3512_v12 }
 0x76d   : > { %3486 = vmatmul.msk.bf16.vlgmr.msra.gmra.mxu1 %vm1356_vm0, %v2016_v40 }
 0x76e   : > { %2315 = vmatpush.bf16.msrb.mxu1 %v3515_v37  ;;  %v2176_v37 = vperm.slane %v2173_v28, 1 }
 0x772   : > { %v1997_v38 = vpop.f32.mrf.mxu0  ;;  %2495 = vmatpush.bf16.msra.mxu1 %v3754_v52 }
 0x776   : > { %2496 = vmatpush.bf16.msra.mxu1 %v3753_v53 }
 0x77a   : > { %v1999_v0 = vpop.f32.mrf.mxu0 }
 0x77b   : > { %v2017_v2 = vpack.c.bf16 %v1999_v0, %v1997_v38  ;;  %v3749_v0 = vld [vmem:[%s4716_s18 + $0x30] sm:$0xff] }
 0x77c   : > { %2426 = vmatpush.bf16.msra.mxu3 %v3749_v0 }
 0x77d   : > { %3487 = vmatmul.msk.bf16.gmra.mxu1 %vm1356_vm0, %v2017_v2  ;;  %v3748_v2 = vld [vmem:[%s4716_s18 + $0x28] sm:$0xff] }
 0x780   : > { %2427 = vmatpush.bf16.msra.mxu3 %v3748_v2  ;;  %v3820_v2 = vld [vmem:[%s4720_s0] ss:$0 sm:$0xff]  ;;  %s4723_s0 = sld [smem:[#allocation23_spill]] }
 0x788   : > { %v2002_v27 = vpop.f32.mrf.mxu3 }
 0x790   : > { %v2004_v39 = vpop.f32.mrf.mxu3 }
 0x791   : > { %v2018_v40 = vpack.c.bf16 %v2004_v39, %v2002_v27 }
 0x793   : > { %3488 = vmatmul.msk.bf16.gmra.mxu1 %vm1356_vm0, %v2018_v40 }
 0x798   : > { %v2007_v23 = vpop.f32.mrf.mxu3 }
 0x7a0   : > { %v2009_v41 = vpop.f32.mrf.mxu3 }
 0x7a1   : > { %v2019_v46 = vpack.c.bf16 %v2009_v41, %v2007_v23 }
 0x7a3   : > { %3489 = vmatmul.msk.bf16.gmra.mxu1 %vm1356_vm0, %v2019_v46 }
 0x7a8   : > { %v2132_v61 = vpop.f32.mrf.mxu3 }
 0x7a9   : > { %v2133_v45 = vadd.f32 %v2132_v61, %v2099_v42 }
 0x7ab   : > { %v2149_v38 = vmax.f32 %v2133_v45, 0.0 }
 0x7ad   : > { %v2171_v49 = vpack.c.bf16 %v2149_v38, %v2149_v38  ;;  %v2519_v38 = vld [vmem:[%s4717_s28 + $0x8] sm:$0xff] }
 0x7ae   : > { %2560 = vmatpush.msra.mxu2 %v2519_v38 }
 0x7af   : > { %2290 = vmatmul.bf16.vlgmr.msra.gmra.mxu0 %v2171_v49 }
 0x7b0   : > { %v2134_v48 = vpop.f32.mrf.mxu3 }
 0x7b1   : > { %v3819_v48 = vld [vmem:[%s4719_s11] ss:$0 sm:$0xff]  ;;  %s4721_s11 = sld [smem:[#allocation25_spill]] }
 0x7b3   : > { %2316 = vmatmul.bf16.vlgmr.msrb.gmra.mxu1 %v2171_v49  ;;  %v2518_v49 = vld [vmem:[%s4717_s28] sm:$0xff] }
 0x7b4   : > { %2561 = vmatpush.msra.mxu2 %v2518_v49 }
 0x7b8   : > { %v4430_v50 = vpop.f32.mrf.mxu3 }
 0x7c0   : > { %v2306_v51 = vpop.f32.mrf.mxu3 }
 0x7ea   : > { %v2053_v54 = vpop.f32.mrf.mxu1 }
 0x7eb   : > { %v2073_v56 = vadd.f32 %v2053_v54, %v4203_v8  ;;  %v3747_v8 = vld [vmem:[%s4716_s18 + $0x20] sm:$0xff] }
 0x7ec   : > { %2428 = vmatpush.bf16.msra.mxu3 %v3747_v8 }
 0x7ed   : > { %v2085_v60 = vadd.f32 %v3818_v55, %v2073_v56 }
 0x7f0   : > { %2429 = vmatpush.bf16.msra.mxu3 %v3746_v5 }
 0x7f2   : > { %v2055_v57 = vpop.f32.mrf.mxu1 }
 0x7f3   : > { %v2074_v58 = vadd.f32 %v2055_v57, %v4205_v9 }
 0x7f4   : > { %2430 = vmatpush.bf16.msra.mxu3 %v3745_v11 }
 0x7f5   : > { %v2086_v62 = vadd.f32 %v3818_v55, %v2074_v58 }
 0x7f7   : > { %v2457_v63 = vpack.c.bf16 %v2086_v62, %v2085_v60 }
 0x7f8   : > { %2431 = vmatpush.bf16.msra.mxu3 %v3744_v13  ;;  %v2990_v13 = vld [vmem:[%s4722_s1 + $0x8] sm:$0xff] }
 0x7f9   : > { %3639 = vmatmul.msk.bf16.vlgmr.msra.gmra.mxu1 %vm1356_vm0, %v2457_v63 }
 0x7fa   : > { %v2058_v1 = vpop.f32.mrf.mxu1 }
 0x7fb   : > { %v2075_v3 = vadd.f32 %v2058_v1, %v4217_v17 }
 0x7fc   : > { %2432 = vmatpush.bf16.msra.mxu3 %v3743_v14  ;;  %v2992_v14 = vld [vmem:[%s4722_s1 + $0x18] sm:$0xff] }
 0x7fd   : > { %v2087_v6 = vadd.f32 %v3818_v55, %v2075_v3 }
 0x802   : > { %v2060_v9 = vpop.f32.mrf.mxu1 }
 0x803   : > { %v2076_v4 = vadd.f32 %v2060_v9, %v4219_v18  ;;  %v3751_v18 = vld [vmem:[%s4716_s18 + $0x40] sm:$0xff] }
 0x804   : > { %2445 = vmatpush.bf16.msrb.mxu0 %v3751_v18  ;;  %v2994_v18 = vld [vmem:[%s4722_s1 + $0x28] sm:$0xff] }
 0x805   : > { %v2088_v7 = vadd.f32 %v3818_v55, %v2076_v4  ;;  %v2997_v4 = vld [vmem:[%s4721_s11] sm:$0x1f]  ;;  %s4725_s11 = sld [smem:[#allocation22_spill]] }
 0x807   : > { %v2458_v10 = vpack.c.bf16 %v2088_v7, %v2087_v6  ;;  %v2989_v7 = vld [vmem:[%s4722_s1] sm:$0xff] }
 0x808   : > { %2639 = vmatpush.msra.mxu0 %v2521_v21 }
 0x809   : > { %3640 = vmatmul.msk.bf16.gmra.mxu1 %vm1356_vm0, %v2458_v10 }
 0x80a   : > { %2640 = vmatpush.msra.mxu0 %v2520_v22 }
 0x80c   : > { %2641 = vmatpush.msra.mxu0 %v2519_v38 }
 0x80e   : > { %2642 = vmatpush.msra.mxu0 %v2518_v49 }
 0x810   : > { %v2063_v17 = vpop.f32.mrf.mxu1 }
 0x811   : > { %v2077_v16 = vadd.f32 %v2063_v17, %v4239_v31  ;;  %v2991_v17 = vld [vmem:[%s4722_s1 + $0x10] sm:$0xff] }
 0x813   : > { %v2089_v24 = vadd.f32 %v3818_v55, %v2077_v16  ;;  %v2995_v16 = vld [vmem:[%s4722_s1 + $0x30] sm:$0xff] }
 0x818   : > { %v2065_v19 = vpop.f32.mrf.mxu1 }
 0x819   : > { %v2078_v20 = vadd.f32 %v2065_v19, %v4241_v32  ;;  %v2996_v19 = vld [vmem:[%s4722_s1 + $0x38] sm:$0xff] }
 0x81b   : > { %v2090_v25 = vadd.f32 %v3818_v55, %v2078_v20 }
 0x81d   : > { %v2459_v26 = vpack.c.bf16 %v2090_v25, %v2089_v24 }
 0x81f   : > { %3641 = vmatmul.msk.bf16.gmra.mxu1 %vm1356_vm0, %v2459_v26 }
 0x820   : > { %v2068_v27 = vpop.f32.mrf.mxu1 }
 0x821   : > { %v2079_v30 = vadd.f32 %v2068_v27, %v4258_v43 }
 0x823   : > { %v2091_v32 = vadd.f32 %v3818_v55, %v2079_v30 }
 0x828   : > { %v2070_v29 = vpop.f32.mrf.mxu1 }
 0x829   : > { %v2080_v31 = vadd.f32 %v2070_v29, %v4260_v44 }
 0x82b   : > { %v2092_v34 = vadd.f32 %v3818_v55, %v2080_v31 }
 0x82c   : > { %v2291_v35 = vpop.f32.mrf.mxu0 }
 0x82d   : > { %v2460_v36 = vpack.c.bf16 %v2092_v34, %v2091_v32  ;;  %v2292_v12 = vadd.f32 %v2291_v35, %v2175_v33  ;;  %v3071_v32 = vld [vmem:[%s4162_s20 + $0x10] sm:$0xf]  ;;  %v3070_v34 = vld [vmem:[%s4162_s20 + $0x8] sm:$0xff]  ;;  %v3069_v35 = vld [vmem:[%s4162_s20] sm:$0xff] }
 0x82e   : > { %3680 = vmatpush.msk.msrb.mxu2 %vm1977_vm4, %v3071_v32 }
 0x82f   : > { %v2305_v39 = vadd.f32 %v4430_v50, %v2292_v12  ;;  %3642 = vmatmul.msk.bf16.gmra.mxu1 %vm1356_vm0, %v2460_v36 }
 0x830   : > { %v2317_v40 = vpop.f32.mrf.mxu1  ;;  %3114 = vmatpush.msrb.mxu2 %v3070_v34 }
 0x831   : > { %v2334_v23 = vmax.f32 %v2305_v39, 0.0  ;;  %v2318_v43 = vadd.f32 %v2317_v40, %v2176_v37 }
 0x832   : > { %3115 = vmatpush.msrb.mxu2 %v3069_v35 }
 0x833   : > { %v2356_v41 = vpack.c.bf16 %v2334_v23, %v2334_v23  ;;  %v2331_v44 = vadd.f32 %v4373_v47, %v2318_v43 }
 0x834   : > { %v2293_v46 = vpop.f32.mrf.mxu0 }
 0x835   : > { %v2335_v42 = vmax.f32 %v2331_v44, 0.0  ;;  %2433 = vmatmul.bf16.vlgmr.msra.gmra.mxu3 %v2356_v41 }
 0x837   : > { %v2357_v61 = vpack.c.bf16 %v2335_v42, %v2335_v42 }
 0x838   : > { %v2319_v45 = vpop.f32.mrf.mxu1 }
 0x839   : > { %3630 = vmatmul.msk.bf16.vlgmr.msrb.gmra.mxu0 %vm1356_vm0, %v2357_v61 }
 0x876   : > { %v2498_v50 = vpop.f32.mrf.mxu1 }
 0x877   : > { %v2499_v51 = vadd.f32 %v3819_v48, %v2498_v50 }
 0x879   : > { %3643 = vmatmul.msk.f32.vlgmr.msra.gmra.mxu2 %vm1356_vm0, %v2499_v51 }
 0x87e   : > { %v2500_v52 = vpop.f32.mrf.mxu1 }
 0x87f   : > { %v2501_v47 = vadd.f32 %v3819_v48, %v2500_v52 }
 0x881   : > { %3644 = vmatmul.msk.f32.gmra.mxu2 %vm1356_vm0, %v2501_v47 }
 0x886   : > { %v2503_v53 = vpop.f32.mrf.mxu1 }
 0x887   : > { %v2504_v54 = vadd.f32 %v3819_v48, %v2503_v53 }
 0x889   : > { %3645 = vmatmul.msk.f32.gmra.mxu2 %vm1356_vm0, %v2504_v54 }
 0x88e   : > { %v2505_v56 = vpop.f32.mrf.mxu1 }
 0x88f   : > { %v2506_v55 = vadd.f32 %v3819_v48, %v2505_v56 }
 0x891   : > { %3646 = vmatmul.msk.f32.gmra.mxu2 %vm1356_vm0, %v2506_v55 }
 0x89c   : > { %v2508_v57 = vpop.f32.mrf.mxu1 }
 0x89d   : > { %v4470_v58 = vadd.f32 %v3819_v48, %v2508_v57 }
 0x89f   : > { %3647 = vmatmul.msk.f32.gmra.mxu2 %vm1356_vm0, %v4470_v58 }
 0x8a4   : > { %v2510_v59 = vpop.f32.mrf.mxu1 }
 0x8a5   : > { %v4474_v60 = vadd.f32 %v3819_v48, %v2510_v59 }
 0x8a7   : > { %3648 = vmatmul.msk.f32.gmra.mxu2 %vm1356_vm0, %v4474_v60 }
 0x8ac   : > { %v2513_v62 = vpop.f32.mrf.mxu1 }
 0x8ad   : > { %v4478_v63 = vadd.f32 %v3819_v48, %v2513_v62 }
 0x8af   : > { %3649 = vmatmul.msk.f32.gmra.mxu2 %vm1356_vm0, %v4478_v63 }
 0x8b4   : > { %v2515_v0 = vpop.f32.mrf.mxu1 }
 0x8b5   : > { %v4482_v1 = vadd.f32 %v3819_v48, %v2515_v0 }
 0x8b6   : > { %v2447_v8 = vpop.f32.mrf.mxu0 }
 0x8b7   : > { %3650 = vmatmul.msk.f32.gmra.mxu2 %vm1356_vm0, %v4482_v1 }
 0x8b8   : > { %v2434_v3 = vpop.f32.mrf.mxu3 }
 0x8b9   : > { %v2435_v9 = vadd.f32 %v3820_v2, %v2434_v3  ;;  %v3756_v2 = vld [vmem:[%s4723_s0 + $0x8] sm:$0xff] }
 0x8ba   : > { %2894 = vmatpush.bf16.msrb.mxu3 %v3756_v2 }
 0x8bb   : > { %v2448_v5 = vadd.f32 %v2447_v8, %v2435_v9 }
 0x8bd   : > { %2452 = vst.msk [vmem:[%s1292_s2] sm:$0x1] %vm2451_vm6, %v2448_v5  ;;  %v2998_v6 = vmul.f32 %v2997_v4, %v2448_v5  ;;  %s4724_s2 = sld [smem:[#allocation21_spill]] }
 0x8be   : > { %v2449_v10 = vpop.f32.mrf.mxu0 }
 0x8bf   : > { %3671 = vmatpush.msk.msrb.mxu1 %vm3024_vm7, %v2998_v6  ;;  %v3755_v10 = vld [vmem:[%s4723_s0] sm:$0xff] }
 0x8c0   : > { %v2436_v11 = vpop.f32.mrf.mxu3  ;;  %3672 = vmatmul.msk.f32.vlgmr.msrb.gmra.mxu1 %vm2999_vm8, %v2989_v7  ;;  %v4568_v7 = vld [vmem:[%s4725_s11] ss:$0 sm:$0xff]  ;;  %2895 = vmatpush.bf16.msrb.mxu3 %v3755_v10  ;;  %s4727_s11 = sshll.u32 %s4729_s16, 6 }
 0x8c3   : > { %v4564_v9 = vld [vmem:[%s4724_s2] ss:$0 sm:$0xff]  ;;  %s4726_s2 = sld [smem:[#allocation24_spill]] }
 0x8c8   : > { %3673 = vmatmul.msk.f32.gmra.mxu1 %vm2999_vm8, %v2990_v13 }
 0x8d0   : > { %3674 = vmatmul.msk.f32.gmra.mxu1 %vm2999_vm8, %v2991_v17 }
 0x8d8   : > { %3675 = vmatmul.msk.f32.gmra.mxu1 %vm2999_vm8, %v2992_v14 }
 0x8e0   : > { %3676 = vmatmul.msk.f32.gmra.mxu1 %vm2999_vm8, %v2993_v15 }
 0x8e8   : > { %3677 = vmatmul.msk.f32.gmra.mxu1 %vm2999_vm8, %v2994_v18 }
 0x8f0   : > { %3678 = vmatmul.msk.f32.gmra.mxu1 %vm2999_vm8, %v2995_v16 }
 0x8f8   : > { %3679 = vmatmul.msk.f32.gmra.mxu1 %vm2999_vm8, %v2996_v19 }
 0x8fc   : > { %v2563_v20 = vpop.f32.mrf.mxu2 }
 0x8fd   : > { %v4506_v21 = vsub.f32 %v2499_v51, %v2563_v20 }
 0x8ff   : > { %v2595_v22 = vmul.f32 %v4506_v21, %v4506_v21 }
 0x901   : > { %3651 = vmatmul.msk.f32.vlgmr.msra.gmra.mxu0 %vm1356_vm0, %v2595_v22 }
 0x904   : > { %v2566_v24 = vpop.f32.mrf.mxu2 }
 0x905   : > { %v4511_v25 = vsub.f32 %v2501_v47, %v2566_v24 }
 0x907   : > { %v2596_v26 = vmul.f32 %v4511_v25, %v4511_v25 }
 0x909   : > { %3652 = vmatmul.msk.f32.gmra.mxu0 %vm1356_vm0, %v2596_v26 }
 0x90c   : > { %v2569_v27 = vpop.f32.mrf.mxu2 }
 0x90d   : > { %v4516_v28 = vsub.f32 %v2504_v54, %v2569_v27 }
 0x90f   : > { %v2597_v30 = vmul.f32 %v4516_v28, %v4516_v28 }
 0x911   : > { %3653 = vmatmul.msk.f32.gmra.mxu0 %vm1356_vm0, %v2597_v30 }
 0x914   : > { %v2572_v29 = vpop.f32.mrf.mxu2 }
 0x915   : > { %v4521_v31 = vsub.f32 %v2506_v55, %v2572_v29 }
 0x917   : > { %v2598_v33 = vmul.f32 %v4521_v31, %v4521_v31 }
 0x919   : > { %3654 = vmatmul.msk.f32.gmra.mxu0 %vm1356_vm0, %v2598_v33 }
 0x922   : > { %v2575_v36 = vpop.f32.mrf.mxu2 }
 0x923   : > { %v4531_v12 = vsub.f32 %v4470_v58, %v2575_v36 }
 0x925   : > { %v2599_v37 = vmul.f32 %v4531_v12, %v4531_v12 }
 0x927   : > { %3655 = vmatmul.msk.f32.gmra.mxu0 %vm1356_vm0, %v2599_v37 }
 0x92a   : > { %v2578_v39 = vpop.f32.mrf.mxu2 }
 0x92b   : > { %v4537_v40 = vsub.f32 %v4474_v60, %v2578_v39 }
 0x92d   : > { %v2600_v23 = vmul.f32 %v4537_v40, %v4537_v40 }
 0x92f   : > { %3656 = vmatmul.msk.f32.gmra.mxu0 %vm1356_vm0, %v2600_v23 }
 0x932   : > { %v2581_v43 = vpop.f32.mrf.mxu2 }
 0x933   : > { %v4543_v41 = vsub.f32 %v4478_v63, %v2581_v43 }
 0x935   : > { %v2601_v44 = vmul.f32 %v4543_v41, %v4543_v41 }
 0x937   : > { %3657 = vmatmul.msk.f32.gmra.mxu0 %vm1356_vm0, %v2601_v44 }
 0x93a   : > { %v2584_v46 = vpop.f32.mrf.mxu2 }
 0x93b   : > { %v4549_v42 = vsub.f32 %v4482_v1, %v2584_v46 }
 0x93d   : > { %v2602_v61 = vmul.f32 %v4549_v42, %v4549_v42  ;;  %v3045_v45 = vpop.f32.mrf.mxu1 }
 0x93e   : > { %3681 = vmatmul.msk.f32.vlgmr.msrb.gmra.mxu2 %vm3072_vm9, %v3045_v45 }
 0x93f   : > { %3658 = vmatmul.msk.f32.gmra.mxu0 %vm1356_vm0, %v2602_v61 }
 0x945   : > { %v3048_v38 = vpop.f32.mrf.mxu1 }
 0x946   : > { %3682 = vmatmul.msk.f32.gmra.mxu2 %vm3072_vm9, %v3048_v38 }
 0x94d   : > { %v3051_v49 = vpop.f32.mrf.mxu1 }
 0x94e   : > { %3683 = vmatmul.msk.f32.gmra.mxu2 %vm3072_vm9, %v3051_v49 }
 0x955   : > { %v3054_v48 = vpop.f32.mrf.mxu1 }
 0x956   : > { %3684 = vmatmul.msk.f32.gmra.mxu2 %vm3072_vm9, %v3054_v48 }
 0x95d   : > { %v3057_v50 = vpop.f32.mrf.mxu1 }
 0x95e   : > { %3685 = vmatmul.msk.f32.gmra.mxu2 %vm3072_vm9, %v3057_v50 }
 0x965   : > { %v3060_v51 = vpop.f32.mrf.mxu1 }
 0x966   : > { %3686 = vmatmul.msk.f32.gmra.mxu2 %vm3072_vm9, %v3060_v51 }
 0x96d   : > { %v3063_v52 = vpop.f32.mrf.mxu1 }
 0x96e   : > { %3687 = vmatmul.msk.f32.gmra.mxu2 %vm3072_vm9, %v3063_v52 }
 0x975   : > { %v3066_v47 = vpop.f32.mrf.mxu1 }
 0x976   : > { %3688 = vmatmul.msk.f32.gmra.mxu2 %vm3072_vm9, %v3066_v47 }
 0x97e   : > { %v2644_v53 = vpop.f32.mrf.mxu0 }
 0x97f   : > { %v2645_v54 = vadd.f32 1e-06, %v2644_v53 }
 0x981   : > { %3860 = vrsqrt.f32 %v2645_v54  ;;  %vm2674_vm11 = vweird.f32 %v2645_v54 }
 0x986   : > { %v2647_v56 = vpop.f32.mrf.mxu0 }
 0x987   : > { %v3861_v55 = vpop.eup %3860  ;;  %v2648_v57 = vadd.f32 1e-06, %v2647_v56 }
 0x988   : > { %v2669_v58 = vmul.f32 %v3861_v55, %v2645_v54  ;;  %vm2675_vm10 = vweird.f32 %v3861_v55 }
 0x989   : > { %3862 = vrsqrt.f32 %v2648_v57  ;;  %vm2676_vm12 = vmor %vm2674_vm11, %vm2675_vm10  ;;  %vm2684_vm14 = vweird.f32 %v2648_v57 }
 0x98a   : > { %v2670_v59 = vmul.f32 %v3861_v55, %v2669_v58 }
 0x98c   : > { %v2671_v60 = vmul.f32 0.5, %v2670_v59 }
 0x98e   : > { %v2672_v62 = vsub.f32 1.5, %v2671_v60  ;;  %v2650_v63 = vpop.f32.mrf.mxu0 }
 0x98f   : > { %v3863_v0 = vpop.eup %3862  ;;  %v2651_v1 = vadd.f32 1e-06, %v2650_v63 }
 0x990   : > { %v2673_v8 = vmul.f32 %v3861_v55, %v2672_v62  ;;  %v2679_v3 = vmul.f32 %v3863_v0, %v2648_v57  ;;  %vm2685_vm13 = vweird.f32 %v3863_v0 }
 0x991   : > { %3864 = vrsqrt.f32 %v2651_v1  ;;  %vm2686_vm15 = vmor %vm2684_vm14, %vm2685_vm13  ;;  %vm2694_vm3 = vweird.f32 %v2651_v1 }
 0x992   : > { %v2677_v4 = vsel %vm2676_vm12, %v3861_v55, %v2673_v8  ;;  %v2680_v5 = vmul.f32 %v3863_v0, %v2679_v3 }
 0x993   : > { %v2748_v6 = vmul.f32 %v2677_v4, %v4506_v21 }
 0x994   : > { %v2681_v11 = vmul.f32 0.5, %v2680_v5 }
 0x995   : > { %v2760_v13 = vmul.f32 %v4564_v9, %v2748_v6 }
 0x996   : > { %v2682_v17 = vsub.f32 1.5, %v2681_v11  ;;  %v2653_v14 = vpop.f32.mrf.mxu0 }
 0x997   : > { %v3865_v15 = vpop.eup %3864  ;;  %v2772_v18 = vadd.f32 %v4568_v7, %v2760_v13  ;;  %v2654_v16 = vadd.f32 1e-06, %v2653_v14 }
 0x998   : > { %v2683_v19 = vmul.f32 %v3863_v0, %v2682_v17  ;;  %v2689_v20 = vmul.f32 %v3865_v15, %v2651_v1  ;;  %vm2695_vm1 = vweird.f32 %v3865_v15 }
 0x999   : > { %3866 = vrsqrt.f32 %v2654_v16  ;;  %v2788_v21 = vmul.f32 0.044715, %v2772_v18  ;;  %vm2696_vm4 = vmor %vm2694_vm3, %vm2695_vm1  ;;  %vm2704_vm6 = vweird.f32 %v2654_v16  ;;  %v2780_v5 = vmul.f32 0.5, %v2772_v18 }
 0x99a   : > { %v2687_v22 = vsel %vm2686_vm15, %v3863_v0, %v2683_v19  ;;  %v2690_v24 = vmul.f32 %v3865_v15, %v2689_v20 }
 0x99b   : > { %v2749_v26 = vmul.f32 %v2687_v22, %v4511_v25  ;;  %v2796_v27 = vmul.f32 %v2788_v21, %v2772_v18 }
 0x99c   : > { %v2691_v30 = vmul.f32 0.5, %v2690_v24 }
 0x99d   : > { %v2761_v29 = vmul.f32 %v4564_v9, %v2749_v26  ;;  %v2804_v33 = vmul.f32 %v2796_v27, %v2772_v18 }
 0x99e   : > { %v2692_v32 = vsub.f32 1.5, %v2691_v30 }
 0x99f   : > { %v3867_v34 = vpop.eup %3866  ;;  %v2773_v35 = vadd.f32 %v4568_v7, %v2761_v29  ;;  %v2812_v36 = vadd.f32 %v2804_v33, %v2772_v18 }
 0x9a0   : > { %v2693_v37 = vmul.f32 %v3865_v15, %v2692_v32  ;;  %v2699_v39 = vmul.f32 %v3867_v34, %v2654_v16  ;;  %vm2705_vm5 = vweird.f32 %v3867_v34 }
 0x9a1   : > { %v2789_v23 = vmul.f32 0.044715, %v2773_v35  ;;  %v2820_v46 = vmul.f32 0.7978846, %v2812_v36  ;;  %vm2706_vm7 = vmor %vm2704_vm6, %vm2705_vm5  ;;  %v2781_v11 = vmul.f32 0.5, %v2773_v35 }
 0x9a2   : > { %v2697_v43 = vsel %vm2696_vm4, %v3865_v15, %v2693_v37  ;;  %v2700_v44 = vmul.f32 %v3867_v34, %v2699_v39 }
 0x9a3   : > { %v2750_v25 = vmul.f32 %v2697_v43, %v4516_v28  ;;  %v2797_v61 = vmul.f32 %v2789_v23, %v2773_v35  ;;  %3868 = vtanh.f32 %v2820_v46 }
 0x9a4   : > { %v2701_v45 = vmul.f32 0.5, %v2700_v44  ;;  %v2656_v38 = vpop.f32.mrf.mxu0 }
 0x9a5   : > { %v2762_v49 = vmul.f32 %v4564_v9, %v2750_v25  ;;  %v2657_v48 = vadd.f32 1e-06, %v2656_v38  ;;  %v2805_v50 = vmul.f32 %v2797_v61, %v2773_v35 }
 0x9a6   : > { %v2702_v51 = vsub.f32 1.5, %v2701_v45 }
 0x9a7   : > { %v4579_v52 = vadd.f32 %v4568_v7, %v2762_v49  ;;  %3870 = vrsqrt.f32 %v2657_v48  ;;  %v2813_v47 = vadd.f32 %v2805_v50, %v2773_v35  ;;  %vm2714_vm9 = vweird.f32 %v2657_v48 }
 0x9a8   : > { %v2703_v53 = vmul.f32 %v3867_v34, %v2702_v51 }
 0x9a9   : > { %v2821_v54 = vmul.f32 0.7978846, %v2813_v47  ;;  %v2790_v28 = vmul.f32 0.044715, %v4579_v52  ;;  %v3869_v58 = vpop.eup %3868 }
 0x9aa   : > { %v2707_v56 = vsel %vm2706_vm7, %v3867_v34, %v2703_v53  ;;  %v2836_v4 = vadd.f32 1.0, %v3869_v58 }
 0x9ab   : > { %v2751_v55 = vmul.f32 %v2707_v56, %v4521_v31  ;;  %3872 = vtanh.f32 %v2821_v54  ;;  %v2798_v57 = vmul.f32 %v2790_v28, %v4579_v52  ;;  %v2782_v54 = vmul.f32 0.5, %v4579_v52 }
 0x9ac   : > { %v2659_v59 = vpop.f32.mrf.mxu0  ;;  %v2844_v19 = vmul.f32 %v2836_v4, %v2780_v5 }
 0x9ad   : > { %v3871_v60 = vpop.eup %3870  ;;  %v2763_v62 = vmul.f32 %v4564_v9, %v2751_v55  ;;  %v2660_v63 = vadd.f32 1e-06, %v2659_v59  ;;  %v2806_v0 = vmul.f32 %v2798_v57, %v4579_v52 }
 0x9ae   : > { %v2709_v1 = vmul.f32 %v3871_v60, %v2657_v48  ;;  %vm2715_vm8 = vweird.f32 %v3871_v60 }
 0x9af   : > { %v2775_v2 = vadd.f32 %v4568_v7, %v2763_v62  ;;  %3874 = vrsqrt.f32 %v2660_v63  ;;  %v2814_v8 = vadd.f32 %v2806_v0, %v4579_v52  ;;  %vm2716_vm10 = vmor %vm2714_vm9, %vm2715_vm8  ;;  %vm2724_vm12 = vweird.f32 %v2660_v63 }
 0x9b0   : > { %v2710_v3 = vmul.f32 %v3871_v60, %v2709_v1 }
 0x9b1   : > { %v3873_v31 = vpop.eup %3872  ;;  %v2791_v6 = vmul.f32 0.044715, %v2775_v2  ;;  %v2822_v17 = vmul.f32 0.7978846, %v2814_v8  ;;  %v2783_v28 = vmul.f32 0.5, %v2775_v2  ;;  %v3142_v8 = vld [vmem:[%s4167_s27 + $0x8] sm:$0xff] }
 0x9b2   : > { %v2711_v10 = vmul.f32 0.5, %v2710_v3  ;;  %v2837_v13 = vadd.f32 1.0, %v3873_v31 }
 0x9b3   : > { %v2799_v14 = vmul.f32 %v2791_v6, %v2775_v2  ;;  %3876 = vtanh.f32 %v2822_v17 }
 0x9b4   : > { %v2712_v15 = vsub.f32 1.5, %v2711_v10  ;;  %v2662_v16 = vpop.f32.mrf.mxu0  ;;  %v2845_v20 = vmul.f32 %v2837_v13, %v2781_v11 }
 0x9b5   : > { %v3875_v21 = vpop.eup %3874  ;;  %v2663_v22 = vadd.f32 1e-06, %v2662_v16  ;;  %v2807_v24 = vmul.f32 %v2799_v14, %v2775_v2 }
 0x9b6   : > { %v2713_v26 = vmul.f32 %v3871_v60, %v2712_v15  ;;  %v2719_v27 = vmul.f32 %v3875_v21, %v2660_v63  ;;  %v2856_v30 = vpack.c.bf16 %v2845_v20, %v2844_v19  ;;  %vm2725_vm11 = vweird.f32 %v3875_v21  ;;  %v3141_v63 = vld [vmem:[%s4167_s27] sm:$0xff] }
 0x9b7   : > { %3878 = vrsqrt.f32 %v2663_v22  ;;  %v2815_v18 = vadd.f32 %v2807_v24, %v2775_v2  ;;  %vm2726_vm13 = vmor %vm2724_vm12, %vm2725_vm11  ;;  %vm2734_vm15 = vweird.f32 %v2663_v22 }
 0x9b8   : > { %v2717_v29 = vsel %vm2716_vm10, %v3871_v60, %v2713_v26  ;;  %v2720_v33 = vmul.f32 %v3875_v21, %v2719_v27  ;;  %3667 = vmatmul.msk.bf16.vlgmr.msrb.gmra.mxu3 %vm1356_vm0, %v2856_v30 }
 0x9b9   : > { %v2752_v32 = vmul.f32 %v2717_v29, %v4531_v12  ;;  %v2823_v34 = vmul.f32 0.7978846, %v2815_v18  ;;  %v3877_v37 = vpop.eup %3876 }
 0x9ba   : > { %v2721_v35 = vmul.f32 0.5, %v2720_v33  ;;  %v2838_v49 = vadd.f32 1.0, %v3877_v37 }
 0x9bb   : > { %v2764_v36 = vmul.f32 %v4564_v9, %v2752_v32  ;;  %3880 = vtanh.f32 %v2823_v34 }
 0x9bc   : > { %v2722_v39 = vsub.f32 1.5, %v2721_v35  ;;  %v2665_v23 = vpop.f32.mrf.mxu0  ;;  %v2846_v59 = vmul.f32 %v2838_v49, %v2782_v54 }
 0x9bd   : > { %v3879_v43 = vpop.eup %3878  ;;  %v4592_v44 = vadd.f32 %v4568_v7, %v2764_v36  ;;  %v2666_v46 = vadd.f32 1e-06, %v2665_v23 }
 0x9be   : > { %v2723_v25 = vmul.f32 %v3875_v21, %v2722_v39  ;;  %v2729_v61 = vmul.f32 %v3879_v43, %v2663_v22  ;;  %vm2735_vm14 = vweird.f32 %v3879_v43 }
 0x9bf   : > { %3882 = vrsqrt.f32 %v2666_v46  ;;  %v2792_v12 = vmul.f32 0.044715, %v4592_v44  ;;  %vm2736_vm1 = vmor %vm2734_vm15, %vm2735_vm14  ;;  %vm2744_vm4 = vweird.f32 %v2666_v46 }
 0x9c0   : > { %v2727_v45 = vsel %vm2726_vm13, %v3875_v21, %v2723_v25  ;;  %v2730_v38 = vmul.f32 %v3879_v43, %v2729_v61 }
 0x9c1   : > { %v3881_v48 = vpop.eup %3880  ;;  %v2753_v50 = vmul.f32 %v2727_v45, %v4537_v40  ;;  %v3117_v51 = vpop.f32.mrf.mxu2  ;;  %v2800_v47 = vmul.f32 %v2792_v12, %v4592_v44 }
 0x9c2   : > { %v2731_v53 = vmul.f32 0.5, %v2730_v38  ;;  %v2839_v56 = vadd.f32 1.0, %v3881_v48  ;;  %v4605_v5 = vmul.f32 %v3141_v63, %v3117_v51  ;;  %v3145_v63 = vld [vmem:[%s4167_s27 + $0x20] sm:$0xff] }
 0x9c3   : > { %v2765_v55 = vmul.f32 %v4564_v9, %v2753_v50  ;;  %v2808_v57 = vmul.f32 %v2800_v47, %v4592_v44 }
 0x9c4   : > { %v2732_v58 = vsub.f32 1.5, %v2731_v53  ;;  %v2847_v60 = vmul.f32 %v2839_v56, %v2783_v28 }
 0x9c5   : > { %v3883_v62 = vpop.eup %3882  ;;  %v2777_v40 = vadd.f32 %v4568_v7, %v2765_v55  ;;  %v2816_v0 = vadd.f32 %v2808_v57, %v4592_v44 }
 0x9c6   : > { %v2733_v1 = vmul.f32 %v3879_v43, %v2732_v58  ;;  %v2739_v52 = vmul.f32 %v3883_v62, %v2666_v46  ;;  %v2857_v2 = vpack.c.bf16 %v2847_v60, %v2846_v59  ;;  %vm2745_vm3 = vweird.f32 %v3883_v62  ;;  %v3147_v60 = vld [vmem:[%s4167_s27 + $0x30] sm:$0xff] }
 0x9c7   : > { %v2793_v3 = vmul.f32 0.044715, %v2777_v40  ;;  %v2824_v13 = vmul.f32 0.7978846, %v2816_v0  ;;  %vm2746_vm5 = vmor %vm2744_vm4, %vm2745_vm3  ;;  %v2785_v46 = vmul.f32 0.5, %v2777_v40  ;;  %v3146_v0 = vld [vmem:[%s4167_s27 + $0x28] sm:$0xff] }
 0x9c8   : > { %v2737_v4 = vsel %vm2736_vm1, %v3879_v43, %v2733_v1  ;;  %v2740_v31 = vmul.f32 %v3883_v62, %v2739_v52  ;;  %3668 = vmatmul.msk.bf16.gmra.mxu3 %vm1356_vm0, %v2857_v2  ;;  %v2784_v43 = vmul.f32 0.5, %v4592_v44 }
 0x9c9   : > { %v2754_v6 = vmul.f32 %v2737_v4, %v4543_v41  ;;  %v3120_v10 = vpop.f32.mrf.mxu2  ;;  %v2801_v11 = vmul.f32 %v2793_v3, %v2777_v40  ;;  %3884 = vtanh.f32 %v2824_v13 }
 0x9ca   : > { %v2741_v17 = vmul.f32 0.5, %v2740_v31  ;;  %v4608_v14 = vmul.f32 %v3142_v8, %v3120_v10  ;;  %v3144_v10 = vld [vmem:[%s4167_s27 + $0x18] sm:$0xff] }
 0x9cb   : > { %v2766_v15 = vmul.f32 %v4564_v9, %v2754_v6  ;;  %v2809_v16 = vmul.f32 %v2801_v11, %v2777_v40  ;;  %v3143_v6 = vld [vmem:[%s4167_s27 + $0x10] sm:$0xff] }
 0x9cc   : > { %v2742_v19 = vsub.f32 1.5, %v2741_v17  ;;  %v3161_v20 = vpack.c.bf16 %v4608_v14, %v4605_v5 }
 0x9cd   : > { %v2778_v21 = vadd.f32 %v4568_v7, %v2766_v15  ;;  %v2817_v22 = vadd.f32 %v2809_v16, %v2777_v40 }
 0x9ce   : > { %v2743_v24 = vmul.f32 %v3883_v62, %v2742_v19  ;;  %v3178_v19 = vsel %vm1553_vm2, %v3161_v20, 0 }
 0x9cf   : > { %v2825_v41 = vmul.f32 0.7978846, %v2817_v22  ;;  %v2794_v26 = vmul.f32 0.044715, %v2778_v21  ;;  %v3885_v33 = vpop.eup %3884  ;;  %v2786_v53 = vmul.f32 0.5, %v2778_v21 }
 0x9d0   : > { %v2747_v27 = vsel %vm2746_vm5, %v3883_v62, %v2743_v24  ;;  %v2840_v37 = vadd.f32 1.0, %v3885_v33  ;;  %v3148_v62 = vld [vmem:[%s4167_s27 + $0x38] sm:$0xff] }
 0x9d1   : > { %v2755_v30 = vmul.f32 %v2747_v27, %v4549_v42  ;;  %3886 = vtanh.f32 %v2825_v41  ;;  %v3123_v18 = vpop.f32.mrf.mxu2  ;;  %v2802_v29 = vmul.f32 %v2794_v26, %v2778_v21 }
 0x9d2   : > { %v2848_v45 = vmul.f32 %v2840_v37, %v2784_v43  ;;  %v3151_v11 = vmul.f32 %v3143_v6, %v3123_v18 }
 0x9d3   : > { %v2767_v32 = vmul.f32 %v4564_v9, %v2755_v30  ;;  %v2810_v34 = vmul.f32 %v2802_v29, %v2778_v21 }
 0x9d5   : > { %v2779_v35 = vadd.f32 %v4568_v7, %v2767_v32  ;;  %v2818_v36 = vadd.f32 %v2810_v34, %v2778_v21  ;;  %v4634_v21 = vld [vmem:[%s4726_s2] ss:$0 sm:$0xff]  ;;  %s1289_s2 = scalar_lea.vmem %s4172_s4, %s4727_s11 }
 0x9d7   : > { %v3887_v39 = vpop.eup %3886  ;;  %v2795_v23 = vmul.f32 0.044715, %v2779_v35  ;;  %v2826_v42 = vmul.f32 0.7978846, %v2818_v36  ;;  %v2787_v54 = vmul.f32 0.5, %v2779_v35 }
 0x9d8   : > { %v2841_v25 = vadd.f32 1.0, %v3887_v39 }
 0x9d9   : > { %v3126_v61 = vpop.f32.mrf.mxu2  ;;  %v2803_v12 = vmul.f32 %v2795_v23, %v2779_v35  ;;  %3888 = vtanh.f32 %v2826_v42 }
 0x9da   : > { %v2849_v38 = vmul.f32 %v2841_v25, %v2785_v46  ;;  %v3152_v13 = vmul.f32 %v3144_v10, %v3126_v61 }
 0x9db   : > { %v2811_v49 = vmul.f32 %v2803_v12, %v2779_v35 }
 0x9dc   : > { %v2858_v48 = vpack.c.bf16 %v2849_v38, %v2848_v45  ;;  %v3162_v15 = vpack.c.bf16 %v3152_v13, %v3151_v11 }
 0x9dd   : > { %v2819_v50 = vadd.f32 %v2811_v49, %v2779_v35 }
 0x9de   : > { %3669 = vmatmul.msk.bf16.gmra.mxu3 %vm1356_vm0, %v2858_v48  ;;  %v3181_v16 = vsel %vm1553_vm2, %v3162_v15, 0 }
 0x9df   : > { %v2827_v9 = vmul.f32 0.7978846, %v2819_v50  ;;  %v3889_v44 = vpop.eup %3888 }
 0x9e0   : > { %v2842_v51 = vadd.f32 1.0, %v3889_v44 }
 0x9e1   : > { %3890 = vtanh.f32 %v2827_v9  ;;  %v3129_v7 = vpop.f32.mrf.mxu2 }
 0x9e2   : > { %v2850_v55 = vmul.f32 %v2842_v51, %v2786_v53  ;;  %v3153_v2 = vmul.f32 %v3145_v63, %v3129_v7 }
 0x9e7   : > { %v3891_v47 = vpop.eup %3890 }
 0x9e8   : > { %v2843_v28 = vadd.f32 1.0, %v3891_v47 }
 0x9e9   : > { %v3132_v56 = vpop.f32.mrf.mxu2 }
 0x9ea   : > { %v2851_v57 = vmul.f32 %v2843_v28, %v2787_v54  ;;  %v3154_v8 = vmul.f32 %v3146_v0, %v3132_v56 }
 0x9ec   : > { %v2859_v58 = vpack.c.bf16 %v2851_v57, %v2850_v55  ;;  %v3163_v31 = vpack.c.bf16 %v3154_v8, %v3153_v2 }
 0x9ee   : > { %3670 = vmatmul.msk.bf16.gmra.mxu3 %vm1356_vm0, %v2859_v58  ;;  %v3184_v17 = vsel %vm1553_vm2, %v3163_v31, 0 }
 0x9f1   : > { %v3135_v59 = vpop.f32.mrf.mxu2 }
 0x9f2   : > { %v3155_v40 = vmul.f32 %v3147_v60, %v3135_v59 }
 0x9f9   : > { %v3138_v1 = vpop.f32.mrf.mxu2 }
 0x9fa   : > { %v3156_v52 = vmul.f32 %v3148_v62, %v3138_v1 }
 0x9fc   : > { %v3164_v3 = vpack.c.bf16 %v3156_v52, %v3155_v40 }
 0x9fe   : > { %v3187_v4 = vsel %vm1553_vm2, %v3164_v3, 0 }
 0x9ff   : > { %3193 = vmatpush.bf16.xpose.msrb.mxu0 %v3187_v4 }
 0xa07   : > { %3194 = vmatpush.bf16.xpose.msrb.mxu0 %v3184_v17 }
 0xa0f   : > { %3195 = vmatpush.bf16.xpose.msrb.mxu0 %v3181_v16 }
 0xa17   : > { %3196 = vmatpush.bf16.xpose.msrb.mxu0 %v3178_v19 }
 0xa3b   : > { %v2897_v22 = vpop.f32.mrf.mxu3 }
 0xa3c   : > { %v2898_v24 = vadd.f32 %v4634_v21, %v2897_v22 }
 0xa3e   : > { %v2925_v41 = vmul.f32 0.044715, %v2898_v24  ;;  %v2917_v38 = vmul.f32 0.5, %v2898_v24 }
 0xa40   : > { %v2933_v26 = vmul.f32 %v2925_v41, %v2898_v24 }
 0xa42   : > { %v2941_v27 = vmul.f32 %v2933_v26, %v2898_v24 }
 0xa43   : > { %v2899_v30 = vpop.f32.mrf.mxu3 }
 0xa44   : > { %v2949_v18 = vadd.f32 %v2941_v27, %v2898_v24  ;;  %v2900_v29 = vadd.f32 %v4634_v21, %v2899_v30 }
 0xa46   : > { %v2926_v33 = vmul.f32 0.044715, %v2900_v29  ;;  %v2957_v32 = vmul.f32 0.7978846, %v2949_v18  ;;  %v2918_v49 = vmul.f32 0.5, %v2900_v29 }
 0xa48   : > { %v2934_v34 = vmul.f32 %v2926_v33, %v2900_v29  ;;  %3892 = vtanh.f32 %v2957_v32 }
 0xa4a   : > { %v2942_v35 = vmul.f32 %v2934_v34, %v2900_v29 }
 0xa4b   : > { %v2902_v5 = vpop.f32.mrf.mxu3 }
 0xa4c   : > { %v2950_v14 = vadd.f32 %v2942_v35, %v2900_v29  ;;  %v2903_v20 = vadd.f32 %v4634_v21, %v2902_v5 }
 0xa4e   : > { %v2958_v36 = vmul.f32 0.7978846, %v2950_v14  ;;  %v2927_v37 = vmul.f32 0.044715, %v2903_v20  ;;  %v3893_v23 = vpop.eup %3892  ;;  %v2919_v62 = vmul.f32 0.5, %v2903_v20 }
 0xa4f   : > { %v2973_v12 = vadd.f32 1.0, %v3893_v23 }
 0xa50   : > { %3894 = vtanh.f32 %v2958_v36  ;;  %v2935_v39 = vmul.f32 %v2927_v37, %v2903_v20 }
 0xa51   : > { %v2981_v7 = vmul.f32 %v2973_v12, %v2917_v38 }
 0xa52   : > { %v2943_v43 = vmul.f32 %v2935_v39, %v2903_v20 }
 0xa53   : > { %v2904_v46 = vpop.f32.mrf.mxu3 }
 0xa54   : > { %v2951_v25 = vadd.f32 %v2943_v43, %v2903_v20  ;;  %v2905_v61 = vadd.f32 %v4634_v21, %v2904_v46 }
 0xa56   : > { %v3895_v42 = vpop.eup %3894  ;;  %v2928_v45 = vmul.f32 0.044715, %v2905_v61  ;;  %v2959_v50 = vmul.f32 0.7978846, %v2951_v25  ;;  %v2920_v40 = vmul.f32 0.5, %v2905_v61 }
 0xa57   : > { %v2974_v48 = vadd.f32 1.0, %v3895_v42 }
 0xa58   : > { %v2936_v9 = vmul.f32 %v2928_v45, %v2905_v61  ;;  %3896 = vtanh.f32 %v2959_v50 }
 0xa59   : > { %v2982_v44 = vmul.f32 %v2974_v48, %v2918_v49 }
 0xa5a   : > { %v2944_v51 = vmul.f32 %v2936_v9, %v2905_v61 }
 0xa5b   : > { %v3157_v47 = vpack.c.bf16 %v2982_v44, %v2981_v7 }
 0xa5c   : > { %v2952_v53 = vadd.f32 %v2944_v51, %v2905_v61 }
 0xa5d   : > { %3689 = vmatmul.msk.bf16.vlgmr.msrb.gmra.mxu0 %vm1553_vm2, %v3157_v47 }
 0xa5e   : > { %v2960_v54 = vmul.f32 0.7978846, %v2952_v53  ;;  %v3897_v56 = vpop.eup %3896 }
 0xa5f   : > { %v2975_v58 = vadd.f32 1.0, %v3897_v56 }
 0xa60   : > { %3898 = vtanh.f32 %v2960_v54 }
 0xa61   : > { %v2907_v28 = vpop.f32.mrf.mxu3  ;;  %v2983_v52 = vmul.f32 %v2975_v58, %v2919_v62 }
 0xa62   : > { %v2908_v55 = vadd.f32 %v4634_v21, %v2907_v28 }
 0xa64   : > { %v2929_v57 = vmul.f32 0.044715, %v2908_v55  ;;  %v2921_v32 = vmul.f32 0.5, %v2908_v55 }
 0xa66   : > { %v3899_v59 = vpop.eup %3898  ;;  %v2937_v60 = vmul.f32 %v2929_v57, %v2908_v55 }
 0xa67   : > { %v2976_v63 = vadd.f32 1.0, %v3899_v59 }
 0xa68   : > { %v2945_v0 = vmul.f32 %v2937_v60, %v2908_v55 }
 0xa69   : > { %v2909_v1 = vpop.f32.mrf.mxu3  ;;  %v2984_v2 = vmul.f32 %v2976_v63, %v2920_v40 }
 0xa6a   : > { %v2953_v8 = vadd.f32 %v2945_v0, %v2908_v55  ;;  %v2910_v3 = vadd.f32 %v4634_v21, %v2909_v1 }
 0xa6b   : > { %v3158_v4 = vpack.c.bf16 %v2984_v2, %v2983_v52 }
 0xa6c   : > { %v2930_v31 = vmul.f32 0.044715, %v2910_v3  ;;  %v2961_v6 = vmul.f32 0.7978846, %v2953_v8  ;;  %v2922_v34 = vmul.f32 0.5, %v2910_v3 }
 0xa6d   : > { %3690 = vmatmul.msk.bf16.gmra.mxu0 %vm1553_vm2, %v3158_v4 }
 0xa6e   : > { %v2938_v10 = vmul.f32 %v2930_v31, %v2910_v3  ;;  %3900 = vtanh.f32 %v2961_v6 }
 0xa70   : > { %v2946_v11 = vmul.f32 %v2938_v10, %v2910_v3 }
 0xa71   : > { %v2912_v13 = vpop.f32.mrf.mxu3 }
 0xa72   : > { %v2954_v17 = vadd.f32 %v2946_v11, %v2910_v3  ;;  %v2913_v15 = vadd.f32 %v4634_v21, %v2912_v13 }
 0xa74   : > { %v2962_v16 = vmul.f32 0.7978846, %v2954_v17  ;;  %v2931_v19 = vmul.f32 0.044715, %v2913_v15  ;;  %v3901_v24 = vpop.eup %3900  ;;  %v2923_v61 = vmul.f32 0.5, %v2913_v15 }
 0xa75   : > { %v2977_v18 = vadd.f32 1.0, %v3901_v24 }
 0xa76   : > { %v2939_v22 = vmul.f32 %v2931_v19, %v2913_v15  ;;  %3902 = vtanh.f32 %v2962_v16 }
 0xa77   : > { %v2985_v20 = vmul.f32 %v2977_v18, %v2921_v32 }
 0xa78   : > { %v2947_v41 = vmul.f32 %v2939_v22, %v2913_v15 }
 0xa79   : > { %v2914_v26 = vpop.f32.mrf.mxu3 }
 0xa7a   : > { %v2955_v27 = vadd.f32 %v2947_v41, %v2913_v15  ;;  %v2915_v30 = vadd.f32 %v4634_v21, %v2914_v26 }
 0xa7c   : > { %v3903_v29 = vpop.eup %3902  ;;  %v2932_v33 = vmul.f32 0.044715, %v2915_v30  ;;  %v2963_v5 = vmul.f32 0.7978846, %v2955_v27  ;;  %v2924_v12 = vmul.f32 0.5, %v2915_v30 }
 0xa7d   : > { %v2978_v35 = vadd.f32 1.0, %v3903_v29 }
 0xa7e   : > { %v2940_v14 = vmul.f32 %v2932_v33, %v2915_v30  ;;  %3904 = vtanh.f32 %v2963_v5 }
 0xa7f   : > { %v2986_v36 = vmul.f32 %v2978_v35, %v2922_v34 }
 0xa80   : > { %v2948_v37 = vmul.f32 %v2940_v14, %v2915_v30 }
 0xa81   : > { %v3159_v39 = vpack.c.bf16 %v2986_v36, %v2985_v20 }
 0xa82   : > { %v2956_v23 = vadd.f32 %v2948_v37, %v2915_v30 }
 0xa83   : > { %3691 = vmatmul.msk.bf16.gmra.mxu0 %vm1553_vm2, %v3159_v39 }
 0xa84   : > { %v2964_v43 = vmul.f32 0.7978846, %v2956_v23  ;;  %v3905_v21 = vpop.eup %3904 }
 0xa85   : > { %v2979_v46 = vadd.f32 1.0, %v3905_v21 }
 0xa86   : > { %3906 = vtanh.f32 %v2964_v43 }
 0xa87   : > { %v2987_v45 = vmul.f32 %v2979_v46, %v2923_v61 }
 0xa8c   : > { %v3907_v25 = vpop.eup %3906 }
 0xa8d   : > { %v2980_v42 = vadd.f32 1.0, %v3907_v25 }
 0xa8f   : > { %v2988_v38 = vmul.f32 %v2980_v42, %v2924_v12 }
 0xa91   : > { %v3160_v49 = vpack.c.bf16 %v2988_v38, %v2987_v45 }
 0xa93   : > { %3692 = vmatmul.msk.bf16.gmra.mxu0 %vm1553_vm2, %v3160_v49 }
 0xada   : > { %v3198_v48 = vpop.f32.mrf.mxu0 }
 0xadb   : > { %3218 = vst.msk [vmem:[%s1289_s2] sm:$0xff] %vm1553_vm2, %v3198_v48 }
 0xae2   : > { %v3200_v50 = vpop.f32.mrf.mxu0 }
 0xae3   : > { %3219 = vst.msk [vmem:[%s1289_s2 + $0x8] sm:$0xff] %vm1553_vm2, %v3200_v50 }
 0xaea   : > { %v3203_v9 = vpop.f32.mrf.mxu0 }
 0xaeb   : > { %3220 = vst.msk [vmem:[%s1289_s2 + $0x10] sm:$0xff] %vm1553_vm2, %v3203_v9 }
 0xaf2   : > { %v3205_v7 = vpop.f32.mrf.mxu0 }
 0xaf3   : > { %3221 = vst.msk [vmem:[%s1289_s2 + $0x18] sm:$0xff] %vm1553_vm2, %v3205_v7 }
 0xb00   : > { %v3208_v44 = vpop.f32.mrf.mxu0 }
 0xb01   : > { %3222 = vst.msk [vmem:[%s1289_s2 + $0x20] sm:$0xff] %vm1553_vm2, %v3208_v44 }
 0xb08   : > { %v3210_v51 = vpop.f32.mrf.mxu0 }
 0xb09   : > { %3223 = vst.msk [vmem:[%s1289_s2 + $0x28] sm:$0xff] %vm1553_vm2, %v3210_v51 }
 0xb10   : > { %v3213_v47 = vpop.f32.mrf.mxu0 }
 0xb11   : > { %3224 = vst.msk [vmem:[%s1289_s2 + $0x30] sm:$0xff] %vm1553_vm2, %v3213_v47 }
 0xb18   : > { %v3215_v53 = vpop.f32.mrf.mxu0 }
 0xb19   : > { %3225 = vst.msk [vmem:[%s1289_s2 + $0x38] sm:$0xff] %vm1553_vm2, %v3215_v53 }
 0xb1a PF: > { %s96_s15 = sadd.s32 1, %s3914_s15  }
 0xb1b   : > { %p93_p4 = scmp.ge.s32.totalorder %s96_s15, 4  }
 0xb1d   :  { %95 = sbr.rel (!%p93_p4) target bundleno = 75 (0x4b), region = 271 }

</bundles_post_ra>
